<compile_context>
chip_gen: v7x
topology: tpu7x:2x2x1
jax: 0.10.0
libtpu: 0.0.40
codegen_flags: <defaults>
</compile_context>

<pallas_src>
import jax
import jax.numpy as jnp
from jax.experimental import pallas as pl
from jax.experimental.pallas import tpu as pltpu

BN_EPS = 1e-5
LN_EPS = 1e-5
_PAD_L = 8          # sublane-aligned column offset of the conv2 halo interior

# rows of the packed (8, >=128) bias/vector buffer
_ROW_WM, _ROW_BA2, _ROW_B3, _ROW_BA1, _ROW_LNG, _ROW_LNB, _ROW_B1, _ROW_B2 = range(8)


# ------------------------------ Pallas kernel -------------------------------

def _bottleneck_kernel(x_ref, vecs_ref, wa1_ref, wa2_ref, w1_ref, w2_ref,
                       w3_ref, wse1_ref, wse2_ref, o_ref, pad_ref, cols_ref):
    # x_ref   : (Nb, H, W, Cin) f32      input tile (NHWC)
    # vecs_ref: (8, >=128) f32           packed wm / biases / LN params (see rows)
    # wa1/wa2 : (Cin,Pcb)/(Pcb,Cin) f32  ContextBlock channel_add convs (VPU path)
    # w1/w2/w3: bf16 BN-folded conv weights (Cin,P), (9P,P), (P,C4)
    # wse1/2  : (C4,C4r)/(C4r,C4) f32    SE fc weights (VPU path)
    # o_ref   : (Nb, H, W, C4) f32
    # pad_ref : VMEM scratch (Nb, H+2, Wpad, P) f32   conv2 halo
    # cols_ref: VMEM scratch (Nb, H, W, 9P) bf16      im2col columns
    Nb, H, W, C4 = o_ref.shape
    Cin = x_ref.shape[3]
    P = w1_ref.shape[1]
    Pcb = wa1_ref.shape[1]
    HW = H * W
    L = _PAD_L

    x4 = x_ref[...]                                           # (Nb,H,W,Cin) f32
    xim = x4.reshape(Nb, HW, Cin)                             # (Nb,HW,Cin)
    xf = x4.reshape(Nb * HW, Cin)

    # packed small vectors
    wm = vecs_ref[_ROW_WM:_ROW_WM + 1, :Cin]                  # (1, Cin)
    ba2 = vecs_ref[_ROW_BA2:_ROW_BA2 + 1, :Cin]
    b3 = vecs_ref[_ROW_B3:_ROW_B3 + 1, :C4]
    ba1 = vecs_ref[_ROW_BA1:_ROW_BA1 + 1, :Pcb]
    ln_g = vecs_ref[_ROW_LNG:_ROW_LNG + 1, :Pcb]
    ln_b = vecs_ref[_ROW_LNB:_ROW_LNB + 1, :Pcb]
    b1 = vecs_ref[_ROW_B1:_ROW_B1 + 1, :P]
    b2 = vecs_ref[_ROW_B2:_ROW_B2 + 1, :P]

    # ---- ContextBlock: attention pooling (per image) + channel_add fusion ----
    # conv_mask bias dropped (softmax over spatial positions is shift-invariant).
    mask = jnp.sum(xim * wm[None], axis=-1, keepdims=True)    # (Nb,HW,1)
    mask = mask - jnp.max(mask, axis=1, keepdims=True)
    e = jnp.exp(mask)
    ctx = jnp.sum(xim * e, axis=1) / jnp.sum(e, axis=1)       # (Nb,Cin) fused norm
    # channel_add_conv (1x1 -> LN -> ReLU -> 1x1) on the VPU (M==Nb is tiny).
    t = jnp.sum(ctx[:, :, None] * wa1_ref[...][None], axis=1) + ba1      # (Nb,Pcb)
    mu = jnp.mean(t, axis=-1, keepdims=True)
    var = jnp.mean((t - mu) * (t - mu), axis=-1, keepdims=True)
    t = (t - mu) * jax.lax.rsqrt(var + LN_EPS) * ln_g + ln_b
    t = jnp.maximum(t, 0.0)
    add_term = jnp.sum(t[:, :, None] * wa2_ref[...][None], axis=1) + ba2  # (Nb,Cin)
    residual = xim + add_term[:, None, :]                      # (Nb,HW,Cin) f32

    # ---- conv1 (1x1) + folded BN1 + ReLU (bf16 MXU, f32 accumulate) ----
    y1 = jnp.dot(xf.astype(jnp.bfloat16), w1_ref[...],
                 preferred_element_type=jnp.float32) + b1      # (Nb*HW, P) f32
    y1 = jnp.maximum(y1, 0.0)

    # ---- conv2 (3x3, stride 1, pad 1): halo + direct-write im2col + ONE matmul ----
    # zero only the 1-px border the taps actually read (interior is overwritten)
    zrow = jnp.zeros((Nb, 1, W + 2, P), jnp.float32)
    zcol = jnp.zeros((Nb, H, 1, P), jnp.float32)
    pad_ref[:, 0:1, L - 1:L + W + 1, :] = zrow
    pad_ref[:, H + 1:H + 2, L - 1:L + W + 1, :] = zrow
    pad_ref[:, 1:H + 1, L - 1:L, :] = zcol
    pad_ref[:, 1:H + 1, L + W:L + W + 1, :] = zcol
    pad_ref[:, 1:H + 1, L:L + W, :] = y1.reshape(Nb, H, W, P)  # aligned interior

    for tap in range(9):                                        # tap-major (dy, dx)
        dy, dx = divmod(tap, 3)
        cols_ref[:, :, :, tap * P:(tap + 1) * P] = (
            pad_ref[:, dy:dy + H, L - 1 + dx:L - 1 + dx + W, :].astype(jnp.bfloat16))

    col = cols_ref[...].reshape(Nb * HW, 9 * P)                 # (Nb*HW, 9P) bf16
    y2 = jnp.dot(col, w2_ref[...], preferred_element_type=jnp.float32) + b2
    y2 = jnp.maximum(y2, 0.0).astype(jnp.bfloat16)              # (Nb*HW, P)

    # ---- conv3 (1x1) + folded BN3 ----
    y3 = jnp.dot(y2, w3_ref[...], preferred_element_type=jnp.float32) + b3
    y3 = y3.reshape(Nb, HW, C4)                                  # (Nb,HW,C4) f32

    # ---- SELayer (per image, VPU path) ----
    pooled = jnp.mean(y3, axis=1)                                # (Nb, C4)
    s = jnp.maximum(jnp.sum(pooled[:, :, None] * wse1_ref[...][None], axis=1), 0.0)
    s = jax.nn.sigmoid(jnp.sum(s[:, :, None] * wse2_ref[...][None], axis=1))  # (Nb,C4)

    out = jnp.maximum(y3 * s[:, None, :] + residual, 0.0)
    o_ref[...] = out.reshape(Nb, H, W, C4).astype(o_ref.dtype)


# --------------------------------- wrapper -----------------------------------

def bottleneck_forward(params, x_nchw, images_per_step=None):
    # Public interface is PyTorch-style NCHW; NHWC inside the kernel.
    x = jnp.transpose(x_nchw, (0, 2, 3, 1)).astype(jnp.float32)
    N, H, W, Cin = x.shape
    P = params['conv1'].shape[1]
    C4 = params['conv3'].shape[1]
    Pcb = params['gc']['wa1'].shape[1]
    assert C4 == Cin, "downsample=None requires inplanes == planes*4"

    if images_per_step is None:
        # keep >=2 grid steps so both v7x TensorCores get work; larger blocks
        # amortize the ~0.35us/step fixed cost when N grows.  On v5e, pass
        # images_per_step=N to collapse the (serial) grid entirely.
        images_per_step = max(1, N // 2)
    while N % images_per_step:
        images_per_step -= 1
    nb = images_per_step

    def fold(bn):
        s = bn['gamma'] * jax.lax.rsqrt(bn['var'] + BN_EPS)
        return s, bn['beta'] - bn['mean'] * s

    s1, b1 = fold(params['bn1'])
    s2, b2 = fold(params['bn2'])
    s3, b3 = fold(params['bn3'])
    w1f = (params['conv1'] * s1[None, :]).astype(jnp.bfloat16)                  # (Cin,P)
    w2f = (params['conv2'] * s2[None, None, None, :]).reshape(9 * P, P).astype(jnp.bfloat16)
    w3f = (params['conv3'] * s3[None, :]).astype(jnp.bfloat16)                  # (P,C4)

    gc = params['gc']
    vw = max(128, Cin, C4)

    def row(v):
        v = v.astype(jnp.float32)
        return jnp.pad(v, (0, vw - v.shape[0]))

    # one packed (8, vw) buffer = one DMA / one VMEM tile for all tiny vectors.
    # gc['bm'] intentionally omitted (spatial softmax is shift-invariant).
    vecs = jnp.stack([row(gc['wm']), row(gc['ba2']), row(b3), row(gc['ba1']),
                      row(gc['ln_g']), row(gc['ln_b']), row(b1), row(b2)])

    args = (x, vecs, gc['wa1'], gc['wa2'], w1f, w2f, w3f,
            params['se']['w1'], params['se']['w2'])

    in_specs = [pl.BlockSpec((nb, H, W, Cin), lambda n: (n, 0, 0, 0))]
    in_specs += [pl.BlockSpec(a.shape, lambda n: (0, 0)) for a in args[1:]]

    wpad = ((_PAD_L + W + 1 + 7) // 8) * 8

    out = pl.pallas_call(
        _bottleneck_kernel,
        out_shape=jax.ShapeDtypeStruct((N, H, W, C4), jnp.float32),
        grid=(N // nb,),
        in_specs=in_specs,
        out_specs=pl.BlockSpec((nb, H, W, C4), lambda n: (n, 0, 0, 0)),
        scratch_shapes=[pltpu.VMEM((nb, H + 2, wpad, P), jnp.float32),
                        pltpu.VMEM((nb, H, W, 9 * P), jnp.bfloat16)],
        compiler_params=pltpu.CompilerParams(dimension_semantics=("parallel",)),
    )(*args)
    return jnp.transpose(out, (0, 3, 1, 2))


# ------------------------------- parameters ----------------------------------

def init_params(key, inplanes=128, planes=32, reduction=16, gc_ratio=0.25):
    C4 = planes * 4
    assert C4 == inplanes, "downsample=None requires inplanes == planes*4"
    Pcb = int(inplanes * gc_ratio)
    C4r = C4 // reduction
    ks = jax.random.split(key, 16)

    def w(k, shape, fan_in):
        return jax.random.normal(k, shape, jnp.float32) * jnp.sqrt(2.0 / fan_in)

    def bn(k, c):
        kg, kb, km, kv = jax.random.split(k, 4)
        return dict(gamma=1.0 + 0.1 * jax.random.normal(kg, (c,), jnp.float32),
                    beta=0.1 * jax.random.normal(kb, (c,), jnp.float32),
                    mean=0.1 * jax.random.normal(km, (c,), jnp.float32),
                    var=jax.random.uniform(kv, (c,), jnp.float32, minval=0.5, maxval=1.5))

    return dict(
        conv1=w(ks[0], (inplanes, planes), inplanes), bn1=bn(ks[1], planes),
        conv2=w(ks[2], (3, 3, planes, planes), 9 * planes), bn2=bn(ks[3], planes),
        conv3=w(ks[4], (planes, C4), planes), bn3=bn(ks[5], C4),
        se=dict(w1=w(ks[6], (C4, C4r), C4), w2=w(ks[7], (C4r, C4), C4r)),
        gc=dict(wm=w(ks[8], (inplanes,), inplanes),
                bm=0.1 * jax.random.normal(ks[9], (), jnp.float32),
                wa1=w(ks[10], (inplanes, Pcb), inplanes),
                ba1=0.1 * jax.random.normal(ks[11], (Pcb,), jnp.float32),
                ln_g=1.0 + 0.1 * jax.random.normal(ks[12], (Pcb,), jnp.float32),
                ln_b=0.1 * jax.random.normal(ks[13], (Pcb,), jnp.float32),
                # NOTE: PyTorch zero-inits this last conv (last_zero_init); random
                # values here exercise the full datapath.
                wa2=w(ks[14], (Pcb, inplanes), Pcb),
                ba2=0.1 * jax.random.normal(ks[15], (inplanes,), jnp.float32)),
    )


# ---------------------------- pure-XLA reference ------------------------------

def _reference(params, x_nchw):
    x = jnp.transpose(x_nchw, (0, 2, 3, 1)).astype(jnp.float32)
    N, H, W, Cin = x.shape
    gc = params['gc']

    xf = x.reshape(N, H * W, Cin)
    mask = jnp.einsum('npc,c->np', xf, gc['wm']) + gc['bm']
    p = jax.nn.softmax(mask, axis=-1)
    ctx = jnp.einsum('npc,np->nc', xf, p)
    t = ctx @ gc['wa1'] + gc['ba1']
    mu = t.mean(-1, keepdims=True)
    var = ((t - mu) ** 2).mean(-1, keepdims=True)
    t = (t - mu) / jnp.sqrt(var + LN_EPS) * gc['ln_g'] + gc['ln_b']
    t = jnp.maximum(t, 0.0)
    add_term = t @ gc['wa2'] + gc['ba2']
    residual = x + add_term[:, None, None, :]

    def bn(y, b):
        s = b['gamma'] / jnp.sqrt(b['var'] + BN_EPS)
        return y * s + (b['beta'] - b['mean'] * s)

    y = jnp.einsum('nhwc,cd->nhwd', x, params['conv1'])
    y = jnp.maximum(bn(y, params['bn1']), 0.0)
    y = jax.lax.conv_general_dilated(y, params['conv2'], (1, 1), ((1, 1), (1, 1)),
                                     dimension_numbers=('NHWC', 'HWIO', 'NHWC'))
    y = jnp.maximum(bn(y, params['bn2']), 0.0)
    y = jnp.einsum('nhwc,cd->nhwd', y, params['conv3'])
    y = bn(y, params['bn3'])

    pooled = y.mean(axis=(1, 2))
    s = jnp.maximum(pooled @ params['se']['w1'], 0.0)
    s = jax.nn.sigmoid(s @ params['se']['w2'])
    out = jnp.maximum(y * s[:, None, None, :] + residual, 0.0)
    return jnp.transpose(out, (0, 3, 1, 2))


# ----------------------------------- main -------------------------------------

if __name__ == "__main__":
    key = jax.random.PRNGKey(0)
    kp, kx = jax.random.split(key)
    # Bottleneck(inplanes=128, planes=32, stride=1, downsample=None,
    #            reduction=16, stage4=True), input (N=2, C=128, H=16, W=16).
    params = init_params(kp, inplanes=128, planes=32, reduction=16)
    x = jax.random.normal(kx, (2, 128, 16, 16), jnp.float32)

    out = jax.jit(bottleneck_forward)(params, x)
    jax.block_until_ready(out)
    assert out.shape == (2, 128, 16, 16)

    ref = _reference(params, x)
    # conv path runs the MXU in bf16 (f32 accumulate); tolerance relaxed vs the
    # all-f32 XLA reference accordingly.
    err = float(jnp.max(jnp.abs(out - ref)))
    assert jnp.allclose(out, ref, rtol=5e-2, atol=5e-2), err

    print("KERNEL_OK")
</pallas_src>

<mosaic_0001>
module attributes {stable_mosaic.version = 11 : i64} {
  func.func @_bottleneck_kernel(%arg0: i32, %arg1: memref<1x16x16x128xf32, #tpu.memory_space<vmem>>, %arg2: memref<8x128xf32, #tpu.memory_space<vmem>>, %arg3: memref<128x32xf32, #tpu.memory_space<vmem>>, %arg4: memref<32x128xf32, #tpu.memory_space<vmem>>, %arg5: memref<128x32xbf16, #tpu.memory_space<vmem>>, %arg6: memref<288x32xbf16, #tpu.memory_space<vmem>>, %arg7: memref<32x128xbf16, #tpu.memory_space<vmem>>, %arg8: memref<128x8xf32, #tpu.memory_space<vmem>>, %arg9: memref<8x128xf32, #tpu.memory_space<vmem>>, %arg10: memref<1x16x16x128xf32, #tpu.memory_space<vmem>>, %arg11: memref<1x18x32x32xf32, #tpu.memory_space<vmem>>, %arg12: memref<1x16x16x288xbf16, #tpu.memory_space<vmem>>) attributes {dimension_semantics = [#tpu.dimension_semantics<parallel>], iteration_bounds = array<i64: 2>, scalar_prefetch = 0 : i64, scratch_operands = 2 : i64, tpu.core_type = #tpu.core_type<tc>, window_params = [{transform_indices = @transform_0, window_bounds = array<i64: 1, 16, 16, 128>}, {pipeline_mode = #tpu.pipeline_mode<synchronous>, transform_indices = @transform_1, window_bounds = array<i64: 8, 128>}, {pipeline_mode = #tpu.pipeline_mode<synchronous>, transform_indices = @transform_2, window_bounds = array<i64: 128, 32>}, {pipeline_mode = #tpu.pipeline_mode<synchronous>, transform_indices = @transform_3, window_bounds = array<i64: 32, 128>}, {pipeline_mode = #tpu.pipeline_mode<synchronous>, transform_indices = @transform_4, window_bounds = array<i64: 128, 32>}, {pipeline_mode = #tpu.pipeline_mode<synchronous>, transform_indices = @transform_5, window_bounds = array<i64: 288, 32>}, {pipeline_mode = #tpu.pipeline_mode<synchronous>, transform_indices = @transform_6, window_bounds = array<i64: 32, 128>}, {pipeline_mode = #tpu.pipeline_mode<synchronous>, transform_indices = @transform_7, window_bounds = array<i64: 128, 8>}, {pipeline_mode = #tpu.pipeline_mode<synchronous>, transform_indices = @transform_8, window_bounds = array<i64: 8, 128>}, {transform_indices = @transform_9, window_bounds = array<i64: 1, 16, 16, 128>}]} {
    %c0 = arith.constant 0 : index
    %c0_0 = arith.constant 0 : index
    %c0_1 = arith.constant 0 : index
    %c0_2 = arith.constant 0 : index
    %0 = vector.load %arg1[%c0, %c0_0, %c0_1, %c0_2] : memref<1x16x16x128xf32, #tpu.memory_space<vmem>>, vector<1x16x16x128xf32>
    %1 = vector.shape_cast %0 : vector<1x16x16x128xf32> to vector<1x256x128xf32>
    %2 = vector.shape_cast %0 : vector<1x16x16x128xf32> to vector<256x128xf32>
    %c0_3 = arith.constant 0 : index
    %c0_4 = arith.constant 0 : index
    %3 = vector.load %arg2[%c0_3, %c0_4] : memref<8x128xf32, #tpu.memory_space<vmem>>, vector<1x128xf32>
    %c1 = arith.constant 1 : index
    %c0_5 = arith.constant 0 : index
    %4 = vector.load %arg2[%c1, %c0_5] : memref<8x128xf32, #tpu.memory_space<vmem>>, vector<1x128xf32>
    %c2 = arith.constant 2 : index
    %c0_6 = arith.constant 0 : index
    %5 = vector.load %arg2[%c2, %c0_6] : memref<8x128xf32, #tpu.memory_space<vmem>>, vector<1x128xf32>
    %c3 = arith.constant 3 : index
    %c0_7 = arith.constant 0 : index
    %6 = vector.load %arg2[%c3, %c0_7] : memref<8x128xf32, #tpu.memory_space<vmem>>, vector<1x32xf32>
    %c4 = arith.constant 4 : index
    %c0_8 = arith.constant 0 : index
    %7 = vector.load %arg2[%c4, %c0_8] : memref<8x128xf32, #tpu.memory_space<vmem>>, vector<1x32xf32>
    %c5 = arith.constant 5 : index
    %c0_9 = arith.constant 0 : index
    %8 = vector.load %arg2[%c5, %c0_9] : memref<8x128xf32, #tpu.memory_space<vmem>>, vector<1x32xf32>
    %c6 = arith.constant 6 : index
    %c0_10 = arith.constant 0 : index
    %9 = vector.load %arg2[%c6, %c0_10] : memref<8x128xf32, #tpu.memory_space<vmem>>, vector<1x32xf32>
    %c7 = arith.constant 7 : index
    %c0_11 = arith.constant 0 : index
    %10 = vector.load %arg2[%c7, %c0_11] : memref<8x128xf32, #tpu.memory_space<vmem>>, vector<1x32xf32>
    %11 = vector.shape_cast %3 : vector<1x128xf32> to vector<1x1x128xf32>
    %12 = vector.broadcast %11 : vector<1x1x128xf32> to vector<1x256x128xf32>
    %13 = arith.mulf %1, %12 : vector<1x256x128xf32>
    %cst = arith.constant dense<0.000000e+00> : vector<1x256xf32>
    %14 = vector.multi_reduction <add>, %13, %cst [2] : vector<1x256x128xf32> to vector<1x256xf32>
    %15 = vector.shape_cast %14 : vector<1x256xf32> to vector<1x256x1xf32>
    %cst_12 = arith.constant dense<0xFF800000> : vector<1x1xf32>
    %16 = vector.multi_reduction <maximumf>, %15, %cst_12 [1] : vector<1x256x1xf32> to vector<1x1xf32>
    %17 = vector.shape_cast %16 : vector<1x1xf32> to vector<1x1x1xf32>
    %18 = vector.broadcast %17 : vector<1x1x1xf32> to vector<1x256x1xf32>
    %19 = arith.subf %15, %18 : vector<1x256x1xf32>
    %20 = math.exp %19 : vector<1x256x1xf32>
    %21 = vector.broadcast %20 : vector<1x256x1xf32> to vector<1x256x128xf32>
    %22 = arith.mulf %1, %21 : vector<1x256x128xf32>
    %cst_13 = arith.constant dense<0.000000e+00> : vector<1x128xf32>
    %23 = vector.multi_reduction <add>, %22, %cst_13 [1] : vector<1x256x128xf32> to vector<1x128xf32>
    %cst_14 = arith.constant dense<0.000000e+00> : vector<1x1xf32>
    %24 = vector.multi_reduction <add>, %20, %cst_14 [1] : vector<1x256x1xf32> to vector<1x1xf32>
    %25 = vector.broadcast %24 : vector<1x1xf32> to vector<1x128xf32>
    %26 = arith.divf %23, %25 : vector<1x128xf32>
    %27 = vector.shape_cast %26 : vector<1x128xf32> to vector<1x128x1xf32>
    %c0_15 = arith.constant 0 : index
    %c0_16 = arith.constant 0 : index
    %28 = vector.load %arg3[%c0_15, %c0_16] : memref<128x32xf32, #tpu.memory_space<vmem>>, vector<128x32xf32>
    %29 = vector.shape_cast %28 : vector<128x32xf32> to vector<1x128x32xf32>
    %30 = vector.broadcast %27 : vector<1x128x1xf32> to vector<1x128x32xf32>
    %31 = arith.mulf %30, %29 : vector<1x128x32xf32>
    %cst_17 = arith.constant dense<0.000000e+00> : vector<1x32xf32>
    %32 = vector.multi_reduction <add>, %31, %cst_17 [1] : vector<1x128x32xf32> to vector<1x32xf32>
    %33 = arith.addf %32, %6 : vector<1x32xf32>
    %cst_18 = arith.constant dense<0.000000e+00> : vector<1xf32>
    %34 = vector.multi_reduction <add>, %33, %cst_18 [1] : vector<1x32xf32> to vector<1xf32>
    %35 = vector.shape_cast %34 : vector<1xf32> to vector<1x1xf32>
    %cst_19 = arith.constant 3.200000e+01 : f32
    %36 = vector.broadcast %cst_19 : f32 to vector<1x1xf32>
    %37 = arith.divf %35, %36 : vector<1x1xf32>
    %38 = vector.broadcast %37 : vector<1x1xf32> to vector<1x32xf32>
    %39 = arith.subf %33, %38 : vector<1x32xf32>
    %40 = vector.broadcast %37 : vector<1x1xf32> to vector<1x32xf32>
    %41 = arith.subf %33, %40 : vector<1x32xf32>
    %42 = arith.mulf %39, %41 : vector<1x32xf32>
    %cst_20 = arith.constant dense<0.000000e+00> : vector<1xf32>
    %43 = vector.multi_reduction <add>, %42, %cst_20 [1] : vector<1x32xf32> to vector<1xf32>
    %44 = vector.shape_cast %43 : vector<1xf32> to vector<1x1xf32>
    %cst_21 = arith.constant 3.200000e+01 : f32
    %45 = vector.broadcast %cst_21 : f32 to vector<1x1xf32>
    %46 = arith.divf %44, %45 : vector<1x1xf32>
    %47 = vector.broadcast %37 : vector<1x1xf32> to vector<1x32xf32>
    %48 = arith.subf %33, %47 : vector<1x32xf32>
    %cst_22 = arith.constant 9.99999974E-6 : f32
    %49 = vector.broadcast %cst_22 : f32 to vector<1x1xf32>
    %50 = arith.addf %46, %49 : vector<1x1xf32>
    %51 = math.rsqrt %50 : vector<1x1xf32>
    %52 = vector.broadcast %51 : vector<1x1xf32> to vector<1x32xf32>
    %53 = arith.mulf %48, %52 : vector<1x32xf32>
    %54 = arith.mulf %53, %7 : vector<1x32xf32>
    %55 = arith.addf %54, %8 : vector<1x32xf32>
    %cst_23 = arith.constant 0.000000e+00 : f32
    %56 = vector.broadcast %cst_23 : f32 to vector<1x32xf32>
    %57 = arith.maximumf %55, %56 : vector<1x32xf32>
    %58 = vector.shape_cast %57 : vector<1x32xf32> to vector<1x32x1xf32>
    %c0_24 = arith.constant 0 : index
    %c0_25 = arith.constant 0 : index
    %59 = vector.load %arg4[%c0_24, %c0_25] : memref<32x128xf32, #tpu.memory_space<vmem>>, vector<32x128xf32>
    %60 = vector.shape_cast %59 : vector<32x128xf32> to vector<1x32x128xf32>
    %61 = vector.broadcast %58 : vector<1x32x1xf32> to vector<1x32x128xf32>
    %62 = arith.mulf %61, %60 : vector<1x32x128xf32>
    %cst_26 = arith.constant dense<0.000000e+00> : vector<1x128xf32>
    %63 = vector.multi_reduction <add>, %62, %cst_26 [1] : vector<1x32x128xf32> to vector<1x128xf32>
    %64 = arith.addf %63, %4 : vector<1x128xf32>
    %65 = vector.shape_cast %64 : vector<1x128xf32> to vector<1x1x128xf32>
    %66 = vector.broadcast %65 : vector<1x1x128xf32> to vector<1x256x128xf32>
    %67 = arith.addf %1, %66 : vector<1x256x128xf32>
    %68 = arith.truncf %2 : vector<256x128xf32> to vector<256x128xbf16>
    %c0_27 = arith.constant 0 : index
    %c0_28 = arith.constant 0 : index
    %69 = vector.load %arg5[%c0_27, %c0_28] : memref<128x32xbf16, #tpu.memory_space<vmem>>, vector<128x32xbf16>
    %cst_29 = arith.constant dense<0.000000e+00> : vector<256x32xf32>
    %70 = tpu.matmul %68, %69, %cst_29 {dimension_numbers = #tpu.dot_dimension_numbers<[1], [0], [0], [1], [0, 0, 1, 1], [], []>} : vector<256x128xbf16>, vector<128x32xbf16>, vector<256x32xf32> -> vector<256x32xf32>
    %71 = vector.broadcast %9 : vector<1x32xf32> to vector<256x32xf32>
    %72 = arith.addf %70, %71 : vector<256x32xf32>
    %cst_30 = arith.constant 0.000000e+00 : f32
    %73 = vector.broadcast %cst_30 : f32 to vector<256x32xf32>
    %74 = arith.maximumf %72, %73 : vector<256x32xf32>
    %cst_31 = arith.constant 0.000000e+00 : f32
    %75 = vector.broadcast %cst_31 : f32 to vector<1x1x18x32xf32>
    %cst_32 = arith.constant 0.000000e+00 : f32
    %76 = vector.broadcast %cst_32 : f32 to vector<1x16x1x32xf32>
    %c0_33 = arith.constant 0 : index
    %c0_34 = arith.constant 0 : index
    %c7_35 = arith.constant 7 : index
    %c0_36 = arith.constant 0 : index
    %77 = vector.load %arg11[%c0_33, %c0_34, %c7_35, %c0_36] : memref<1x18x32x32xf32, #tpu.memory_space<vmem>>, vector<1x1x18x32xf32>
    tpu.vector_store %arg11[%c0_33, %c0_34, %c7_35, %c0_36], %75 {strides = array<i32>} : memref<1x18x32x32xf32, #tpu.memory_space<vmem>>, vector<1x1x18x32xf32>,
    %c0_37 = arith.constant 0 : index
    %c17 = arith.constant 17 : index
    %c7_38 = arith.constant 7 : index
    %c0_39 = arith.constant 0 : index
    %78 = vector.load %arg11[%c0_37, %c17, %c7_38, %c0_39] : memref<1x18x32x32xf32, #tpu.memory_space<vmem>>, vector<1x1x18x32xf32>
    tpu.vector_store %arg11[%c0_37, %c17, %c7_38, %c0_39], %75 {strides = array<i32>} : memref<1x18x32x32xf32, #tpu.memory_space<vmem>>, vector<1x1x18x32xf32>,
    %c0_40 = arith.constant 0 : index
    %c1_41 = arith.constant 1 : index
    %c7_42 = arith.constant 7 : index
    %c0_43 = arith.constant 0 : index
    %79 = vector.load %arg11[%c0_40, %c1_41, %c7_42, %c0_43] : memref<1x18x32x32xf32, #tpu.memory_space<vmem>>, vector<1x16x1x32xf32>
    tpu.vector_store %arg11[%c0_40, %c1_41, %c7_42, %c0_43], %76 {strides = array<i32>} : memref<1x18x32x32xf32, #tpu.memory_space<vmem>>, vector<1x16x1x32xf32>,
    %c0_44 = arith.constant 0 : index
    %c1_45 = arith.constant 1 : index
    %c24 = arith.constant 24 : index
    %c0_46 = arith.constant 0 : index
    %80 = vector.load %arg11[%c0_44, %c1_45, %c24, %c0_46] : memref<1x18x32x32xf32, #tpu.memory_space<vmem>>, vector<1x16x1x32xf32>
    tpu.vector_store %arg11[%c0_44, %c1_45, %c24, %c0_46], %76 {strides = array<i32>} : memref<1x18x32x32xf32, #tpu.memory_space<vmem>>, vector<1x16x1x32xf32>,
    %81 = vector.shape_cast %74 : vector<256x32xf32> to vector<1x16x16x32xf32>
    %c0_47 = arith.constant 0 : index
    %c1_48 = arith.constant 1 : index
    %c8 = arith.constant 8 : index
    %c0_49 = arith.constant 0 : index
    %82 = vector.load %arg11[%c0_47, %c1_48, %c8, %c0_49] : memref<1x18x32x32xf32, #tpu.memory_space<vmem>>, vector<1x16x16x32xf32>
    tpu.vector_store %arg11[%c0_47, %c1_48, %c8, %c0_49], %81 {strides = array<i32>} : memref<1x18x32x32xf32, #tpu.memory_space<vmem>>, vector<1x16x16x32xf32>,
    %c0_50 = arith.constant 0 : index
    %c0_51 = arith.constant 0 : index
    %c7_52 = arith.constant 7 : index
    %c0_53 = arith.constant 0 : index
    %83 = vector.load %arg11[%c0_50, %c0_51, %c7_52, %c0_53] : memref<1x18x32x32xf32, #tpu.memory_space<vmem>>, vector<1x16x16x32xf32>
    %84 = arith.truncf %83 : vector<1x16x16x32xf32> to vector<1x16x16x32xbf16>
    %c0_54 = arith.constant 0 : index
    %c0_55 = arith.constant 0 : index
    %c0_56 = arith.constant 0 : index
    %c0_57 = arith.constant 0 : index
    %85 = vector.load %arg12[%c0_54, %c0_55, %c0_56, %c0_57] : memref<1x16x16x288xbf16, #tpu.memory_space<vmem>>, vector<1x16x16x32xbf16>
    tpu.vector_store %arg12[%c0_54, %c0_55, %c0_56, %c0_57], %84 {strides = array<i32>} : memref<1x16x16x288xbf16, #tpu.memory_space<vmem>>, vector<1x16x16x32xbf16>,
    %c0_58 = arith.constant 0 : index
    %c0_59 = arith.constant 0 : index
    %c8_60 = arith.constant 8 : index
    %c0_61 = arith.constant 0 : index
    %86 = vector.load %arg11[%c0_58, %c0_59, %c8_60, %c0_61] : memref<1x18x32x32xf32, #tpu.memory_space<vmem>>, vector<1x16x16x32xf32>
    %87 = arith.truncf %86 : vector<1x16x16x32xf32> to vector<1x16x16x32xbf16>
    %c0_62 = arith.constant 0 : index
    %c0_63 = arith.constant 0 : index
    %c0_64 = arith.constant 0 : index
    %c32 = arith.constant 32 : index
    %88 = vector.load %arg12[%c0_62, %c0_63, %c0_64, %c32] : memref<1x16x16x288xbf16, #tpu.memory_space<vmem>>, vector<1x16x16x32xbf16>
    tpu.vector_store %arg12[%c0_62, %c0_63, %c0_64, %c32], %87 {strides = array<i32>} : memref<1x16x16x288xbf16, #tpu.memory_space<vmem>>, vector<1x16x16x32xbf16>,
    %c0_65 = arith.constant 0 : index
    %c0_66 = arith.constant 0 : index
    %c9 = arith.constant 9 : index
    %c0_67 = arith.constant 0 : index
    %89 = vector.load %arg11[%c0_65, %c0_66, %c9, %c0_67] : memref<1x18x32x32xf32, #tpu.memory_space<vmem>>, vector<1x16x16x32xf32>
    %90 = arith.truncf %89 : vector<1x16x16x32xf32> to vector<1x16x16x32xbf16>
    %c0_68 = arith.constant 0 : index
    %c0_69 = arith.constant 0 : index
    %c0_70 = arith.constant 0 : index
    %c64 = arith.constant 64 : index
    %91 = vector.load %arg12[%c0_68, %c0_69, %c0_70, %c64] : memref<1x16x16x288xbf16, #tpu.memory_space<vmem>>, vector<1x16x16x32xbf16>
    tpu.vector_store %arg12[%c0_68, %c0_69, %c0_70, %c64], %90 {strides = array<i32>} : memref<1x16x16x288xbf16, #tpu.memory_space<vmem>>, vector<1x16x16x32xbf16>,
    %c0_71 = arith.constant 0 : index
    %c1_72 = arith.constant 1 : index
    %c7_73 = arith.constant 7 : index
    %c0_74 = arith.constant 0 : index
    %92 = vector.load %arg11[%c0_71, %c1_72, %c7_73, %c0_74] : memref<1x18x32x32xf32, #tpu.memory_space<vmem>>, vector<1x16x16x32xf32>
    %93 = arith.truncf %92 : vector<1x16x16x32xf32> to vector<1x16x16x32xbf16>
    %c0_75 = arith.constant 0 : index
    %c0_76 = arith.constant 0 : index
    %c0_77 = arith.constant 0 : index
    %c96 = arith.constant 96 : index
    %94 = vector.load %arg12[%c0_75, %c0_76, %c0_77, %c96] : memref<1x16x16x288xbf16, #tpu.memory_space<vmem>>, vector<1x16x16x32xbf16>
    tpu.vector_store %arg12[%c0_75, %c0_76, %c0_77, %c96], %93 {strides = array<i32>} : memref<1x16x16x288xbf16, #tpu.memory_space<vmem>>, vector<1x16x16x32xbf16>,
    %c0_78 = arith.constant 0 : index
    %c1_79 = arith.constant 1 : index
    %c8_80 = arith.constant 8 : index
    %c0_81 = arith.constant 0 : index
    %95 = vector.load %arg11[%c0_78, %c1_79, %c8_80, %c0_81] : memref<1x18x32x32xf32, #tpu.memory_space<vmem>>, vector<1x16x16x32xf32>
    %96 = arith.truncf %95 : vector<1x16x16x32xf32> to vector<1x16x16x32xbf16>
    %c0_82 = arith.constant 0 : index
    %c0_83 = arith.constant 0 : index
    %c0_84 = arith.constant 0 : index
    %c128 = arith.constant 128 : index
    %97 = vector.load %arg12[%c0_82, %c0_83, %c0_84, %c128] : memref<1x16x16x288xbf16, #tpu.memory_space<vmem>>, vector<1x16x16x32xbf16>
    tpu.vector_store %arg12[%c0_82, %c0_83, %c0_84, %c128], %96 {strides = array<i32>} : memref<1x16x16x288xbf16, #tpu.memory_space<vmem>>, vector<1x16x16x32xbf16>,
    %c0_85 = arith.constant 0 : index
    %c1_86 = arith.constant 1 : index
    %c9_87 = arith.constant 9 : index
    %c0_88 = arith.constant 0 : index
    %98 = vector.load %arg11[%c0_85, %c1_86, %c9_87, %c0_88] : memref<1x18x32x32xf32, #tpu.memory_space<vmem>>, vector<1x16x16x32xf32>
    %99 = arith.truncf %98 : vector<1x16x16x32xf32> to vector<1x16x16x32xbf16>
    %c0_89 = arith.constant 0 : index
    %c0_90 = arith.constant 0 : index
    %c0_91 = arith.constant 0 : index
    %c160 = arith.constant 160 : index
    %100 = vector.load %arg12[%c0_89, %c0_90, %c0_91, %c160] : memref<1x16x16x288xbf16, #tpu.memory_space<vmem>>, vector<1x16x16x32xbf16>
    tpu.vector_store %arg12[%c0_89, %c0_90, %c0_91, %c160], %99 {strides = array<i32>} : memref<1x16x16x288xbf16, #tpu.memory_space<vmem>>, vector<1x16x16x32xbf16>,
    %c0_92 = arith.constant 0 : index
    %c2_93 = arith.constant 2 : index
    %c7_94 = arith.constant 7 : index
    %c0_95 = arith.constant 0 : index
    %101 = vector.load %arg11[%c0_92, %c2_93, %c7_94, %c0_95] : memref<1x18x32x32xf32, #tpu.memory_space<vmem>>, vector<1x16x16x32xf32>
    %102 = arith.truncf %101 : vector<1x16x16x32xf32> to vector<1x16x16x32xbf16>
    %c0_96 = arith.constant 0 : index
    %c0_97 = arith.constant 0 : index
    %c0_98 = arith.constant 0 : index
    %c192 = arith.constant 192 : index
    %103 = vector.load %arg12[%c0_96, %c0_97, %c0_98, %c192] : memref<1x16x16x288xbf16, #tpu.memory_space<vmem>>, vector<1x16x16x32xbf16>
    tpu.vector_store %arg12[%c0_96, %c0_97, %c0_98, %c192], %102 {strides = array<i32>} : memref<1x16x16x288xbf16, #tpu.memory_space<vmem>>, vector<1x16x16x32xbf16>,
    %c0_99 = arith.constant 0 : index
    %c2_100 = arith.constant 2 : index
    %c8_101 = arith.constant 8 : index
    %c0_102 = arith.constant 0 : index
    %104 = vector.load %arg11[%c0_99, %c2_100, %c8_101, %c0_102] : memref<1x18x32x32xf32, #tpu.memory_space<vmem>>, vector<1x16x16x32xf32>
    %105 = arith.truncf %104 : vector<1x16x16x32xf32> to vector<1x16x16x32xbf16>
    %c0_103 = arith.constant 0 : index
    %c0_104 = arith.constant 0 : index
    %c0_105 = arith.constant 0 : index
    %c224 = arith.constant 224 : index
    %106 = vector.load %arg12[%c0_103, %c0_104, %c0_105, %c224] : memref<1x16x16x288xbf16, #tpu.memory_space<vmem>>, vector<1x16x16x32xbf16>
    tpu.vector_store %arg12[%c0_103, %c0_104, %c0_105, %c224], %105 {strides = array<i32>} : memref<1x16x16x288xbf16, #tpu.memory_space<vmem>>, vector<1x16x16x32xbf16>,
    %c0_106 = arith.constant 0 : index
    %c2_107 = arith.constant 2 : index
    %c9_108 = arith.constant 9 : index
    %c0_109 = arith.constant 0 : index
    %107 = vector.load %arg11[%c0_106, %c2_107, %c9_108, %c0_109] : memref<1x18x32x32xf32, #tpu.memory_space<vmem>>, vector<1x16x16x32xf32>
    %108 = arith.truncf %107 : vector<1x16x16x32xf32> to vector<1x16x16x32xbf16>
    %c0_110 = arith.constant 0 : index
    %c0_111 = arith.constant 0 : index
    %c0_112 = arith.constant 0 : index
    %c256 = arith.constant 256 : index
    %109 = vector.load %arg12[%c0_110, %c0_111, %c0_112, %c256] : memref<1x16x16x288xbf16, #tpu.memory_space<vmem>>, vector<1x16x16x32xbf16>
    tpu.vector_store %arg12[%c0_110, %c0_111, %c0_112, %c256], %108 {strides = array<i32>} : memref<1x16x16x288xbf16, #tpu.memory_space<vmem>>, vector<1x16x16x32xbf16>,
    %c0_113 = arith.constant 0 : index
    %c0_114 = arith.constant 0 : index
    %c0_115 = arith.constant 0 : index
    %c0_116 = arith.constant 0 : index
    %110 = vector.load %arg12[%c0_113, %c0_114, %c0_115, %c0_116] : memref<1x16x16x288xbf16, #tpu.memory_space<vmem>>, vector<1x16x16x288xbf16>
    %111 = vector.shape_cast %110 : vector<1x16x16x288xbf16> to vector<256x288xbf16>
    %c0_117 = arith.constant 0 : index
    %c0_118 = arith.constant 0 : index
    %112 = vector.load %arg6[%c0_117, %c0_118] : memref<288x32xbf16, #tpu.memory_space<vmem>>, vector<288x32xbf16>
    %cst_119 = arith.constant dense<0.000000e+00> : vector<256x32xf32>
    %113 = tpu.matmul %111, %112, %cst_119 {dimension_numbers = #tpu.dot_dimension_numbers<[1], [0], [0], [1], [0, 0, 1, 1], [], []>} : vector<256x288xbf16>, vector<288x32xbf16>, vector<256x32xf32> -> vector<256x32xf32>
    %114 = vector.broadcast %10 : vector<1x32xf32> to vector<256x32xf32>
    %115 = arith.addf %113, %114 : vector<256x32xf32>
    %cst_120 = arith.constant 0.000000e+00 : f32
    %116 = vector.broadcast %cst_120 : f32 to vector<256x32xf32>
    %117 = arith.maximumf %115, %116 : vector<256x32xf32>
    %118 = arith.truncf %117 : vector<256x32xf32> to vector<256x32xbf16>
    %c0_121 = arith.constant 0 : index
    %c0_122 = arith.constant 0 : index
    %119 = vector.load %arg7[%c0_121, %c0_122] : memref<32x128xbf16, #tpu.memory_space<vmem>>, vector<32x128xbf16>
    %cst_123 = arith.constant dense<0.000000e+00> : vector<256x128xf32>
    %120 = tpu.matmul %118, %119, %cst_123 {dimension_numbers = #tpu.dot_dimension_numbers<[1], [0], [0], [1], [0, 0, 1, 1], [], []>} : vector<256x32xbf16>, vector<32x128xbf16>, vector<256x128xf32> -> vector<256x128xf32>
    %121 = vector.broadcast %5 : vector<1x128xf32> to vector<256x128xf32>
    %122 = arith.addf %120, %121 : vector<256x128xf32>
    %123 = vector.shape_cast %122 : vector<256x128xf32> to vector<1x256x128xf32>
    %cst_124 = arith.constant dense<0.000000e+00> : vector<1x128xf32>
    %124 = vector.multi_reduction <add>, %123, %cst_124 [1] : vector<1x256x128xf32> to vector<1x128xf32>
    %cst_125 = arith.constant 2.560000e+02 : f32
    %125 = vector.broadcast %cst_125 : f32 to vector<1x128xf32>
    %126 = arith.divf %124, %125 : vector<1x128xf32>
    %127 = vector.shape_cast %126 : vector<1x128xf32> to vector<1x128x1xf32>
    %c0_126 = arith.constant 0 : index
    %c0_127 = arith.constant 0 : index
    %128 = vector.load %arg8[%c0_126, %c0_127] : memref<128x8xf32, #tpu.memory_space<vmem>>, vector<128x8xf32>
    %129 = vector.shape_cast %128 : vector<128x8xf32> to vector<1x128x8xf32>
    %130 = vector.broadcast %127 : vector<1x128x1xf32> to vector<1x128x8xf32>
    %131 = arith.mulf %130, %129 : vector<1x128x8xf32>
    %cst_128 = arith.constant dense<0.000000e+00> : vector<1x8xf32>
    %132 = vector.multi_reduction <add>, %131, %cst_128 [1] : vector<1x128x8xf32> to vector<1x8xf32>
    %cst_129 = arith.constant 0.000000e+00 : f32
    %133 = vector.broadcast %cst_129 : f32 to vector<1x8xf32>
    %134 = arith.maximumf %132, %133 : vector<1x8xf32>
    %135 = vector.shape_cast %134 : vector<1x8xf32> to vector<1x8x1xf32>
    %c0_130 = arith.constant 0 : index
    %c0_131 = arith.constant 0 : index
    %136 = vector.load %arg9[%c0_130, %c0_131] : memref<8x128xf32, #tpu.memory_space<vmem>>, vector<8x128xf32>
    %137 = vector.shape_cast %136 : vector<8x128xf32> to vector<1x8x128xf32>
    %138 = vector.broadcast %135 : vector<1x8x1xf32> to vector<1x8x128xf32>
    %139 = arith.mulf %138, %137 : vector<1x8x128xf32>
    %cst_132 = arith.constant dense<0.000000e+00> : vector<1x128xf32>
    %140 = vector.multi_reduction <add>, %139, %cst_132 [1] : vector<1x8x128xf32> to vector<1x128xf32>
    %141 = arith.negf %140 : vector<1x128xf32>
    %142 = math.exp %141 : vector<1x128xf32>
    %cst_133 = arith.constant 1.000000e+00 : f32
    %143 = vector.broadcast %cst_133 : f32 to vector<1x128xf32>
    %144 = arith.addf %143, %142 : vector<1x128xf32>
    %145 = arith.divf %143, %144 : vector<1x128xf32>
    %146 = vector.shape_cast %145 : vector<1x128xf32> to vector<1x1x128xf32>
    %147 = vector.broadcast %146 : vector<1x1x128xf32> to vector<1x256x128xf32>
    %148 = arith.mulf %123, %147 : vector<1x256x128xf32>
    %149 = arith.addf %148, %67 : vector<1x256x128xf32>
    %cst_134 = arith.constant 0.000000e+00 : f32
    %150 = vector.broadcast %cst_134 : f32 to vector<1x256x128xf32>
    %151 = arith.maximumf %149, %150 : vector<1x256x128xf32>
    %152 = vector.shape_cast %151 : vector<1x256x128xf32> to vector<1x16x16x128xf32>
    %c0_135 = arith.constant 0 : index
    %c0_136 = arith.constant 0 : index
    %c0_137 = arith.constant 0 : index
    %c0_138 = arith.constant 0 : index
    %153 = vector.load %arg10[%c0_135, %c0_136, %c0_137, %c0_138] : memref<1x16x16x128xf32, #tpu.memory_space<vmem>>, vector<1x16x16x128xf32>
    tpu.vector_store %arg10[%c0_135, %c0_136, %c0_137, %c0_138], %152 {strides = array<i32>} : memref<1x16x16x128xf32, #tpu.memory_space<vmem>>, vector<1x16x16x128xf32>,
    return
  }
  func.func @transform_0(%arg0: i32) -> (i32, i32, i32, i32) {
    %c0_i32 = arith.constant 0 : i32
    %c0_i32_0 = arith.constant 0 : i32
    %c0_i32_1 = arith.constant 0 : i32
    %c0_i32_2 = arith.constant 0 : i32
    return %arg0, %c0_i32, %c0_i32_0, %c0_i32_1 : i32, i32, i32, i32
  }
  func.func @transform_1(%arg0: i32) -> (i32, i32) {
    %c0_i32 = arith.constant 0 : i32
    %c0_i32_0 = arith.constant 0 : i32
    %c0_i32_1 = arith.constant 0 : i32
    return %c0_i32, %c0_i32_0 : i32, i32
  }
  func.func @transform_2(%arg0: i32) -> (i32, i32) {
    %c0_i32 = arith.constant 0 : i32
    %c0_i32_0 = arith.constant 0 : i32
    %c0_i32_1 = arith.constant 0 : i32
    return %c0_i32, %c0_i32_0 : i32, i32
  }
  func.func @transform_3(%arg0: i32) -> (i32, i32) {
    %c0_i32 = arith.constant 0 : i32
    %c0_i32_0 = arith.constant 0 : i32
    %c0_i32_1 = arith.constant 0 : i32
    return %c0_i32, %c0_i32_0 : i32, i32
  }
  func.func @transform_4(%arg0: i32) -> (i32, i32) {
    %c0_i32 = arith.constant 0 : i32
    %c0_i32_0 = arith.constant 0 : i32
    %c0_i32_1 = arith.constant 0 : i32
    return %c0_i32, %c0_i32_0 : i32, i32
  }
  func.func @transform_5(%arg0: i32) -> (i32, i32) {
    %c0_i32 = arith.constant 0 : i32
    %c0_i32_0 = arith.constant 0 : i32
    %c0_i32_1 = arith.constant 0 : i32
    return %c0_i32, %c0_i32_0 : i32, i32
  }
  func.func @transform_6(%arg0: i32) -> (i32, i32) {
    %c0_i32 = arith.constant 0 : i32
    %c0_i32_0 = arith.constant 0 : i32
    %c0_i32_1 = arith.constant 0 : i32
    return %c0_i32, %c0_i32_0 : i32, i32
  }
  func.func @transform_7(%arg0: i32) -> (i32, i32) {
    %c0_i32 = arith.constant 0 : i32
    %c0_i32_0 = arith.constant 0 : i32
    %c0_i32_1 = arith.constant 0 : i32
    return %c0_i32, %c0_i32_0 : i32, i32
  }
  func.func @transform_8(%arg0: i32) -> (i32, i32) {
    %c0_i32 = arith.constant 0 : i32
    %c0_i32_0 = arith.constant 0 : i32
    %c0_i32_1 = arith.constant 0 : i32
    return %c0_i32, %c0_i32_0 : i32, i32
  }
  func.func @transform_9(%arg0: i32) -> (i32, i32, i32, i32) {
    %c0_i32 = arith.constant 0 : i32
    %c0_i32_0 = arith.constant 0 : i32
    %c0_i32_1 = arith.constant 0 : i32
    %c0_i32_2 = arith.constant 0 : i32
    return %arg0, %c0_i32, %c0_i32_0, %c0_i32_1 : i32, i32, i32, i32
  }
}

</mosaic_0001>

<bundles_post_ra>
// kernel: bottleneck_forward.1
= control target key start
LH: loop header
LB: loop body
LE: loop exit
PB: predicated region body
PF: predicated region fallthrough
CT: control target
= control target key end

     0   :  { %14 = vsyncpa [#allocation5], 0  ;;  %s6128_s0 = inlined_call_operand.vmem [shape: f32[2,16,16,128], index: 0, kind: input, shape index: {}]   ;;  %s6129_s1 = inlined_call_operand.vmem [shape: f32[8,128], index: 1, kind: input, shape index: {}]   ;;  %s6130_s2 = inlined_call_operand.vmem [shape: f32[128,32], index: 2, kind: input, shape index: {}]   ;;  %s6131_s3 = inlined_call_operand.vmem [shape: f32[32,128], index: 3, kind: input, shape index: {}]   ;;  %s6132_s4 = inlined_call_operand.vmem [shape: bf16[128,32], index: 4, kind: input, shape index: {}]   ;;  %s6133_s5 = inlined_call_operand.vmem [shape: bf16[288,32], index: 5, kind: input, shape index: {}]   ;;  %s6134_s6 = inlined_call_operand.vmem [shape: bf16[32,128], index: 6, kind: input, shape index: {}]   ;;  %s6135_s7 = inlined_call_operand.vmem [shape: f32[128,8], index: 7, kind: input, shape index: {}]   ;;  %s6136_s8 = inlined_call_operand.vmem [shape: f32[8,128], index: 8, kind: input, shape index: {}]   ;;  %s6137_s9 = inlined_call_operand.hbm [shape: f32[2,16,16,128], index: 9, kind: output, shape index: {}]  }
   0x1   :  { %16 = vsyncpa [#allocation5 + $0x1], 0  ;;  %s4217_s30 = smov 0   ;;  %s4219_s10 = smov 0  }
   0x2   :  { %s4221_s11 = smov 0   ;;  %s4223_s12 = smov 0  }
   0x3 LB: > { %s4238_s13 = sadd.s32 4294967295, %s4158_s12   ;;  %s3489_s14 = sadd.s32 4294967294, %s4158_s12   ;;  %s4158_s12 = sphi %s4223_s12, %s6248_s12   ;;  %s4154_s11 = sphi %s4221_s11, %s6247_s11   ;;  %s4150_s10 = sphi %s4219_s10, %s6246_s10   ;;  %s4146_s30 = sphi %s4217_s30, %s6245_s30  }
   0x4   : > { %s4242_s15 = sadd.s32 1, %s4158_s12   ;;  %s223_s16 = sadd.s32 1, %s4154_s11 }
   0x5   : > { %s220_s17 = ssub.s32 %s4158_s12, %s4242_s15  ;;  %p233_p0 = scmp.ne.s32.totalorder %s4154_s11, %s4150_s10 }
   0x6   : > { %p221_p1 = scmp.eq.s32.totalorder %s220_s17, 0  ;;  %p234_p2 = scmp.eq.s32.totalorder %s4238_s13, 1 }
   0x7   : > { %p239_p3 = scmp.ne.s32.totalorder %s4150_s10, %s4146_s30  ;;  %p240_p4 = scmp.eq.s32.totalorder %s3489_s14, 1 }
   0x8   : > { %s4253_s18 = scalar_select %p221_p1, %s4154_s11, %s223_s16  }
   0x9   : > { %p4255_p5 = por %p234_p2, %p233_p0  ;;  %p4259_p6 = por %p240_p4, %p239_p3 }
   0xa   : > { %p3492_p7 = scmp.ge.s32.totalorder %s4158_s12, 1  ;;  %p290_p8 = scmp.lt.s32.totalorder %s4158_s12, 3 }
   0xc   : > { %p291_p9 = pnand %p3492_p7, %p290_p8 }
   0xe   : > { %294 = sbr.rel (%p291_p9) target bundleno = 1510 (0x5e6), region = 56 }
  0x15   : > { %v3921_v0 = vld [vmem:[%s6132_s4] sm:$0xff]   ;;  %p326_p10 = scmp.lt.s32.totalorder %s4238_s13, 1  ;;  %v3922_v1 = vld [vmem:[%s6132_s4 + $0x8] sm:$0xff]   ;;  %v3923_v2 = vld [vmem:[%s6132_s4 + $0x10] sm:$0xff]   ;;  %vm808_vm0 = vcmask 261120   ;;  %vm1217_vm1 = vcmask 254976  }
  0x16   : > { %3740 = vmatprep.subr.bf16.mxu0 %v3921_v0  ;;  %3860 = vmatprep.subr.bf16.mxu1 %v3921_v0  ;;  %v3924_v3 = vld [vmem:[%s6132_s4 + $0x18] sm:$0xff]   ;;  %v3925_v10 = vld [vmem:[%s6132_s4 + $0x20] sm:$0xff]   ;;  %v3926_v11 = vld [vmem:[%s6132_s4 + $0x28] sm:$0xff]   ;;  %v4160_v56 = vmov 0.0   ;;  %vm847_vm2 = vcmask 253952   ;;  %s4161_s14 = smov 64  }
  0x17   : > { %s327_s25 = scalar_select %p326_p10, %s4238_s13, 1  ;;  %3741 = vmatpush3.bf16.msra.mxu0 %v3921_v0  ;;  %3868 = vmatpush3.bf16.msra.mxu1 %v3921_v0  ;;  %v3927_v12 = vld [vmem:[%s6132_s4 + $0x30] sm:$0xff]   ;;  %v3928_v13 = vld [vmem:[%s6132_s4 + $0x38] sm:$0xff]   ;;  %1215 = vst.msk [vmem:[#allocation2 + $0x7] sm:$0xff] %vm808_vm0, %v4160_v56  ;;  %1216 = vst.msk [vmem:[#allocation2 + $0xf] sm:$0xff] %vm808_vm0, %v4160_v56  ;;  %vm1464_vm3 = vcmask 523520  }
  0x18   : > { %3742 = vmatprep.subr.bf16.mxu0 %v3922_v1  ;;  %3861 = vmatprep.subr.bf16.mxu1 %v3922_v1  ;;  %1220 = vst.msk [vmem:[#allocation2 + $0x227] sm:$0xff] %vm808_vm0, %v4160_v56  ;;  %1221 = vst.msk [vmem:[#allocation2 + $0x22f] sm:$0xff] %vm808_vm0, %v4160_v56  ;;  %s4162_s17 = smov 32   ;;  %v3929_v63 = vld [vmem:[%s6133_s5 + $0x80] sm:$0xff]   ;;  %v3930_v0 = vld [vmem:[%s6133_s5 + $0x88] sm:$0xff]   ;;  %vm1593_vm4 = vcmask 785920  }
  0x19   : > { %s3566_s28 = sshll.u32 %s327_s25, 8  ;;  %1218 = vst.msk [vmem:[#allocation2 + $0x17] sm:$0x3] %vm1217_vm1, %v4160_v56  ;;  %1222 = vst.msk [vmem:[#allocation2 + $0x237] sm:$0x3] %vm1217_vm1, %v4160_v56  ;;  %vm1722_vm5 = vcmask 1048320  }
  0x1a   : > { %s4279_s16 = scalar_lea.vmem %s6128_s0, %s3566_s28  ;;  %1241 = vst.msk [vmem:[#allocation2 + $0x58] sm:$0x1] %vm847_vm2, %v4160_v56  ;;  %1224 = vst.msk [vmem:[#allocation2 + $0x27] sm:$0x1] %vm847_vm2, %v4160_v56  ;;  %s4163_s28 = smov 96   ;;  %vm3229_vm6 = vcmask 64512  }
  0x1b   : > { %3743 = vmatpush3.bf16.msra.mxu0 %v3922_v1  ;;  %3869 = vmatpush3.bf16.msra.mxu1 %v3922_v1  ;;  %v332_v4 = vld [vmem:[%s4279_s16] sm:$0xff]  ;;  %v333_v5 = vld [vmem:[%s4279_s16 + $0x8] sm:$0xff]  ;;  %v334_v14 = vld [vmem:[%s4279_s16 + $0x10] sm:$0xff]  ;;  %1225 = vst.msk [vmem:[#allocation2 + $0x47] sm:$0x1] %vm847_vm2, %v4160_v56  ;;  %s3567_s23 = sshll.u32 %s4238_s13, 12 }
  0x1c   : > { %3744 = vmatprep.subr.bf16.mxu0 %v3923_v2  ;;  %3862 = vmatprep.subr.bf16.mxu1 %v3923_v2  ;;  %v938_v6 = vpack.c.bf16 %v333_v5, %v332_v4  ;;  %v348_v7 = vld [vmem:[%s4279_s16 + $0x80] sm:$0xff]  ;;  %v349_v8 = vld [vmem:[%s4279_s16 + $0x88] sm:$0xff]  ;;  %v335_v15 = vld [vmem:[%s4279_s16 + $0x18] sm:$0xff]  ;;  %1226 = vst.msk [vmem:[#allocation2 + $0x67] sm:$0x1] %vm847_vm2, %v4160_v56  ;;  %s4164_s26 = smov [#allocation4]  }
  0x1d   : > { %v946_v9 = vpack.c.bf16 %v349_v8, %v348_v7  ;;  %v350_v16 = vld [vmem:[%s4279_s16 + $0x90] sm:$0xff]  ;;  %v351_v17 = vld [vmem:[%s4279_s16 + $0x98] sm:$0xff]  ;;  %v336_v18 = vld [vmem:[%s4279_s16 + $0x20] sm:$0xff]  ;;  %v939_v22 = vpack.c.bf16 %v335_v15, %v334_v14  ;;  %1227 = vst.msk [vmem:[#allocation2 + $0x87] sm:$0x1] %vm847_vm2, %v4160_v56  ;;  %s4100_s27 = sshll.u32 %s4164_s26, 4  ;;  %s4101_s27 = int_to_ptr.vmem [resolvable:$false] %s4100_s27 }
  0x1e   : > { %3756 = vmatprep.mubr.bf16.mxu0 %v938_v6  ;;  %v337_v19 = vld [vmem:[%s4279_s16 + $0x28] sm:$0xff]  ;;  %v352_v20 = vld [vmem:[%s4279_s16 + $0xa0] sm:$0xff]  ;;  %v947_v23 = vpack.c.bf16 %v351_v17, %v350_v16  ;;  %v338_v26 = vld [vmem:[%s4279_s16 + $0x30] sm:$0xff]  ;;  %1228 = vst.msk [vmem:[#allocation2 + $0xa7] sm:$0x1] %vm847_vm2, %v4160_v56  ;;  %s4102_s29 = scalar_lea.vmem %s4101_s27, 8192 }
  0x1f   : > { %3745 = vmatpush3.bf16.msra.mxu0 %v3923_v2  ;;  %3870 = vmatpush3.bf16.msra.mxu1 %v3923_v2  ;;  %v353_v21 = vld [vmem:[%s4279_s16 + $0xa8] sm:$0xff]  ;;  %v940_v24 = vpack.c.bf16 %v337_v19, %v336_v18  ;;  %v339_v27 = vld [vmem:[%s4279_s16 + $0x38] sm:$0xff]  ;;  %v340_v28 = vld [vmem:[%s4279_s16 + $0x40] sm:$0xff]  ;;  %1229 = vst.msk [vmem:[#allocation2 + $0xc7] sm:$0x1] %vm847_vm2, %v4160_v56 }
  0x20   : > { %3746 = vmatprep.subr.bf16.mxu0 %v3924_v3  ;;  %3863 = vmatprep.subr.bf16.mxu1 %v3924_v3  ;;  %v948_v25 = vpack.c.bf16 %v353_v21, %v352_v20  ;;  %v354_v29 = vld [vmem:[%s4279_s16 + $0xb0] sm:$0xff]  ;;  %v355_v30 = vld [vmem:[%s4279_s16 + $0xb8] sm:$0xff]  ;;  %v341_v31 = vld [vmem:[%s4279_s16 + $0x48] sm:$0xff]  ;;  %v941_v34 = vpack.c.bf16 %v339_v27, %v338_v26  ;;  %1230 = vst.msk [vmem:[#allocation2 + $0xe7] sm:$0x1] %vm847_vm2, %v4160_v56 }
  0x21   : > { %3772 = vmatprep.mubr.bf16.mxu1 %v946_v9  ;;  %v356_v32 = vld [vmem:[%s4279_s16 + $0xc0] sm:$0xff]  ;;  %v357_v33 = vld [vmem:[%s4279_s16 + $0xc8] sm:$0xff]  ;;  %v949_v35 = vpack.c.bf16 %v355_v30, %v354_v29  ;;  %v942_v36 = vpack.c.bf16 %v341_v31, %v340_v28  ;;  %v342_v38 = vld [vmem:[%s4279_s16 + $0x50] sm:$0xff]  ;;  %1231 = vst.msk [vmem:[#allocation2 + $0x107] sm:$0x1] %vm847_vm2, %v4160_v56 }
  0x22   : > { %v950_v37 = vpack.c.bf16 %v357_v33, %v356_v32  ;;  %v343_v39 = vld [vmem:[%s4279_s16 + $0x58] sm:$0xff]  ;;  %v344_v40 = vld [vmem:[%s4279_s16 + $0x60] sm:$0xff]  ;;  %v358_v41 = vld [vmem:[%s4279_s16 + $0xd0] sm:$0xff]  ;;  %1232 = vst.msk [vmem:[#allocation2 + $0x127] sm:$0x1] %vm847_vm2, %v4160_v56 }
  0x23   : > { %3747 = vmatpush3.bf16.msra.mxu0 %v3924_v3  ;;  %3871 = vmatpush3.bf16.msra.mxu1 %v3924_v3  ;;  %v359_v42 = vld [vmem:[%s4279_s16 + $0xd8] sm:$0xff]  ;;  %v345_v43 = vld [vmem:[%s4279_s16 + $0x68] sm:$0xff]  ;;  %v360_v44 = vld [vmem:[%s4279_s16 + $0xe0] sm:$0xff]  ;;  %v943_v46 = vpack.c.bf16 %v343_v39, %v342_v38  ;;  %1233 = vst.msk [vmem:[#allocation2 + $0x147] sm:$0x1] %vm847_vm2, %v4160_v56 }
  0x24   : > { %3748 = vmatprep.subr.bf16.mxu0 %v3925_v10  ;;  %3864 = vmatprep.subr.bf16.mxu1 %v3925_v10  ;;  %v361_v45 = vld [vmem:[%s4279_s16 + $0xe8] sm:$0xff]  ;;  %v951_v47 = vpack.c.bf16 %v359_v42, %v358_v41  ;;  %v944_v48 = vpack.c.bf16 %v345_v43, %v344_v40  ;;  %v346_v50 = vld [vmem:[%s4279_s16 + $0x70] sm:$0xff]  ;;  %v347_v51 = vld [vmem:[%s4279_s16 + $0x78] sm:$0xff]  ;;  %1234 = vst.msk [vmem:[#allocation2 + $0x167] sm:$0x1] %vm847_vm2, %v4160_v56 }
  0x25   : > { %v952_v49 = vpack.c.bf16 %v361_v45, %v360_v44  ;;  %v362_v52 = vld [vmem:[%s4279_s16 + $0xf0] sm:$0xff]  ;;  %v363_v53 = vld [vmem:[%s4279_s16 + $0xf8] sm:$0xff]  ;;  %v945_v54 = vpack.c.bf16 %v347_v51, %v346_v50  ;;  %1235 = vst.msk [vmem:[#allocation2 + $0x187] sm:$0x1] %vm847_vm2, %v4160_v56  ;;  %1236 = vst.msk [vmem:[#allocation2 + $0x1a7] sm:$0x1] %vm847_vm2, %v4160_v56 }
  0x26   : > { %v953_v55 = vpack.c.bf16 %v363_v53, %v362_v52  ;;  %1237 = vst.msk [vmem:[#allocation2 + $0x1c7] sm:$0x1] %vm847_vm2, %v4160_v56  ;;  %1238 = vst.msk [vmem:[#allocation2 + $0x1e7] sm:$0x1] %vm847_vm2, %v4160_v56  ;;  %v1481_v57 = vld [vmem:[#allocation2 + $0x9] sm:$0xff]  ;;  %v1482_v58 = vld [vmem:[#allocation2 + $0x11] sm:$0xff] }
  0x27   : > { %3749 = vmatpush3.bf16.msra.mxu0 %v3925_v10  ;;  %3872 = vmatpush3.bf16.msra.mxu1 %v3925_v10  ;;  %1239 = vst.msk [vmem:[#allocation2 + $0x207] sm:$0x1] %vm847_vm2, %v4160_v56  ;;  %1240 = vst.msk [vmem:[#allocation2 + $0x38] sm:$0x1] %vm847_vm2, %v4160_v56  ;;  %v1352_v59 = vld [vmem:[#allocation2 + $0x8] sm:$0xff]  ;;  %v1513_v60 = vpack.c.bf16 %v1482_v58, %v1481_v57  ;;  %v1353_v61 = vld [vmem:[#allocation2 + $0x10] sm:$0xff] }
  0x28   : > { %3750 = vmatprep.subr.bf16.mxu0 %v3926_v11  ;;  %3865 = vmatprep.subr.bf16.mxu1 %v3926_v11  ;;  %1242 = vst.msk [vmem:[#allocation2 + $0x78] sm:$0x1] %vm847_vm2, %v4160_v56  ;;  %1243 = vst.msk [vmem:[#allocation2 + $0x98] sm:$0x1] %vm847_vm2, %v4160_v56  ;;  %v1384_v62 = vpack.c.bf16 %v1353_v61, %v1352_v59  ;;  %v4375_v1 = vld [vmem:[%s6129_s1 + $0x6] ss:$0 sm:$0xff] }
  0x29   : > { %1244 = vst.msk [vmem:[#allocation2 + $0xb8] sm:$0x1] %vm847_vm2, %v4160_v56  ;;  %1245 = vst.msk [vmem:[#allocation2 + $0xd8] sm:$0x1] %vm847_vm2, %v4160_v56  ;;  %1545 = vrot.lane.b32.xlu1 %v1513_v60, %s4161_s14  ;;  %v1289_v2 = vld [vmem:[#allocation2 + $0xf] sm:$0xff]  ;;  %v1288_v3 = vld [vmem:[#allocation2 + $0x7] sm:$0xff] }
  0x2a   : > { %1246 = vst.msk [vmem:[#allocation2 + $0xf8] sm:$0x1] %vm847_vm2, %v4160_v56  ;;  %1247 = vst.msk [vmem:[#allocation2 + $0x118] sm:$0x1] %vm847_vm2, %v4160_v56  ;;  %1416 = vrot.lane.b32.xlu0 %v1384_v62, %s4162_s17  ;;  %v1320_v6 = vpack.c.bf16 %v1289_v2, %v1288_v3  ;;  %v3931_v21 = vld [vmem:[%s6133_s5 + $0x40] sm:$0xff]   ;;  %v3933_v33 = vld [vmem:[%s6133_s5 + $0x48] sm:$0xff]  }
  0x2b   : > { %3751 = vmatpush3.bf16.msra.mxu0 %v3926_v11  ;;  %3873 = vmatpush3.bf16.msra.mxu1 %v3926_v11  ;;  %1248 = vst.msk [vmem:[#allocation2 + $0x138] sm:$0x1] %vm847_vm2, %v4160_v56  ;;  %1249 = vst.msk [vmem:[#allocation2 + $0x158] sm:$0x1] %vm847_vm2, %v4160_v56  ;;  %v3932_v30 = vld [vmem:[%s6133_s5] sm:$0xff]   ;;  %v3934_v40 = vld [vmem:[%s6133_s5 + $0x8] sm:$0xff]  }
  0x2c   : > { %3752 = vmatprep.subr.bf16.mxu0 %v3927_v12  ;;  %3866 = vmatprep.subr.bf16.mxu1 %v3927_v12  ;;  %1250 = vst.msk [vmem:[#allocation2 + $0x178] sm:$0x1] %vm847_vm2, %v4160_v56  ;;  %1251 = vst.msk [vmem:[#allocation2 + $0x198] sm:$0x1] %vm847_vm2, %v4160_v56  ;;  %v3935_v51 = vld [vmem:[%s6133_s5 + $0x50] sm:$0xff]  }
  0x2d   : > { %1252 = vst.msk [vmem:[#allocation2 + $0x1b8] sm:$0x1] %vm847_vm2, %v4160_v56  ;;  %1253 = vst.msk [vmem:[#allocation2 + $0x1d8] sm:$0x1] %vm847_vm2, %v4160_v56 }
  0x2e   : > { %1254 = vst.msk [vmem:[#allocation2 + $0x1f8] sm:$0x1] %vm847_vm2, %v4160_v56  ;;  %1255 = vst.msk [vmem:[#allocation2 + $0x218] sm:$0x1] %vm847_vm2, %v4160_v56 }
  0x2f   : > { %3753 = vmatpush3.bf16.msra.mxu0 %v3927_v12  ;;  %3874 = vmatpush3.bf16.msra.mxu1 %v3927_v12  ;;  %1336 = vst.msk [vmem:[#allocation3] sm:$0xff] %vm808_vm0, %v1320_v6 }
  0x30   : > { %3754 = vmatprep.subr.bf16.mxu0 %v3928_v13  ;;  %3867 = vmatprep.subr.bf16.mxu1 %v3928_v13 }
  0x33   : > { %3755 = vmatpush3.bf16.msra.mxu0 %v3928_v13  ;;  %3875 = vmatpush3.bf16.msra.mxu1 %v3928_v13 }
  0x34   : > { %3788 = vmatprep.subr.bf16.mxu0 %v3929_v63  ;;  %3592 = vmatprep.subr.bf16.mxu1 %v3931_v21 }
  0x36   : > { %3757 = vmatmul.mubr.bf16.vlgmr.msra.gmra.mrb[0].mxu0 %v939_v22  ;;  %3773 = vmatmul.mubr.bf16.vlgmr.msra.gmra.mrb[0].mxu1 %v947_v23 }
  0x37   : > { %3760 = vmatprep.mubr.bf16.mxu0 %v940_v24  ;;  %3776 = vmatprep.mubr.bf16.mxu1 %v948_v25 }
  0x38   : > { %3789 = vmatpush3.bf16.msra.mxu0 %v3929_v63  ;;  %3593 = vmatpush3.bf16.msra.mxu1 %v3932_v30 }
  0x39   : > { %3790 = vmatprep.subr.bf16.mxu0 %v3930_v0  ;;  %3594 = vmatprep.subr.bf16.mxu1 %v3933_v33 }
  0x3c   : > { %3791 = vmatpush3.bf16.msra.mxu0 %v3930_v0  ;;  %3595 = vmatpush3.bf16.msra.mxu1 %v3934_v40 }
  0x3d   : > { %3596 = vmatprep.subr.bf16.mxu1 %v3935_v51 }
  0x3e   : > { %3761 = vmatmul.mubr.bf16.gmra.mrb[4].mxu0 %v941_v34  ;;  %3777 = vmatmul.mubr.bf16.gmra.mrb[4].mxu1 %v949_v35 }
  0x3f   : > { %3764 = vmatprep.mubr.bf16.mxu0 %v942_v36  ;;  %3780 = vmatprep.mubr.bf16.mxu1 %v950_v37 }
  0x46   : > { %3765 = vmatmul.mubr.bf16.gmra.mrb[8].mxu0 %v943_v46  ;;  %3781 = vmatmul.mubr.bf16.gmra.mrb[8].mxu1 %v951_v47 }
  0x47   : > { %3768 = vmatprep.mubr.bf16.mxu0 %v944_v48  ;;  %3784 = vmatprep.mubr.bf16.mxu1 %v952_v49 }
  0x4e   : > { %3769 = vmatmul.mubr.bf16.gmra.mrb[12].mxu0 %v945_v54  ;;  %3785 = vmatmul.mubr.bf16.gmra.mrb[12].mxu1 %v953_v55 }
  0x9b   : > { %v1546_v29 = vpop.permute.xlu1 %1545 }
  0x9c   : > { %v1417_v26 = vpop.permute.xlu0 %1416 }
  0x9d   : > { %1465 = vst.msk [vmem:[#allocation3] sm:$0xff] %vm1464_vm3, %v1417_v26 }
  0x9e   : > { %1594 = vst.msk [vmem:[#allocation3] sm:$0xff] %vm1593_vm4, %v1546_v29 }
 0x109   : > { %v3758_v4 = vpop.f32.mrb[0].mxu0  ;;  %v3774_v5 = vpop.f32.mrb[0].mxu1 }
 0x10a   : > { %v1065_v7 = vadd.f32 %v3758_v4, %v4375_v1  ;;  %v1056_v8 = vpop.f32.mrb[1].mxu0  ;;  %v1129_v9 = vadd.f32 %v3774_v5, %v4375_v1  ;;  %v1120_v10 = vpop.f32.mrb[1].mxu1 }
 0x10b   : > { %v1057_v11 = vadd.f32 %v4375_v1, %v1056_v8  ;;  %v3759_v12 = vpop.f32.mrb[2].mxu0  ;;  %v1121_v13 = vadd.f32 %v4375_v1, %v1120_v10  ;;  %v3775_v14 = vpop.f32.mrb[2].mxu1 }
 0x10c   : > { %v1185_v15 = vmax.f32 %v1065_v7, 0.0  ;;  %v1068_v16 = vadd.f32 %v3759_v12, %v4375_v1  ;;  %v1059_v17 = vpop.f32.mrb[3].mxu0  ;;  %v1201_v18 = vmax.f32 %v1129_v9, 0.0  ;;  %v1132_v19 = vadd.f32 %v3775_v14, %v4375_v1  ;;  %v1123_v20 = vpop.f32.mrb[3].mxu1 }
 0x10d   : > { %v1183_v22 = vmax.f32 %v1057_v11, 0.0  ;;  %v1060_v23 = vadd.f32 %v4375_v1, %v1059_v17  ;;  %v1199_v24 = vmax.f32 %v1121_v13, 0.0  ;;  %v1124_v25 = vadd.f32 %v4375_v1, %v1123_v20 }
 0x10e   : > { %1258 = vst.msk [vmem:[#allocation2 + $0x48] sm:$0xff] %vm808_vm0, %v1185_v15  ;;  %v1186_v27 = vmax.f32 %v1068_v16, 0.0  ;;  %1274 = vst.msk [vmem:[#allocation2 + $0x148] sm:$0xff] %vm808_vm0, %v1201_v18  ;;  %v1202_v28 = vmax.f32 %v1132_v19, 0.0 }
 0x10f   : > { %1256 = vst.msk [vmem:[#allocation2 + $0x28] sm:$0xff] %vm808_vm0, %v1183_v22  ;;  %v1184_v31 = vmax.f32 %v1060_v23, 0.0  ;;  %1272 = vst.msk [vmem:[#allocation2 + $0x128] sm:$0xff] %vm808_vm0, %v1199_v24  ;;  %v1200_v32 = vmax.f32 %v1124_v25, 0.0 }
 0x110   : > { %1259 = vst.msk [vmem:[#allocation2 + $0x50] sm:$0xff] %vm808_vm0, %v1186_v27  ;;  %1275 = vst.msk [vmem:[#allocation2 + $0x150] sm:$0xff] %vm808_vm0, %v1202_v28 }
 0x111   : > { %1257 = vst.msk [vmem:[#allocation2 + $0x30] sm:$0xff] %vm808_vm0, %v1184_v31  ;;  %v3762_v34 = vpop.f32.mrb[4].mxu0  ;;  %1273 = vst.msk [vmem:[#allocation2 + $0x130] sm:$0xff] %vm808_vm0, %v1200_v32  ;;  %v3778_v35 = vpop.f32.mrb[4].mxu1 }
 0x112   : > { %v1081_v36 = vadd.f32 %v3762_v34, %v4375_v1  ;;  %v1072_v37 = vpop.f32.mrb[5].mxu0  ;;  %v1145_v38 = vadd.f32 %v3778_v35, %v4375_v1  ;;  %v1136_v39 = vpop.f32.mrb[5].mxu1 }
 0x113   : > { %v1073_v41 = vadd.f32 %v4375_v1, %v1072_v37  ;;  %v3763_v42 = vpop.f32.mrb[6].mxu0  ;;  %v1137_v43 = vadd.f32 %v4375_v1, %v1136_v39  ;;  %v3779_v44 = vpop.f32.mrb[6].mxu1 }
 0x114   : > { %v1189_v45 = vmax.f32 %v1081_v36, 0.0  ;;  %v1084_v46 = vadd.f32 %v3763_v42, %v4375_v1  ;;  %v1075_v47 = vpop.f32.mrb[7].mxu0  ;;  %v1205_v48 = vmax.f32 %v1145_v38, 0.0  ;;  %v1148_v49 = vadd.f32 %v3779_v44, %v4375_v1  ;;  %v1139_v50 = vpop.f32.mrb[7].mxu1 }
 0x115   : > { %v1187_v52 = vmax.f32 %v1073_v41, 0.0  ;;  %v1076_v53 = vadd.f32 %v4375_v1, %v1075_v47  ;;  %v1203_v54 = vmax.f32 %v1137_v43, 0.0  ;;  %v1140_v55 = vadd.f32 %v4375_v1, %v1139_v50  ;;  %v2076_v57 = vld [vmem:[#allocation2 + $0x148] sm:$0xff] }
 0x116   : > { %1262 = vst.msk [vmem:[#allocation2 + $0x88] sm:$0xff] %vm808_vm0, %v1189_v45  ;;  %v1190_v56 = vmax.f32 %v1084_v46, 0.0  ;;  %1278 = vst.msk [vmem:[#allocation2 + $0x188] sm:$0xff] %vm808_vm0, %v1205_v48  ;;  %v1206_v58 = vmax.f32 %v1148_v49, 0.0  ;;  %v2060_v63 = vld [vmem:[#allocation2 + $0x48] sm:$0xff] }
 0x117   : > { %v2188_v59 = vld [vmem:[#allocation2 + $0x49] sm:$0xff]  ;;  %v2189_v60 = vld [vmem:[#allocation2 + $0x51] sm:$0xff]  ;;  %1260 = vst.msk [vmem:[#allocation2 + $0x68] sm:$0xff] %vm808_vm0, %v1187_v52  ;;  %v1188_v62 = vmax.f32 %v1076_v53, 0.0  ;;  %1276 = vst.msk [vmem:[#allocation2 + $0x168] sm:$0xff] %vm808_vm0, %v1203_v54  ;;  %v1204_v0 = vmax.f32 %v1140_v55, 0.0 }
 0x118   : > { %v2204_v61 = vld [vmem:[#allocation2 + $0x149] sm:$0xff]  ;;  %v4423_v2 = vpack.c.bf16 %v2189_v60, %v2188_v59  ;;  %v2205_v3 = vld [vmem:[#allocation2 + $0x151] sm:$0xff]  ;;  %1263 = vst.msk [vmem:[#allocation2 + $0x90] sm:$0xff] %vm808_vm0, %v1190_v56  ;;  %1279 = vst.msk [vmem:[#allocation2 + $0x190] sm:$0xff] %vm808_vm0, %v1206_v58 }
 0x119   : > { %v2202_v4 = vld [vmem:[#allocation2 + $0x129] sm:$0xff]  ;;  %v2203_v5 = vld [vmem:[#allocation2 + $0x131] sm:$0xff]  ;;  %v4427_v6 = vpack.c.bf16 %v2205_v3, %v2204_v61  ;;  %1261 = vst.msk [vmem:[#allocation2 + $0x70] sm:$0xff] %vm808_vm0, %v1188_v62  ;;  %v3766_v8 = vpop.f32.mrb[8].mxu0  ;;  %1277 = vst.msk [vmem:[#allocation2 + $0x170] sm:$0xff] %vm808_vm0, %v1204_v0  ;;  %v3782_v12 = vpop.f32.mrb[8].mxu1 }
 0x11a   : > { %v4429_v7 = vpack.c.bf16 %v2203_v5, %v2202_v4  ;;  %v2061_v9 = vld [vmem:[#allocation2 + $0x50] sm:$0xff]  ;;  %v1932_v10 = vld [vmem:[#allocation2 + $0x47] sm:$0xff]  ;;  %2236 = vst.msk [vmem:[#allocation3 + $0x10] sm:$0xff] %vm808_vm0, %v4423_v2  ;;  %v1097_v13 = vadd.f32 %v3766_v8, %v4375_v1  ;;  %v1088_v16 = vpop.f32.mrb[9].mxu0  ;;  %v1152_v20 = vpop.f32.mrb[9].mxu1  ;;  %v1161_v28 = vadd.f32 %v3782_v12, %v4375_v1 }
 0x11b   : > { %v1933_v11 = vld [vmem:[#allocation2 + $0x4f] sm:$0xff]  ;;  %v4436_v14 = vpack.c.bf16 %v2061_v9, %v2060_v63  ;;  %v1610_v18 = vld [vmem:[#allocation2 + $0x27] sm:$0xff]  ;;  %2244 = vst.msk [vmem:[#allocation3 + $0xd0] sm:$0xff] %vm808_vm0, %v4427_v6  ;;  %v1089_v21 = vadd.f32 %v4375_v1, %v1088_v16  ;;  %v3767_v22 = vpop.f32.mrb[10].mxu0  ;;  %v3783_v29 = vpop.f32.mrb[10].mxu1  ;;  %v1153_v48 = vadd.f32 %v4375_v1, %v1152_v20 }
 0x11c   : > { %v1964_v15 = vpack.c.bf16 %v1933_v11, %v1932_v10  ;;  %v2077_v17 = vld [vmem:[#allocation2 + $0x150] sm:$0xff]  ;;  %2243 = vst.msk [vmem:[#allocation3 + $0xb8] sm:$0xff] %vm808_vm0, %v4429_v7  ;;  %v1354_v25 = vld [vmem:[#allocation2 + $0x28] sm:$0xff]  ;;  %v1193_v30 = vmax.f32 %v1097_v13, 0.0  ;;  %v1100_v31 = vadd.f32 %v3767_v22, %v4375_v1  ;;  %v1091_v32 = vpop.f32.mrb[11].mxu0  ;;  %v1155_v37 = vpop.f32.mrb[11].mxu1  ;;  %v1164_v49 = vadd.f32 %v3783_v29, %v4375_v1 }
 0x11d   : > { %v1611_v19 = vld [vmem:[#allocation2 + $0x2f] sm:$0xff]  ;;  %v4443_v23 = vpack.c.bf16 %v2077_v17, %v2076_v57  ;;  %v1946_v27 = vld [vmem:[#allocation2 + $0x127] sm:$0xff]  ;;  %2124 = vrot.lane.b32.xlu0 %v4436_v14, %s4163_s28  ;;  %1788 = vst.msk [vmem:[#allocation3 + $0x20] sm:$0xff] %vm808_vm0, %v4436_v14  ;;  %v1191_v38 = vmax.f32 %v1089_v21, 0.0  ;;  %v1092_v39 = vadd.f32 %v4375_v1, %v1091_v32  ;;  %v1209_v47 = vmax.f32 %v1161_v28, 0.0 }
 0x11e   : > { %v4445_v24 = vpack.c.bf16 %v1611_v19, %v1610_v18  ;;  %v1355_v26 = vld [vmem:[#allocation2 + $0x30] sm:$0xff]  ;;  %1996 = vrot.lane.b32.xlu1 %v1964_v15, %s4161_s14  ;;  %v2074_v35 = vld [vmem:[#allocation2 + $0x128] sm:$0xff]  ;;  %1338 = vst.msk [vmem:[#allocation3 + $0x30] sm:$0xff] %vm808_vm0, %v1964_v15  ;;  %1266 = vst.msk [vmem:[#allocation2 + $0xc8] sm:$0xff] %vm808_vm0, %v1193_v30  ;;  %v1194_v43 = vmax.f32 %v1100_v31, 0.0  ;;  %v1156_v56 = vadd.f32 %v4375_v1, %v1155_v37  ;;  %v1207_v62 = vmax.f32 %v1153_v48, 0.0 }
 0x11f   : > { %v4452_v33 = vpack.c.bf16 %v1355_v26, %v1354_v25  ;;  %v1947_v34 = vld [vmem:[#allocation2 + $0x12f] sm:$0xff]  ;;  %v1936_v42 = vld [vmem:[#allocation2 + $0x87] sm:$0xff]  ;;  %1796 = vst.msk [vmem:[#allocation3 + $0xe0] sm:$0xff] %vm808_vm0, %v4443_v23  ;;  %1264 = vst.msk [vmem:[#allocation2 + $0xa8] sm:$0xff] %vm808_vm0, %v1191_v38  ;;  %v1192_v52 = vmax.f32 %v1092_v39, 0.0  ;;  %v1210_v63 = vmax.f32 %v1164_v49, 0.0 }
 0x120   : > { %v2075_v36 = vld [vmem:[#allocation2 + $0x130] sm:$0xff]  ;;  %v4458_v40 = vpack.c.bf16 %v1947_v34, %v1946_v27  ;;  %1337 = vst.msk [vmem:[#allocation3 + $0x18] sm:$0xff] %vm808_vm0, %v4445_v24  ;;  %v1948_v44 = vld [vmem:[#allocation2 + $0x147] sm:$0xff]  ;;  %1267 = vst.msk [vmem:[#allocation2 + $0xd0] sm:$0xff] %vm808_vm0, %v1194_v43  ;;  %v1208_v9 = vmax.f32 %v1156_v56, 0.0 }
 0x121   : > { %v4460_v41 = vpack.c.bf16 %v2075_v36, %v2074_v35  ;;  %v1949_v45 = vld [vmem:[#allocation2 + $0x14f] sm:$0xff]  ;;  %1787 = vst.msk [vmem:[#allocation3 + $0x8] sm:$0xff] %vm808_vm0, %v4452_v33  ;;  %v1934_v54 = vld [vmem:[#allocation2 + $0x67] sm:$0xff]  ;;  %1869 = vrot.lane.b32.xlu0 %v4423_v2, %s4162_s17  ;;  %1282 = vst.msk [vmem:[#allocation2 + $0x1c8] sm:$0xff] %vm808_vm0, %v1209_v47  ;;  %v3770_v3 = vpop.f32.mrb[12].mxu0  ;;  %v3786_v10 = vpop.f32.mrb[12].mxu1 }
 0x122   : > { %v2064_v46 = vld [vmem:[#allocation2 + $0x88] sm:$0xff]  ;;  %v2193_v51 = vld [vmem:[#allocation2 + $0x91] sm:$0xff]  ;;  %1345 = vst.msk [vmem:[#allocation3 + $0xd8] sm:$0xff] %vm808_vm0, %v4458_v40  ;;  %1676 = vrot.lane.b32.xlu1 %v1964_v15, %s4163_s28  ;;  %1265 = vst.msk [vmem:[#allocation2 + $0xb0] sm:$0xff] %vm808_vm0, %v1192_v52  ;;  %v1113_v11 = vadd.f32 %v3770_v3, %v4375_v1  ;;  %v4493_v12 = vpack.c.bf16 %v1949_v45, %v1948_v44  ;;  %v1104_v13 = vpop.f32.mrb[13].mxu0  ;;  %v1177_v18 = vadd.f32 %v3786_v10, %v4375_v1  ;;  %v1168_v19 = vpop.f32.mrb[13].mxu1 }
 0x123   : > { %v2192_v50 = vld [vmem:[#allocation2 + $0x89] sm:$0xff]  ;;  %1795 = vst.msk [vmem:[#allocation3 + $0xc8] sm:$0xff] %vm808_vm0, %v4460_v41  ;;  %v2191_v59 = vld [vmem:[#allocation2 + $0x71] sm:$0xff]  ;;  %1280 = vst.msk [vmem:[#allocation2 + $0x1a8] sm:$0xff] %vm808_vm0, %v1207_v62  ;;  %v1105_v20 = vadd.f32 %v4375_v1, %v1104_v13  ;;  %v3771_v21 = vpop.f32.mrb[14].mxu0  ;;  %v1169_v28 = vadd.f32 %v4375_v1, %v1168_v19  ;;  %v3787_v37 = vpop.f32.mrb[14].mxu1 }
 0x124   : > { %v1937_v53 = vld [vmem:[#allocation2 + $0x8f] sm:$0xff]  ;;  %v4477_v57 = vpack.c.bf16 %v2193_v51, %v2192_v50  ;;  %1283 = vst.msk [vmem:[#allocation2 + $0x1d0] sm:$0xff] %vm808_vm0, %v1210_v63  ;;  %1281 = vst.msk [vmem:[#allocation2 + $0x1b0] sm:$0xff] %vm808_vm0, %v1208_v9  ;;  %v1197_v29 = vmax.f32 %v1113_v11, 0.0  ;;  %v1116_v30 = vadd.f32 %v3771_v21, %v4375_v1  ;;  %v1107_v31 = vpop.f32.mrb[15].mxu0  ;;  %v1171_v44 = vpop.f32.mrb[15].mxu1 }
 0x125   : > { %v2062_v55 = vld [vmem:[#allocation2 + $0x68] sm:$0xff]  ;;  %v4483_v60 = vpack.c.bf16 %v1937_v53, %v1936_v42  ;;  %v2254_v4 = vld [vmem:[#allocation3 + $0x10] sm:$0xff]  ;;  %2012 = vrot.lane.b32.xlu0 %v4493_v12, %s4161_s14  ;;  %v1195_v38 = vmax.f32 %v1105_v20, 0.0  ;;  %v1108_v39 = vadd.f32 %v4375_v1, %v1107_v31  ;;  %v1213_v49 = vmax.f32 %v1177_v18, 0.0 }
 0x126   : > { %v2190_v58 = vld [vmem:[#allocation2 + $0x69] sm:$0xff]  ;;  %v2209_v5 = vld [vmem:[#allocation2 + $0x191] sm:$0xff]  ;;  %2238 = vst.msk [vmem:[#allocation3 + $0x40] sm:$0xff] %vm808_vm0, %v4477_v57  ;;  %3792 = vmatprep.mubr.msk.bf16.mxu0 %vm808_vm0, %v2254_v4  ;;  %1420 = vrot.lane.b32.xlu1 %v4436_v14, %s4162_s17  ;;  %1270 = vst.msk [vmem:[#allocation2 + $0x108] sm:$0xff] %vm808_vm0, %v1197_v29  ;;  %v1198_v45 = vmax.f32 %v1116_v30, 0.0  ;;  %v1211_v50 = vmax.f32 %v1169_v28, 0.0  ;;  %v1172_v56 = vadd.f32 %v4375_v1, %v1171_v44 }
 0x127   : > { %v2208_v61 = vld [vmem:[#allocation2 + $0x189] sm:$0xff]  ;;  %v4486_v0 = vpack.c.bf16 %v2191_v59, %v2190_v58  ;;  %v2207_v16 = vld [vmem:[#allocation2 + $0x171] sm:$0xff]  ;;  %1340 = vst.msk [vmem:[#allocation3 + $0x60] sm:$0xff] %vm808_vm0, %v4483_v60  ;;  %1268 = vst.msk [vmem:[#allocation2 + $0xe8] sm:$0xff] %vm808_vm0, %v1195_v38  ;;  %v1196_v53 = vmax.f32 %v1108_v39, 0.0 }
 0x128   : > { %v2206_v8 = vld [vmem:[#allocation2 + $0x169] sm:$0xff]  ;;  %v4495_v15 = vpack.c.bf16 %v2209_v5, %v2208_v61  ;;  %v2197_v52 = vld [vmem:[#allocation2 + $0xd1] sm:$0xff]  ;;  %1271 = vst.msk [vmem:[#allocation2 + $0x110] sm:$0xff] %vm808_vm0, %v1198_v45  ;;  %1286 = vst.msk [vmem:[#allocation2 + $0x208] sm:$0xff] %vm808_vm0, %v1213_v49 }
 0x129   : > { %v2065_v17 = vld [vmem:[#allocation2 + $0x90] sm:$0xff]  ;;  %2237 = vst.msk [vmem:[#allocation3 + $0x28] sm:$0xff] %vm808_vm0, %v4486_v0  ;;  %v4505_v22 = vpack.c.bf16 %v2207_v16, %v2206_v8  ;;  %v2078_v35 = vld [vmem:[#allocation2 + $0x168] sm:$0xff]  ;;  %2140 = vrot.lane.b32.xlu0 %v4443_v23, %s4163_s28  ;;  %1284 = vst.msk [vmem:[#allocation2 + $0x1e8] sm:$0xff] %vm808_vm0, %v1211_v50 }
 0x12a   : > { %v4507_v25 = vpack.c.bf16 %v2065_v17, %v2064_v46  ;;  %v1935_v26 = vld [vmem:[#allocation2 + $0x6f] sm:$0xff]  ;;  %2246 = vst.msk [vmem:[#allocation3 + $0x100] sm:$0xff] %vm808_vm0, %v4495_v15  ;;  %v1940_v14 = vld [vmem:[#allocation2 + $0xc7] sm:$0xff]  ;;  %1549 = vrot.lane.b32.xlu1 %v4423_v2, %s4161_s14  ;;  %1269 = vst.msk [vmem:[#allocation2 + $0xf0] sm:$0xff] %vm808_vm0, %v1196_v53  ;;  %v1212_v2 = vmax.f32 %v1172_v56, 0.0 }
 0x12b   : > { %v2063_v27 = vld [vmem:[#allocation2 + $0x70] sm:$0xff]  ;;  %v4518_v32 = vpack.c.bf16 %v1935_v26, %v1934_v54  ;;  %2245 = vst.msk [vmem:[#allocation3 + $0xe8] sm:$0xff] %vm808_vm0, %v4505_v22  ;;  %v2068_v42 = vld [vmem:[#allocation2 + $0xc8] sm:$0xff]  ;;  %v3938_v38 = vld [vmem:[%s6133_s5 + $0x18] sm:$0xff]  }
 0x12c   : > { %v4520_v34 = vpack.c.bf16 %v2063_v27, %v2062_v55  ;;  %v2079_v36 = vld [vmem:[#allocation2 + $0x170] sm:$0xff]  ;;  %1790 = vst.msk [vmem:[#allocation3 + $0x50] sm:$0xff] %vm808_vm0, %v4507_v25  ;;  %v1938_v46 = vld [vmem:[#allocation2 + $0xa7] sm:$0xff]  ;;  %v1180_v55 = vadd.f32 %v3787_v37, %v4375_v1  ;;  %1285 = vst.msk [vmem:[#allocation2 + $0x1f0] sm:$0xff] %vm808_vm0, %v1212_v2 }
 0x12d   : > { %v4525_v43 = vpack.c.bf16 %v2079_v36, %v2078_v35  ;;  %v2066_v47 = vld [vmem:[#allocation2 + $0xa8] sm:$0xff]  ;;  %v3936_v48 = vld [vmem:[%s6133_s5 + $0x10] sm:$0xff]   ;;  %1339 = vst.msk [vmem:[#allocation3 + $0x48] sm:$0xff] %vm808_vm0, %v4518_v32  ;;  %v2260_v4 = vld [vmem:[#allocation3 + $0x40] sm:$0xff]  ;;  %1885 = vrot.lane.b32.xlu0 %v4427_v6, %s4162_s17 }
 0x12e   : > { %1789 = vst.msk [vmem:[#allocation3 + $0x38] sm:$0xff] %vm808_vm0, %v4520_v34  ;;  %v2196_v51 = vld [vmem:[#allocation2 + $0xc9] sm:$0xff]  ;;  %v2195_v61 = vld [vmem:[#allocation2 + $0xb1] sm:$0xff]  ;;  %3597 = vmatpush3.bf16.msra.mxu1 %v3936_v48  ;;  %v1214_v10 = vmax.f32 %v1180_v55, 0.0  ;;  %1674 = vrot.lane.b32.xlu1 %v4445_v24, %s4163_s28  ;;  %v3940_v55 = vld [vmem:[%s6133_s5 + $0x20] sm:$0xff]  }
 0x12f   : > { %v1941_v54 = vld [vmem:[#allocation2 + $0xcf] sm:$0xff]  ;;  %1797 = vst.msk [vmem:[#allocation3 + $0xf8] sm:$0xff] %vm808_vm0, %v4525_v43  ;;  %v4542_v58 = vpack.c.bf16 %v2197_v52, %v2196_v51  ;;  %v1944_v30 = vld [vmem:[#allocation2 + $0x107] sm:$0xff]  ;;  %v3937_v24 = vld [vmem:[%s6133_s5 + $0x58] sm:$0xff]  }
 0x130   : > { %v2194_v59 = vld [vmem:[#allocation2 + $0xa9] sm:$0xff]  ;;  %v4549_v62 = vpack.c.bf16 %v1941_v54, %v1940_v14  ;;  %v2213_v18 = vld [vmem:[#allocation2 + $0x1d1] sm:$0xff]  ;;  %1287 = vst.msk [vmem:[#allocation2 + $0x210] sm:$0xff] %vm808_vm0, %v1214_v10  ;;  %3598 = vmatprep.subr.bf16.mxu1 %v3937_v24 }
 0x131   : > { %v2069_v63 = vld [vmem:[#allocation2 + $0xd0] sm:$0xff]  ;;  %v4553_v1 = vpack.c.bf16 %v2195_v61, %v2194_v59  ;;  %2240 = vst.msk [vmem:[#allocation3 + $0x70] sm:$0xff] %vm808_vm0, %v4542_v58  ;;  %v2257_v11 = vld [vmem:[#allocation3 + $0x28] sm:$0xff] }
 0x132   : > { %v1803_v3 = vld [vmem:[#allocation2 + $0x29] sm:$0xff]  ;;  %v4556_v5 = vpack.c.bf16 %v2069_v63, %v2068_v42  ;;  %1342 = vst.msk [vmem:[#allocation3 + $0x90] sm:$0xff] %vm808_vm0, %v4549_v62  ;;  %3793 = vmatmul.mubr.msk.bf16.vlgmr.msra.gmra.mrb[16].mxu0 %vm808_vm0, %v2257_v11  ;;  %v1804_v19 = vld [vmem:[#allocation2 + $0x31] sm:$0xff]  ;;  %1418 = vrot.lane.b32.xlu1 %v4452_v33, %s4162_s17  ;;  %v3939_v33 = vld [vmem:[%s6133_s5 + $0x60] sm:$0xff]  }
 0x133   : > { %v1939_v8 = vld [vmem:[#allocation2 + $0xaf] sm:$0xff]  ;;  %2239 = vst.msk [vmem:[#allocation3 + $0x58] sm:$0xff] %vm808_vm0, %v4553_v1  ;;  %3796 = vmatprep.mubr.msk.bf16.mxu0 %vm808_vm0, %v2260_v4  ;;  %v1835_v35 = vpack.c.bf16 %v1804_v19, %v1803_v3  ;;  %3599 = vmatpush3.bf16.msra.mxu1 %v3938_v38  ;;  %v1954_v56 = vld [vmem:[#allocation2 + $0x1a7] sm:$0xff] }
 0x134   : > { %v2067_v9 = vld [vmem:[#allocation2 + $0xb0] sm:$0xff]  ;;  %v4560_v13 = vpack.c.bf16 %v1939_v8, %v1938_v46  ;;  %1792 = vst.msk [vmem:[#allocation3 + $0x80] sm:$0xff] %vm808_vm0, %v4556_v5  ;;  %v2080_v28 = vld [vmem:[#allocation2 + $0x188] sm:$0xff]  ;;  %3600 = vmatprep.subr.bf16.mxu1 %v3939_v33 }
 0x135   : > { %v4562_v16 = vpack.c.bf16 %v2067_v9, %v2066_v47  ;;  %v2212_v17 = vld [vmem:[#allocation2 + $0x1c9] sm:$0xff]  ;;  %v2211_v26 = vld [vmem:[#allocation2 + $0x1b1] sm:$0xff]  ;;  %1867 = vrot.lane.b32.xlu0 %v1835_v35, %s4162_s17 }
 0x136   : > { %v4569_v20 = vpack.c.bf16 %v2213_v18, %v2212_v17  ;;  %v2210_v21 = vld [vmem:[#allocation2 + $0x1a9] sm:$0xff]  ;;  %1341 = vst.msk [vmem:[#allocation3 + $0x78] sm:$0xff] %vm808_vm0, %v4560_v13  ;;  %v2201_v14 = vld [vmem:[#allocation2 + $0x111] sm:$0xff]  ;;  %1547 = vrot.lane.b32.xlu1 %v1835_v35, %s4161_s14 }
 0x137   : > { %v4579_v27 = vpack.c.bf16 %v2211_v26, %v2210_v21  ;;  %v2081_v29 = vld [vmem:[#allocation2 + $0x190] sm:$0xff]  ;;  %1791 = vst.msk [vmem:[#allocation3 + $0x68] sm:$0xff] %vm808_vm0, %v4562_v16  ;;  %v2072_v36 = vld [vmem:[#allocation2 + $0x108] sm:$0xff]  ;;  %3601 = vmatpush3.bf16.msra.mxu1 %v3940_v55 }
 0x138   : > { %2248 = vst.msk [vmem:[#allocation3 + $0x130] sm:$0xff] %vm808_vm0, %v4569_v20  ;;  %v4588_v31 = vpack.c.bf16 %v2081_v29, %v2080_v28  ;;  %v2070_v37 = vld [vmem:[#allocation2 + $0xe8] sm:$0xff]  ;;  %v2199_v46 = vld [vmem:[#allocation2 + $0xf1] sm:$0xff] }
 0x139   : > { %2247 = vst.msk [vmem:[#allocation3 + $0x118] sm:$0xff] %vm808_vm0, %v4579_v27  ;;  %v2200_v39 = vld [vmem:[#allocation2 + $0x109] sm:$0xff]  ;;  %2010 = vrot.lane.b32.xlu0 %v4458_v40, %s4161_s14  ;;  %v2217_v4 = vld [vmem:[#allocation2 + $0x211] sm:$0xff] }
 0x13a   : > { %v1945_v42 = vld [vmem:[#allocation2 + $0x10f] sm:$0xff]  ;;  %1798 = vst.msk [vmem:[#allocation3 + $0x110] sm:$0xff] %vm808_vm0, %v4588_v31  ;;  %v4600_v44 = vpack.c.bf16 %v2201_v14, %v2200_v39  ;;  %v2263_v53 = vld [vmem:[#allocation3 + $0x58] sm:$0xff]  ;;  %1690 = vrot.lane.b32.xlu1 %v4458_v40, %s4163_s28  ;;  %v1956_v26 = vld [vmem:[#allocation2 + $0x1c7] sm:$0xff] }
 0x13b   : > { %v2198_v45 = vld [vmem:[#allocation2 + $0xe9] sm:$0xff]  ;;  %v4605_v47 = vpack.c.bf16 %v1945_v42, %v1944_v30  ;;  %3797 = vmatmul.mubr.msk.bf16.gmra.mrb[20].mxu0 %vm808_vm0, %v2263_v53  ;;  %v2215_v10 = vld [vmem:[#allocation2 + $0x1f1] sm:$0xff] }
 0x13c   : > { %v2073_v48 = vld [vmem:[#allocation2 + $0x110] sm:$0xff]  ;;  %v4607_v49 = vpack.c.bf16 %v2199_v46, %v2198_v45  ;;  %2242 = vst.msk [vmem:[#allocation3 + $0xa0] sm:$0xff] %vm808_vm0, %v4600_v44  ;;  %v3941_v61 = vld [vmem:[%s6133_s5 + $0x68] sm:$0xff]   ;;  %v3945_v40 = vld [vmem:[%s6133_s5 + $0x78] sm:$0xff]  }
 0x13d   : > { %v2266_v50 = vld [vmem:[#allocation3 + $0x70] sm:$0xff]  ;;  %v4609_v51 = vpack.c.bf16 %v2073_v48, %v2072_v36  ;;  %1344 = vst.msk [vmem:[#allocation3 + $0xc0] sm:$0xff] %vm808_vm0, %v4605_v47  ;;  %v3942_v2 = vld [vmem:[%s6133_s5 + $0x28] sm:$0xff]   ;;  %3602 = vmatprep.subr.bf16.mxu1 %v3941_v61  ;;  %2138 = vrot.lane.b32.xlu0 %v4460_v41, %s4163_s28 }
 0x13e   : > { %v2071_v52 = vld [vmem:[#allocation2 + $0xf0] sm:$0xff]  ;;  %2241 = vst.msk [vmem:[#allocation3 + $0x88] sm:$0xff] %vm808_vm0, %v4607_v49  ;;  %3800 = vmatprep.mubr.msk.bf16.mxu0 %vm808_vm0, %v2266_v50  ;;  %v2082_v17 = vld [vmem:[#allocation2 + $0x1a8] sm:$0xff]  ;;  %3603 = vmatpush3.bf16.msra.mxu1 %v3942_v2 }
 0x13f   : > { %v4613_v54 = vpack.c.bf16 %v2071_v52, %v2070_v37  ;;  %v1955_v59 = vld [vmem:[#allocation2 + $0x1af] sm:$0xff]  ;;  %1794 = vst.msk [vmem:[#allocation3 + $0xb0] sm:$0xff] %vm808_vm0, %v4609_v51  ;;  %v1958_v42 = vld [vmem:[#allocation2 + $0x1e7] sm:$0xff]  ;;  %1434 = vrot.lane.b32.xlu1 %v4460_v41, %s4162_s17  ;;  %v3946_v41 = vld [vmem:[%s6133_s5 + $0x38] sm:$0xff]  }
 0x140   : > { %v4634_v63 = vpack.c.bf16 %v1955_v59, %v1954_v56  ;;  %v2216_v3 = vld [vmem:[#allocation2 + $0x209] sm:$0xff] }
 0x141   : > { %1793 = vst.msk [vmem:[#allocation3 + $0x98] sm:$0xff] %vm808_vm0, %v4613_v54  ;;  %v4639_v8 = vpack.c.bf16 %v2217_v4, %v2216_v3  ;;  %v2214_v9 = vld [vmem:[#allocation2 + $0x1e9] sm:$0xff]  ;;  %1883 = vrot.lane.b32.xlu0 %v4429_v7, %s4162_s17 }
 0x142   : > { %v4644_v11 = vpack.c.bf16 %v2215_v10, %v2214_v9  ;;  %v2083_v18 = vld [vmem:[#allocation2 + $0x1b0] sm:$0xff]  ;;  %1349 = vst.msk [vmem:[#allocation3 + $0x138] sm:$0xff] %vm808_vm0, %v4634_v63  ;;  %v2084_v24 = vld [vmem:[#allocation2 + $0x1c8] sm:$0xff] }
 0x143   : > { %2250 = vst.msk [vmem:[#allocation3 + $0x160] sm:$0xff] %vm808_vm0, %v4639_v8  ;;  %v4650_v19 = vpack.c.bf16 %v2083_v18, %v2082_v17  ;;  %v3943_v21 = vld [vmem:[%s6133_s5 + $0x70] sm:$0xff]   ;;  %v2272_v37 = vld [vmem:[#allocation3 + $0xa0] sm:$0xff]  ;;  %v2088_v39 = vld [vmem:[#allocation2 + $0x208] sm:$0xff]  ;;  %1563 = vrot.lane.b32.xlu1 %v4429_v7, %s4161_s14 }
 0x144   : > { %2249 = vst.msk [vmem:[#allocation3 + $0x148] sm:$0xff] %vm808_vm0, %v4644_v11  ;;  %v1957_v28 = vld [vmem:[#allocation2 + $0x1cf] sm:$0xff]  ;;  %3604 = vmatprep.subr.bf16.mxu1 %v3943_v21  ;;  %v1308_v33 = vld [vmem:[#allocation2 + $0x147] sm:$0xff]  ;;  %v2275_v21 = vld [vmem:[#allocation3 + $0xb8] sm:$0xff] }
 0x145   : > { %v3944_v29 = vld [vmem:[%s6133_s5 + $0x30] sm:$0xff]   ;;  %v4664_v30 = vpack.c.bf16 %v1957_v28, %v1956_v26  ;;  %1799 = vst.msk [vmem:[#allocation3 + $0x128] sm:$0xff] %vm808_vm0, %v4650_v19  ;;  %v2269_v36 = vld [vmem:[#allocation3 + $0x88] sm:$0xff]  ;;  %2000 = vrot.lane.b32.xlu0 %v4483_v60, %s4161_s14  ;;  %v2284_v28 = vld [vmem:[#allocation3 + $0x100] sm:$0xff] }
 0x146   : > { %v2085_v35 = vld [vmem:[#allocation2 + $0x1d0] sm:$0xff]  ;;  %3801 = vmatmul.mubr.msk.bf16.gmra.mrb[24].mxu0 %vm808_vm0, %v2269_v36  ;;  %v2086_v48 = vld [vmem:[#allocation2 + $0x1e8] sm:$0xff]  ;;  %3605 = vmatpush3.bf16.msra.mxu1 %v3944_v29 }
 0x147   : > { %v4671_v38 = vpack.c.bf16 %v2085_v35, %v2084_v24  ;;  %v2089_v14 = vld [vmem:[#allocation2 + $0x210] sm:$0xff]  ;;  %1350 = vst.msk [vmem:[#allocation3 + $0x150] sm:$0xff] %vm808_vm0, %v4664_v30  ;;  %3804 = vmatprep.mubr.msk.bf16.mxu0 %vm808_vm0, %v2272_v37  ;;  %v1302_v56 = vld [vmem:[#allocation2 + $0xe7] sm:$0xff]  ;;  %3606 = vmatprep.subr.bf16.mxu1 %v3945_v40 }
 0x148   : > { %v4680_v45 = vpack.c.bf16 %v2089_v14, %v2088_v39  ;;  %v1959_v46 = vld [vmem:[#allocation2 + $0x1ef] sm:$0xff]  ;;  %v1310_v3 = vld [vmem:[#allocation2 + $0x167] sm:$0xff]  ;;  %1680 = vrot.lane.b32.xlu1 %v4483_v60, %s4163_s28  ;;  %v2287_v60 = vld [vmem:[#allocation3 + $0x118] sm:$0xff] }
 0x149   : > { %v2087_v50 = vld [vmem:[#allocation2 + $0x1f0] sm:$0xff]  ;;  %1800 = vst.msk [vmem:[#allocation3 + $0x140] sm:$0xff] %vm808_vm0, %v4671_v38  ;;  %v4685_v52 = vpack.c.bf16 %v1959_v46, %v1958_v42  ;;  %v1312_v10 = vld [vmem:[#allocation2 + $0x187] sm:$0xff]  ;;  %2128 = vrot.lane.b32.xlu0 %v4507_v25, %s4163_s28 }
 0x14a   : > { %v4687_v53 = vpack.c.bf16 %v2087_v50, %v2086_v48  ;;  %v1309_v55 = vld [vmem:[#allocation2 + $0x14f] sm:$0xff]  ;;  %1802 = vst.msk [vmem:[#allocation3 + $0x170] sm:$0xff] %vm808_vm0, %v4680_v45  ;;  %3607 = vmatpush3.bf16.msra.mxu1 %v3946_v41  ;;  %v1950_v29 = vld [vmem:[#allocation2 + $0x167] sm:$0xff] }
 0x14b   : > { %v1330_v59 = vpack.c.bf16 %v1309_v55, %v1308_v33  ;;  %v1303_v61 = vld [vmem:[#allocation2 + $0xef] sm:$0xff]  ;;  %1351 = vst.msk [vmem:[#allocation3 + $0x168] sm:$0xff] %vm808_vm0, %v4685_v52  ;;  %v2296_v35 = vld [vmem:[#allocation3 + $0x160] sm:$0xff] }
 0x14c   : > { %v1327_v4 = vpack.c.bf16 %v1303_v61, %v1302_v56  ;;  %v1311_v9 = vld [vmem:[#allocation2 + $0x16f] sm:$0xff]  ;;  %1801 = vst.msk [vmem:[#allocation3 + $0x158] sm:$0xff] %vm808_vm0, %v4687_v53  ;;  %1424 = vrot.lane.b32.xlu1 %v4507_v25, %s4162_s17  ;;  %v1960_v50 = vld [vmem:[#allocation2 + $0x207] sm:$0xff] }
 0x14d   : > { %1346 = vst.msk [vmem:[#allocation3 + $0xf0] sm:$0xff] %vm808_vm0, %v1330_v59  ;;  %v1331_v2 = vpack.c.bf16 %v1311_v9, %v1310_v3  ;;  %v1313_v17 = vld [vmem:[#allocation2 + $0x18f] sm:$0xff]  ;;  %1873 = vrot.lane.b32.xlu0 %v4477_v57, %s4162_s17  ;;  %v1962_v9 = vld [vmem:[#allocation2 + $0x227] sm:$0xff] }
 0x14e   : > { %1343 = vst.msk [vmem:[#allocation3 + $0xa8] sm:$0xff] %vm808_vm0, %v1327_v4  ;;  %v1332_v18 = vpack.c.bf16 %v1313_v17, %v1312_v10  ;;  %3805 = vmatmul.mubr.msk.bf16.gmra.mrb[28].mxu0 %vm808_vm0, %v2275_v21  ;;  %v2278_v7 = vld [vmem:[#allocation3 + $0xd0] sm:$0xff]  ;;  %v2281_v26 = vld [vmem:[#allocation3 + $0xe8] sm:$0xff] }
 0x14f   : > { %1347 = vst.msk [vmem:[#allocation3 + $0x108] sm:$0xff] %vm808_vm0, %v1331_v2  ;;  %3808 = vmatprep.mubr.msk.bf16.mxu0 %vm808_vm0, %v2278_v7  ;;  %v2290_v25 = vld [vmem:[#allocation3 + $0x130] sm:$0xff]  ;;  %v2090_v7 = vld [vmem:[#allocation2 + $0x228] sm:$0xff] }
 0x150   : > { %1348 = vst.msk [vmem:[#allocation3 + $0x120] sm:$0xff] %vm808_vm0, %v1332_v18  ;;  %1553 = vrot.lane.b32.xlu1 %v4477_v57, %s4161_s14  ;;  %v1951_v24 = vld [vmem:[#allocation2 + $0x16f] sm:$0xff] }
 0x151   : > { %1998 = vrot.lane.b32.xlu0 %v4518_v32, %s4161_s14  ;;  %v1973_v57 = vpack.c.bf16 %v1951_v24, %v1950_v29  ;;  %v1961_v33 = vld [vmem:[#allocation2 + $0x20f] sm:$0xff] }
 0x152   : > { %v1978_v41 = vpack.c.bf16 %v1961_v33, %v1960_v50  ;;  %v2219_v4 = vld [vmem:[#allocation2 + $0x231] sm:$0xff]  ;;  %v4942_v50 = vld [vmem:[%s4279_s16 + $0x20] sm:$0xff] }
 0x153   : > { %6153 = vst [vmem:[#allocation8_spill] sm:$0xff] %v4942_v50 }
 0x154   : > { %1678 = vrot.lane.b32.xlu1 %v4518_v32, %s4163_s28  ;;  %v2293_v32 = vld [vmem:[#allocation3 + $0x148] sm:$0xff] }
 0x155   : > { %2126 = vrot.lane.b32.xlu0 %v4520_v34, %s4163_s28 }
 0x156   : > { %3809 = vmatmul.mubr.msk.bf16.gmra.mrb[32].mxu0 %vm808_vm0, %v2281_v26  ;;  %v2091_v26 = vld [vmem:[#allocation2 + $0x230] sm:$0xff] }
 0x157   : > { %3812 = vmatprep.mubr.msk.bf16.mxu0 %vm808_vm0, %v2284_v28  ;;  %v2107_v29 = vpack.c.bf16 %v2091_v26, %v2090_v7 }
 0x158   : > { %1422 = vrot.lane.b32.xlu1 %v4520_v34, %s4162_s17  ;;  %v1943_v34 = vld [vmem:[#allocation2 + $0xef] sm:$0xff] }
 0x159   : > { %1871 = vrot.lane.b32.xlu0 %v4486_v0, %s4162_s17 }
 0x15c   : > { %1551 = vrot.lane.b32.xlu1 %v4486_v0, %s4161_s14  ;;  %v1942_v0 = vld [vmem:[#allocation2 + $0xe7] sm:$0xff] }
 0x15d   : > { %2014 = vrot.lane.b32.xlu0 %v1973_v57, %s4161_s14 }
 0x15e   : > { %3813 = vmatmul.mubr.msk.bf16.gmra.mrb[36].mxu0 %vm808_vm0, %v2287_v60 }
 0x15f   : > { %3816 = vmatprep.mubr.msk.bf16.mxu0 %vm808_vm0, %v2290_v25 }
 0x160   : > { %1684 = vrot.lane.b32.xlu1 %v4549_v62, %s4163_s28 }
 0x161   : > { %2004 = vrot.lane.b32.xlu0 %v4549_v62, %s4161_s14 }
 0x164   : > { %1428 = vrot.lane.b32.xlu1 %v4556_v5, %s4162_s17 }
 0x165   : > { %2132 = vrot.lane.b32.xlu0 %v4556_v5, %s4163_s28  ;;  %v1953_v5 = vld [vmem:[#allocation2 + $0x18f] sm:$0xff] }
 0x166   : > { %3817 = vmatmul.mubr.msk.bf16.gmra.mrb[40].mxu0 %vm808_vm0, %v2293_v32 }
 0x167   : > { %3820 = vmatprep.mubr.msk.bf16.mxu0 %vm808_vm0, %v2296_v35 }
 0x168   : > { %1557 = vrot.lane.b32.xlu1 %v4542_v58, %s4161_s14 }
 0x169   : > { %1877 = vrot.lane.b32.xlu0 %v4542_v58, %s4162_s17  ;;  %v1969_v58 = vpack.c.bf16 %v1943_v34, %v1942_v0 }
 0x16c   : > { %1682 = vrot.lane.b32.xlu1 %v4560_v13, %s4163_s28 }
 0x16d   : > { %2002 = vrot.lane.b32.xlu0 %v4560_v13, %s4161_s14 }
 0x170   : > { %1426 = vrot.lane.b32.xlu1 %v4562_v16, %s4162_s17 }
 0x171   : > { %2130 = vrot.lane.b32.xlu0 %v4562_v16, %s4163_s28 }
 0x174   : > { %1555 = vrot.lane.b32.xlu1 %v4553_v1, %s4161_s14 }
 0x175   : > { %1875 = vrot.lane.b32.xlu0 %v4553_v1, %s4162_s17 }
 0x178   : > { %1688 = vrot.lane.b32.xlu1 %v4605_v47, %s4163_s28 }
 0x179   : > { %2008 = vrot.lane.b32.xlu0 %v4605_v47, %s4161_s14 }
 0x17c   : > { %1432 = vrot.lane.b32.xlu1 %v4609_v51, %s4162_s17 }
 0x17d   : > { %2136 = vrot.lane.b32.xlu0 %v4609_v51, %s4163_s28 }
 0x180   : > { %1561 = vrot.lane.b32.xlu1 %v4600_v44, %s4161_s14 }
 0x181   : > { %1881 = vrot.lane.b32.xlu0 %v4600_v44, %s4162_s17 }
 0x184   : > { %1692 = vrot.lane.b32.xlu1 %v4493_v12, %s4163_s28  ;;  %v1952_v12 = vld [vmem:[#allocation2 + $0x187] sm:$0xff] }
 0x185   : > { %2006 = vrot.lane.b32.xlu0 %v1969_v58, %s4161_s14  ;;  %v1974_v16 = vpack.c.bf16 %v1953_v5, %v1952_v12 }
 0x188   : > { %1436 = vrot.lane.b32.xlu1 %v4443_v23, %s4162_s17 }
 0x189   : > { %2134 = vrot.lane.b32.xlu0 %v4613_v54, %s4163_s28 }
 0x18c   : > { %1686 = vrot.lane.b32.xlu1 %v1969_v58, %s4163_s28 }
 0x18d   : > { %1879 = vrot.lane.b32.xlu0 %v4607_v49, %s4162_s17 }
 0x18f   : > { %v2125_v62 = vpop.permute.xlu0 %2124 }
 0x190   : > { %1430 = vrot.lane.b32.xlu1 %v4613_v54, %s4162_s17  ;;  %v1997_v1 = vpop.permute.xlu1 %1996 }
 0x191   : > { %2142 = vrot.lane.b32.xlu0 %v4525_v43, %s4163_s28 }
 0x193   : > { %v1870_v23 = vpop.permute.xlu0 %1869 }
 0x194   : > { %1559 = vrot.lane.b32.xlu1 %v4607_v49, %s4161_s14  ;;  %v1677_v13 = vpop.permute.xlu1 %1676  ;;  %1916 = vst.msk [vmem:[#allocation3 + $0x20] sm:$0xff] %vm1464_vm3, %v1870_v23 }
 0x195   : > { %1887 = vrot.lane.b32.xlu0 %v4505_v22, %s4162_s17 }
 0x197   : > { %v2013_v44 = vpop.permute.xlu0 %2012 }
 0x198   : > { %1565 = vrot.lane.b32.xlu1 %v4427_v6, %s4161_s14  ;;  %v1421_v47 = vpop.permute.xlu1 %1420 }
 0x199   : > { %2016 = vrot.lane.b32.xlu0 %v1974_v16, %s4161_s14  ;;  %1467 = vst.msk [vmem:[#allocation3 + $0x30] sm:$0xff] %vm1464_vm3, %v1421_v47 }
 0x19b   : > { %v2141_v49 = vpop.permute.xlu0 %2140 }
 0x19c   : > { %1694 = vrot.lane.b32.xlu1 %v1973_v57, %s4163_s28  ;;  %v1550_v51 = vpop.permute.xlu1 %1549 }
 0x19d   : > { %2144 = vrot.lane.b32.xlu0 %v4588_v31, %s4163_s28  ;;  %1596 = vst.msk [vmem:[#allocation3 + $0x30] sm:$0xff] %vm1593_vm4, %v1550_v51 }
 0x19f   : > { %v1886_v6 = vpop.permute.xlu0 %1885 }
 0x1a0   : > { %1438 = vrot.lane.b32.xlu1 %v4525_v43, %s4162_s17  ;;  %v1675_v54 = vpop.permute.xlu1 %1674  ;;  %1924 = vst.msk [vmem:[#allocation3 + $0xe0] sm:$0xff] %vm1464_vm3, %v1886_v6 }
 0x1a1   : > { %1889 = vrot.lane.b32.xlu0 %v4495_v15, %s4162_s17  ;;  %1723 = vst.msk [vmem:[#allocation3] sm:$0xff] %vm1722_vm5, %v1675_v54 }
 0x1a4   : > { %1567 = vrot.lane.b32.xlu1 %v4505_v22, %s4161_s14  ;;  %v1419_v37 = vpop.permute.xlu1 %1418 }
 0x1a5   : > { %2018 = vrot.lane.b32.xlu0 %v4634_v63, %s4161_s14  ;;  %1466 = vst.msk [vmem:[#allocation3 + $0x18] sm:$0xff] %vm1464_vm3, %v1419_v37 }
 0x1a7   : > { %v1868_v36 = vpop.permute.xlu0 %1867 }
 0x1a8   : > { %1915 = vst.msk [vmem:[#allocation3 + $0x8] sm:$0xff] %vm1464_vm3, %v1868_v36  ;;  %1696 = vrot.lane.b32.xlu1 %v1974_v16, %s4163_s28  ;;  %v1548_v40 = vpop.permute.xlu1 %1547  ;;  %v2252_v42 = vld [vmem:[#allocation3] sm:$0xff] }
 0x1a9   : > { %2044 = vst.msk [vmem:[#allocation3 + $0x8] sm:$0xff] %vm1593_vm4, %v1997_v1  ;;  %2146 = vrot.lane.b32.xlu0 %v4650_v19, %s4163_s28  ;;  %1595 = vst.msk [vmem:[#allocation3 + $0x18] sm:$0xff] %vm1593_vm4, %v1548_v40  ;;  %v4912_v36 = vld [vmem:[%s4279_s16] sm:$0xff] }
 0x1aa   : > { %2172 = vst.msk [vmem:[#allocation3 + $0x8] sm:$0xff] %vm1722_vm5, %v2125_v62  ;;  %1724 = vst.msk [vmem:[#allocation3 + $0x18] sm:$0xff] %vm1722_vm5, %v1677_v13 }
 0x1ab   : > { %v4817_v43 = vpop.permute.xlu0 %2010 }
 0x1ac   : > { %1440 = vrot.lane.b32.xlu1 %v4588_v31, %s4162_s17  ;;  %v4827_v39 = vpop.permute.xlu1 %1690 }
 0x1ad   : > { %1891 = vrot.lane.b32.xlu0 %v4579_v27, %s4162_s17 }
 0x1af   : > { %v4825_v22 = vpop.permute.xlu0 %2138 }
 0x1b0   : > { %1569 = vrot.lane.b32.xlu1 %v4495_v15, %s4161_s14 }
 0x1b1   : > { %2020 = vrot.lane.b32.xlu0 %v4664_v30, %s4161_s14  ;;  %v2253_v14 = vld [vmem:[#allocation3 + $0x8] sm:$0xff]  ;;  %v1435_v48 = vpop.permute.xlu1 %1434 }
 0x1b2   : > { %2528 = vmatprep.mubr.bf16.mxu1 %v2253_v14  ;;  %1474 = vst.msk [vmem:[#allocation3 + $0xd8] sm:$0xff] %vm1464_vm3, %v1435_v48 }
 0x1b3   : > { %v1884_v46 = vpop.permute.xlu0 %1883  ;;  %2529 = vmatmul.mubr.bf16.vlgmr.msra.gmra.mrb[16].mxu1 %v2252_v42  ;;  %v4925_v42 = vld [vmem:[%s4279_s16 + $0x10] sm:$0xff] }
 0x1b4   : > { %1923 = vst.msk [vmem:[#allocation3 + $0xc8] sm:$0xff] %vm1464_vm3, %v1884_v46  ;;  %1698 = vrot.lane.b32.xlu1 %v4634_v63, %s4163_s28  ;;  %v4930_v46 = vld [vmem:[%s4279_s16 + $0x8] sm:$0xff] }
 0x1b5   : > { %2052 = vst.msk [vmem:[#allocation3 + $0xc8] sm:$0xff] %vm1593_vm4, %v2013_v44  ;;  %2148 = vrot.lane.b32.xlu0 %v4671_v38, %s4163_s28  ;;  %v1564_v31 = vpop.permute.xlu1 %1563 }
 0x1b6   : > { %2180 = vst.msk [vmem:[#allocation3 + $0xc8] sm:$0xff] %vm1722_vm5, %v2141_v49  ;;  %v4907_v49 = vld [vmem:[%s6129_s1] ss:$0 sm:$0xff] }
 0x1b7   : > { %v2001_v15 = vpop.permute.xlu0 %2000  ;;  %1603 = vst.msk [vmem:[#allocation3 + $0xd8] sm:$0xff] %vm1593_vm4, %v1564_v31  ;;  %v376_v37 = vmul.f32 %v4912_v36, %v4907_v49  ;;  %v380_v33 = vmul.f32 %v4942_v50, %v4907_v49 }
 0x1b8   : > { %1442 = vrot.lane.b32.xlu1 %v4650_v19, %s4162_s17 }
 0x1b9   : > { %1893 = vrot.lane.b32.xlu0 %v4569_v20, %s4162_s17 }
 0x1ba   : > { %v1681_v56 = vpop.permute.xlu1 %1680 }
 0x1bb   : > { %v2129_v55 = vpop.permute.xlu0 %2128 }
 0x1bc   : > { %1571 = vrot.lane.b32.xlu1 %v4579_v27, %s4161_s14 }
 0x1bd   : > { %2024 = vrot.lane.b32.xlu0 %v1978_v41, %s4161_s14 }
 0x1be   : > { %v1425_v59 = vpop.permute.xlu1 %1424 }
 0x1bf   : > { %v1874_v63 = vpop.permute.xlu0 %1873  ;;  %1469 = vst.msk [vmem:[#allocation3 + $0x60] sm:$0xff] %vm1464_vm3, %v1425_v59  ;;  %v4955_v59 = vld [vmem:[%s4279_s16 + $0x30] sm:$0xff] }
 0x1c0   : > { %1918 = vst.msk [vmem:[#allocation3 + $0x50] sm:$0xff] %vm1464_vm3, %v1874_v63  ;;  %1700 = vrot.lane.b32.xlu1 %v4664_v30, %s4163_s28  ;;  %6155 = vst [vmem:[#allocation10_spill] sm:$0xff] %v4955_v59 }
 0x1c1   : > { %2152 = vrot.lane.b32.xlu0 %v4680_v45, %s4163_s28 }
 0x1c2   : > { %v1554_v61 = vpop.permute.xlu1 %1553 }
 0x1c3   : > { %v1999_v19 = vpop.permute.xlu0 %1998  ;;  %1598 = vst.msk [vmem:[#allocation3 + $0x60] sm:$0xff] %vm1593_vm4, %v1554_v61 }
 0x1c4   : > { %2045 = vst.msk [vmem:[#allocation3 + $0x20] sm:$0xff] %vm1593_vm4, %v1999_v19  ;;  %1444 = vrot.lane.b32.xlu1 %v4671_v38, %s4162_s17  ;;  %v2218_v38 = vld [vmem:[#allocation2 + $0x229] sm:$0xff]  ;;  %v382_v19 = vmul.f32 %v4955_v59, %v4907_v49 }
 0x1c5   : > { %2022 = vrot.lane.b32.xlu0 %v4685_v52, %s4161_s14  ;;  %v2235_v10 = vpack.c.bf16 %v2219_v4, %v2218_v38 }
 0x1c6   : > { %v1679_v3 = vpop.permute.xlu1 %1678 }
 0x1c7   : > { %v2127_v27 = vpop.permute.xlu0 %2126  ;;  %1725 = vst.msk [vmem:[#allocation3 + $0x30] sm:$0xff] %vm1722_vm5, %v1679_v3 }
 0x1c8   : > { %2173 = vst.msk [vmem:[#allocation3 + $0x20] sm:$0xff] %vm1722_vm5, %v2127_v27  ;;  %1573 = vrot.lane.b32.xlu1 %v4569_v20, %s4161_s14  ;;  %v1963_v20 = vld [vmem:[#allocation2 + $0x22f] sm:$0xff] }
 0x1c9   : > { %2150 = vrot.lane.b32.xlu0 %v4687_v53, %s4163_s28  ;;  %2251 = vst.msk [vmem:[#allocation3 + $0x178] sm:$0xff] %vm808_vm0, %v2235_v10  ;;  %v1979_v21 = vpack.c.bf16 %v1963_v20, %v1962_v9  ;;  %v4970_v9 = vld [vmem:[%s4279_s16 + $0x40] sm:$0xff] }
 0x1ca   : > { %v1423_v45 = vpop.permute.xlu1 %1422  ;;  %6157 = vst [vmem:[#allocation12_spill] sm:$0xff] %v4970_v9  ;;  %v384_v20 = vmul.f32 %v4970_v9, %v4907_v49 }
 0x1cb   : > { %v1872_v30 = vpop.permute.xlu0 %1871  ;;  %1468 = vst.msk [vmem:[#allocation3 + $0x48] sm:$0xff] %vm1464_vm3, %v1423_v45  ;;  %v4963_v45 = vld [vmem:[%s4279_s16 + $0x38] sm:$0xff] }
 0x1cc   : > { %1917 = vst.msk [vmem:[#allocation3 + $0x38] sm:$0xff] %vm1464_vm3, %v1872_v30  ;;  %1702 = vrot.lane.b32.xlu1 %v4685_v52, %s4163_s28  ;;  %v2255_v52 = vld [vmem:[#allocation3 + $0x18] sm:$0xff]  ;;  %6156 = vst [vmem:[#allocation11_spill] sm:$0xff] %v4963_v45  ;;  %v383_v38 = vmul.f32 %v4963_v45, %v4907_v49 }
 0x1cd   : > { %2046 = vst.msk [vmem:[#allocation3 + $0x38] sm:$0xff] %vm1593_vm4, %v2001_v15  ;;  %1895 = vrot.lane.b32.xlu0 %v4644_v11, %s4162_s17  ;;  %v4937_v15 = vld [vmem:[%s4279_s16 + $0x18] sm:$0xff] }
 0x1ce   : > { %2174 = vst.msk [vmem:[#allocation3 + $0x38] sm:$0xff] %vm1722_vm5, %v2129_v55  ;;  %v1552_v17 = vpop.permute.xlu1 %1551  ;;  %6152 = vst [vmem:[#allocation7_spill] sm:$0xff] %v4937_v15  ;;  %v379_v31 = vmul.f32 %v4937_v15, %v4907_v49 }
 0x1cf   : > { %v2015_v2 = vpop.permute.xlu0 %2014  ;;  %v2256_v18 = vld [vmem:[#allocation3 + $0x20] sm:$0xff]  ;;  %1597 = vst.msk [vmem:[#allocation3 + $0x48] sm:$0xff] %vm1593_vm4, %v1552_v17 }
 0x1d0   : > { %2053 = vst.msk [vmem:[#allocation3 + $0xe0] sm:$0xff] %vm1593_vm4, %v2015_v2  ;;  %2536 = vmatprep.mubr.bf16.mxu1 %v2256_v18  ;;  %1446 = vrot.lane.b32.xlu1 %v4687_v53, %s4162_s17  ;;  %v2299_v57 = vld [vmem:[#allocation3 + $0x178] sm:$0xff]  ;;  %v2258_v53 = vld [vmem:[#allocation3 + $0x30] sm:$0xff] }
 0x1d1   : > { %1726 = vst.msk [vmem:[#allocation3 + $0x48] sm:$0xff] %vm1722_vm5, %v1681_v56  ;;  %1897 = vrot.lane.b32.xlu0 %v4639_v8, %s4162_s17  ;;  %2537 = vmatmul.mubr.bf16.gmra.mrb[20].mxu1 %v2255_v52  ;;  %v4981_v52 = vld [vmem:[%s4279_s16 + $0x48] sm:$0xff] }
 0x1d2   : > { %v1685_v60 = vpop.permute.xlu1 %1684  ;;  %3821 = vmatmul.mubr.msk.bf16.gmra.mrb[44].mxu0 %vm808_vm0, %v2299_v57  ;;  %6158 = vst [vmem:[#allocation13_spill] sm:$0xff] %v4981_v52 }
 0x1d3   : > { %v2005_v28 = vpop.permute.xlu0 %2004 }
 0x1d4   : > { %1575 = vrot.lane.b32.xlu1 %v4644_v11, %s4161_s14 }
 0x1d5   : > { %2026 = vrot.lane.b32.xlu0 %v1979_v21, %s4161_s14  ;;  %v2259_v25 = vld [vmem:[#allocation3 + $0x38] sm:$0xff]  ;;  %v385_v21 = vmul.f32 %v4981_v52, %v4907_v49  ;;  %s6065_s14 = scalar_lea.hbm %s6137_s9, %s3567_s23 }
 0x1d6   : > { %2544 = vmatprep.mubr.bf16.mxu1 %v2259_v25  ;;  %v1429_v8 = vpop.permute.xlu1 %1428 }
 0x1d7   : > { %v2133_v24 = vpop.permute.xlu0 %2132  ;;  %1471 = vst.msk [vmem:[#allocation3 + $0x90] sm:$0xff] %vm1464_vm3, %v1429_v8  ;;  %v4997_v8 = vld [vmem:[%s4279_s16 + $0x58] sm:$0xff] }
 0x1d8   : > { %1704 = vrot.lane.b32.xlu1 %v1978_v41, %s4163_s28  ;;  %v2261_v13 = vld [vmem:[#allocation3 + $0x48] sm:$0xff]  ;;  %6160 = vst [vmem:[#allocation15_spill] sm:$0xff] %v4997_v8  ;;  %v387_v57 = vmul.f32 %v4997_v8, %v4907_v49 }
 0x1d9   : > { %2154 = vrot.lane.b32.xlu0 %v2107_v29, %s4163_s28  ;;  %2545 = vmatmul.mubr.bf16.gmra.mrb[24].mxu1 %v2258_v53  ;;  %v4949_v41 = vld [vmem:[%s4279_s16 + $0x28] sm:$0xff] }
 0x1da   : > { %v1558_v35 = vpop.permute.xlu1 %1557  ;;  %6154 = vst [vmem:[#allocation9_spill] sm:$0xff] %v4949_v41  ;;  %v381_v63 = vmul.f32 %v4949_v41, %v4907_v49 }
 0x1db   : > { %v1878_v32 = vpop.permute.xlu0 %1877  ;;  %1600 = vst.msk [vmem:[#allocation3 + $0x90] sm:$0xff] %vm1593_vm4, %v1558_v35  ;;  %v5004_v35 = vld [vmem:[%s4279_s16 + $0x60] sm:$0xff] }
 0x1dc   : > { %1920 = vst.msk [vmem:[#allocation3 + $0x80] sm:$0xff] %vm1464_vm3, %v1878_v32  ;;  %6161 = vst [vmem:[#allocation16_spill] sm:$0xff] %v5004_v35 }
 0x1de   : > { %v1683_v0 = vpop.permute.xlu1 %1682 }
 0x1df   : > { %v2003_v11 = vpop.permute.xlu0 %2002  ;;  %1727 = vst.msk [vmem:[#allocation3 + $0x60] sm:$0xff] %vm1722_vm5, %v1683_v0 }
 0x1e0   : > { %2047 = vst.msk [vmem:[#allocation3 + $0x50] sm:$0xff] %vm1593_vm4, %v2003_v11  ;;  %v388_v11 = vmul.f32 %v5004_v35, %v4907_v49 }
 0x1e2   : > { %v1427_v58 = vpop.permute.xlu1 %1426 }
 0x1e3   : > { %v2131_v34 = vpop.permute.xlu0 %2130  ;;  %1470 = vst.msk [vmem:[#allocation3 + $0x78] sm:$0xff] %vm1464_vm3, %v1427_v58 }
 0x1e4   : > { %2175 = vst.msk [vmem:[#allocation3 + $0x50] sm:$0xff] %vm1722_vm5, %v2131_v34 }
 0x1e6   : > { %v1556_v1 = vpop.permute.xlu1 %1555  ;;  %v2264_v54 = vld [vmem:[#allocation3 + $0x60] sm:$0xff] }
 0x1e7   : > { %v1876_v62 = vpop.permute.xlu0 %1875  ;;  %1599 = vst.msk [vmem:[#allocation3 + $0x78] sm:$0xff] %vm1593_vm4, %v1556_v1  ;;  %v5015_v1 = vld [vmem:[%s4279_s16 + $0x68] sm:$0xff] }
 0x1e8   : > { %1919 = vst.msk [vmem:[#allocation3 + $0x68] sm:$0xff] %vm1464_vm3, %v1876_v62  ;;  %6162 = vst [vmem:[#allocation17_spill] sm:$0xff] %v5015_v1 }
 0x1e9   : > { %2048 = vst.msk [vmem:[#allocation3 + $0x68] sm:$0xff] %vm1593_vm4, %v2005_v28  ;;  %v4990_v28 = vld [vmem:[%s4279_s16 + $0x50] sm:$0xff] }
 0x1ea   : > { %1728 = vst.msk [vmem:[#allocation3 + $0x78] sm:$0xff] %vm1722_vm5, %v1685_v60  ;;  %2176 = vst.msk [vmem:[#allocation3 + $0x68] sm:$0xff] %vm1722_vm5, %v2133_v24  ;;  %v4901_v5 = vpop.permute.xlu1 %1688  ;;  %v386_v60 = vmul.f32 %v4990_v28, %v4907_v49 }
 0x1eb   : > { %v2009_v12 = vpop.permute.xlu0 %2008  ;;  %v2262_v23 = vld [vmem:[#allocation3 + $0x50] sm:$0xff]  ;;  %6159 = vst [vmem:[#allocation14_spill] sm:$0xff] %v4990_v28 }
 0x1ec   : > { %2552 = vmatprep.mubr.bf16.mxu1 %v2262_v23  ;;  %v5022_v23 = vld [vmem:[%s4279_s16 + $0x70] sm:$0xff] }
 0x1ed   : > { %2553 = vmatmul.mubr.bf16.gmra.mrb[28].mxu1 %v2261_v13  ;;  %6163 = vst [vmem:[#allocation18_spill] sm:$0xff] %v5022_v23  ;;  %v390_v13 = vmul.f32 %v5022_v23, %v4907_v49 }
 0x1ee   : > { %v1433_v44 = vpop.permute.xlu1 %1432 }
 0x1ef   : > { %v2137_v16 = vpop.permute.xlu0 %2136  ;;  %1473 = vst.msk [vmem:[#allocation3 + $0xc0] sm:$0xff] %vm1464_vm3, %v1433_v44 }
 0x1f1   : > { %v2265_v47 = vld [vmem:[#allocation3 + $0x68] sm:$0xff]  ;;  %v2267_v30 = vld [vmem:[#allocation3 + $0x78] sm:$0xff] }
 0x1f2   : > { %2560 = vmatprep.mubr.bf16.mxu1 %v2265_v47  ;;  %v1562_v6 = vpop.permute.xlu1 %1561 }
 0x1f3   : > { %v1882_v51 = vpop.permute.xlu0 %1881  ;;  %1602 = vst.msk [vmem:[#allocation3 + $0xc0] sm:$0xff] %vm1593_vm4, %v1562_v6 }
 0x1f4   : > { %1922 = vst.msk [vmem:[#allocation3 + $0xb0] sm:$0xff] %vm1464_vm3, %v1882_v51  ;;  %v4036_v51 = vld [vmem:[%s4279_s16 + $0x78] sm:$0xff] }
 0x1f5   : > { %2051 = vst.msk [vmem:[#allocation3 + $0xb0] sm:$0xff] %vm1593_vm4, %v4817_v43  ;;  %2561 = vmatmul.mubr.bf16.gmra.mrb[32].mxu1 %v2264_v54  ;;  %v378_v43 = vmul.f32 %v4925_v42, %v4907_v49  ;;  %v391_v6 = vmul.f32 %v4036_v51, %v4907_v49  ;;  %v4045_v51 = vld [vmem:[%s4279_s16 + $0xc0] sm:$0xff] }
 0x1f6   : > { %1731 = vst.msk [vmem:[#allocation3 + $0xc0] sm:$0xff] %vm1722_vm5, %v4827_v39  ;;  %2179 = vst.msk [vmem:[#allocation3 + $0xb0] sm:$0xff] %vm1722_vm5, %v4825_v22  ;;  %v1693_v14 = vpop.permute.xlu1 %1692  ;;  %v377_v39 = vmul.f32 %v4930_v46, %v4907_v49 }
 0x1f7   : > { %v2007_v40 = vpop.permute.xlu0 %2006  ;;  %1732 = vst.msk [vmem:[#allocation3 + $0xd8] sm:$0xff] %vm1722_vm5, %v1693_v14 }
 0x1f8   : > { %2049 = vst.msk [vmem:[#allocation3 + $0x80] sm:$0xff] %vm1593_vm4, %v2007_v40  ;;  %408 = vadd.xlane.f32.xlu0 %v376_v37  ;;  %v2277_v37 = vld [vmem:[#allocation3 + $0xc8] sm:$0xff]  ;;  %v4037_v40 = vld [vmem:[%s4279_s16 + $0x80] sm:$0xff] }
 0x1f9   : > { %v392_v14 = vmul.f32 %v4037_v40, %v4907_v49 }
 0x1fa   : > { %v1437_v48 = vpop.permute.xlu1 %1436 }
 0x1fb   : > { %v2135_v22 = vpop.permute.xlu0 %2134  ;;  %1475 = vst.msk [vmem:[#allocation3 + $0xf0] sm:$0xff] %vm1464_vm3, %v1437_v48 }
 0x1fc   : > { %2177 = vst.msk [vmem:[#allocation3 + $0x80] sm:$0xff] %vm1722_vm5, %v2135_v22  ;;  %412 = vadd.xlane.f32.xlu0 %v378_v43  ;;  %410 = vadd.xlane.f32.xlu1 %v377_v39 }
 0x1fd   : > { %v2274_v32 = vld [vmem:[#allocation3 + $0xb0] sm:$0xff] }
 0x1fe   : > { %v1687_v56 = vpop.permute.xlu1 %1686 }
 0x1ff   : > { %v1880_v55 = vpop.permute.xlu0 %1879  ;;  %1729 = vst.msk [vmem:[#allocation3 + $0x90] sm:$0xff] %vm1722_vm5, %v1687_v56  ;;  %v4039_v56 = vld [vmem:[%s4279_s16 + $0x90] sm:$0xff] }
 0x200   : > { %1921 = vst.msk [vmem:[#allocation3 + $0x98] sm:$0xff] %vm1464_vm3, %v1880_v55  ;;  %414 = vadd.xlane.f32.xlu0 %v379_v31  ;;  %416 = vadd.xlane.f32.xlu1 %v380_v33  ;;  %v4038_v33 = vld [vmem:[%s4279_s16 + $0x88] sm:$0xff] }
 0x201   : > { %2050 = vst.msk [vmem:[#allocation3 + $0x98] sm:$0xff] %vm1593_vm4, %v2009_v12  ;;  %v389_v12 = vmul.f32 %v5015_v1, %v4907_v49  ;;  %v393_v55 = vmul.f32 %v4038_v33, %v4907_v49 }
 0x202   : > { %2178 = vst.msk [vmem:[#allocation3 + $0x98] sm:$0xff] %vm1722_vm5, %v2137_v16  ;;  %v1431_v27 = vpop.permute.xlu1 %1430 }
 0x203   : > { %v2143_v61 = vpop.permute.xlu0 %2142  ;;  %v2268_v3 = vld [vmem:[#allocation3 + $0x80] sm:$0xff]  ;;  %1472 = vst.msk [vmem:[#allocation3 + $0xa8] sm:$0xff] %vm1464_vm3, %v1431_v27 }
 0x204   : > { %2181 = vst.msk [vmem:[#allocation3 + $0xe0] sm:$0xff] %vm1722_vm5, %v2143_v61  ;;  %2568 = vmatprep.mubr.bf16.mxu1 %v2268_v3  ;;  %418 = vadd.xlane.f32.xlu0 %v381_v63  ;;  %v394_v63 = vmul.f32 %v4039_v56, %v4907_v49  ;;  %v2276_v3 = vld [vmem:[#allocation3 + $0xc0] sm:$0xff]  ;;  %v4047_v56 = vld [vmem:[%s4279_s16 + $0xd0] sm:$0xff] }
 0x205   : > { %v4967_v4 = vpop.f32.mrb[16].mxu0  ;;  %420 = vadd.xlane.f32.xlu1 %v382_v19  ;;  %2569 = vmatmul.mubr.bf16.gmra.mrb[36].mxu1 %v2267_v30  ;;  %v4040_v30 = vld [vmem:[%s4279_s16 + $0x98] sm:$0xff] }
 0x206   : > { %v4974_v10 = vpop.f32.mrb[17].mxu0  ;;  %v1560_v18 = vpop.permute.xlu1 %1559  ;;  %v2270_v24 = vld [vmem:[#allocation3 + $0x90] sm:$0xff] }
 0x207   : > { %v4976_v2 = vpop.f32.mrb[18].mxu0  ;;  %v1888_v17 = vpop.permute.xlu0 %1887  ;;  %1601 = vst.msk [vmem:[#allocation3 + $0xa8] sm:$0xff] %vm1593_vm4, %v1560_v18  ;;  %v4041_v18 = vld [vmem:[%s4279_s16 + $0xa0] sm:$0xff] }
 0x208   : > { %1925 = vst.msk [vmem:[#allocation3 + $0xf8] sm:$0xff] %vm1464_vm3, %v1888_v17  ;;  %422 = vadd.xlane.f32.xlu0 %v383_v38  ;;  %v4985_v7 = vpop.f32.mrb[19].mxu0  ;;  %v395_v38 = vmul.f32 %v4040_v30, %v4907_v49  ;;  %v4048_v30 = vld [vmem:[%s4279_s16 + $0xd8] sm:$0xff] }
 0x209   : > { %1730 = vst.msk [vmem:[#allocation3 + $0xa8] sm:$0xff] %vm1722_vm5, %v4901_v5  ;;  %424 = vadd.xlane.f32.xlu1 %v384_v20  ;;  %v2271_v26 = vld [vmem:[#allocation3 + $0x98] sm:$0xff] }
 0x20a   : > { %2576 = vmatprep.mubr.bf16.mxu1 %v2271_v26  ;;  %v1566_v29 = vpop.permute.xlu1 %1565 }
 0x20b   : > { %v2017_v25 = vpop.permute.xlu0 %2016  ;;  %1604 = vst.msk [vmem:[#allocation3 + $0xf0] sm:$0xff] %vm1593_vm4, %v1566_v29  ;;  %v2280_v20 = vld [vmem:[#allocation3 + $0xe0] sm:$0xff] }
 0x20c   : > { %2054 = vst.msk [vmem:[#allocation3 + $0xf8] sm:$0xff] %vm1593_vm4, %v2017_v25  ;;  %426 = vadd.xlane.f32.xlu0 %v385_v21  ;;  %v396_v21 = vmul.f32 %v4041_v18, %v4907_v49 }
 0x20d   : > { %428 = vadd.xlane.f32.xlu1 %v386_v60  ;;  %2577 = vmatmul.mubr.bf16.gmra.mrb[40].mxu1 %v2270_v24  ;;  %v4042_v24 = vld [vmem:[%s4279_s16 + $0xa8] sm:$0xff] }
 0x20e   : > { %v5001_v53 = vpop.f32.mrb[20].mxu0  ;;  %2584 = vmatprep.mubr.bf16.mxu1 %v2274_v32  ;;  %v1695_v62 = vpop.permute.xlu1 %1694  ;;  %v4043_v32 = vld [vmem:[%s4279_s16 + $0xb0] sm:$0xff] }
 0x20f   : > { %v5008_v0 = vpop.f32.mrb[21].mxu0  ;;  %v2145_v58 = vpop.permute.xlu0 %2144  ;;  %1733 = vst.msk [vmem:[#allocation3 + $0xf0] sm:$0xff] %vm1722_vm5, %v1695_v62 }
 0x210   : > { %v5010_v34 = vpop.f32.mrb[22].mxu0  ;;  %2182 = vst.msk [vmem:[#allocation3 + $0xf8] sm:$0xff] %vm1722_vm5, %v2145_v58  ;;  %430 = vadd.xlane.f32.xlu0 %v387_v57  ;;  %v2273_v47 = vld [vmem:[#allocation3 + $0xa8] sm:$0xff]  ;;  %v397_v57 = vmul.f32 %v4042_v24, %v4907_v49 }
 0x211   : > { %v5019_v5 = vpop.f32.mrb[23].mxu0  ;;  %432 = vadd.xlane.f32.xlu1 %v388_v11  ;;  %v398_v11 = vmul.f32 %v4043_v32, %v4907_v49 }
 0x212   : > { %v1439_v44 = vpop.permute.xlu1 %1438 }
 0x213   : > { %v1890_v16 = vpop.permute.xlu0 %1889  ;;  %1476 = vst.msk [vmem:[#allocation3 + $0x108] sm:$0xff] %vm1464_vm3, %v1439_v44 }
 0x214   : > { %1926 = vst.msk [vmem:[#allocation3 + $0x110] sm:$0xff] %vm1464_vm3, %v1890_v16  ;;  %434 = vadd.xlane.f32.xlu0 %v389_v12  ;;  %v2279_v12 = vld [vmem:[#allocation3 + $0xd8] sm:$0xff] }
 0x215   : > { %436 = vadd.xlane.f32.xlu1 %v390_v13  ;;  %2585 = vmatmul.mubr.bf16.gmra.mrb[44].mxu1 %v2273_v47  ;;  %v4044_v13 = vld [vmem:[%s4279_s16 + $0xb8] sm:$0xff] }
 0x216   : > { %2592 = vmatprep.mubr.bf16.mxu1 %v2277_v37  ;;  %v1568_v48 = vpop.permute.xlu1 %1567  ;;  %v399_v16 = vmul.f32 %v4044_v13, %v4907_v49 }
 0x217   : > { %v2019_v22 = vpop.permute.xlu0 %2018  ;;  %1605 = vst.msk [vmem:[#allocation3 + $0x108] sm:$0xff] %vm1593_vm4, %v1568_v48  ;;  %v2283_v47 = vld [vmem:[#allocation3 + $0xf8] sm:$0xff]  ;;  %v4046_v48 = vld [vmem:[%s4279_s16 + $0xc8] sm:$0xff] }
 0x218   : > { %2055 = vst.msk [vmem:[#allocation3 + $0x110] sm:$0xff] %vm1593_vm4, %v2019_v22  ;;  %438 = vadd.xlane.f32.xlu0 %v391_v6  ;;  %v400_v6 = vmul.f32 %v4045_v51, %v4907_v49  ;;  %v401_v33 = vmul.f32 %v4046_v48, %v4907_v49 }
 0x219   : > { %v5030_v54 = vpop.f32.mrb[24].mxu0  ;;  %440 = vadd.xlane.f32.xlu1 %v392_v14 }
 0x21a   : > { %v5034_v43 = vpop.f32.mrb[25].mxu0  ;;  %v1697_v61 = vpop.permute.xlu1 %1696 }
 0x21b   : > { %v5036_v39 = vpop.f32.mrb[26].mxu0  ;;  %v2147_v19 = vpop.permute.xlu0 %2146  ;;  %1734 = vst.msk [vmem:[#allocation3 + $0x108] sm:$0xff] %vm1722_vm5, %v1697_v61 }
 0x21c   : > { %v5040_v31 = vpop.f32.mrb[27].mxu0  ;;  %2183 = vst.msk [vmem:[#allocation3 + $0x110] sm:$0xff] %vm1722_vm5, %v2147_v19  ;;  %442 = vadd.xlane.f32.xlu0 %v393_v55 }
 0x21d   : > { %444 = vadd.xlane.f32.xlu1 %v394_v63  ;;  %2593 = vmatmul.mubr.bf16.gmra.mrb[48].mxu1 %v2276_v3  ;;  %v402_v63 = vmul.f32 %v4047_v56, %v4907_v49  ;;  %v2282_v3 = vld [vmem:[#allocation3 + $0xf0] sm:$0xff] }
 0x21e   : > { %2600 = vmatprep.mubr.bf16.mxu1 %v2280_v20  ;;  %v1441_v25 = vpop.permute.xlu1 %1440 }
 0x21f   : > { %v1892_v60 = vpop.permute.xlu0 %1891  ;;  %1477 = vst.msk [vmem:[#allocation3 + $0x120] sm:$0xff] %vm1464_vm3, %v1441_v25 }
 0x220   : > { %1927 = vst.msk [vmem:[#allocation3 + $0x128] sm:$0xff] %vm1464_vm3, %v1892_v60  ;;  %446 = vadd.xlane.f32.xlu0 %v395_v38  ;;  %v403_v38 = vmul.f32 %v4048_v30, %v4907_v49 }
 0x221   : > { %v5048_v27 = vpop.f32.mrb[28].mxu0  ;;  %448 = vadd.xlane.f32.xlu1 %v396_v21  ;;  %v4049_v21 = vld [vmem:[%s4279_s16 + $0xe0] sm:$0xff] }
 0x222   : > { %6164 = vst [vmem:[#allocation19_spill] sm:$0xff] %v5048_v27  ;;  %v5052_v17 = vpop.f32.mrb[29].mxu0  ;;  %v1570_v62 = vpop.permute.xlu1 %1569  ;;  %v404_v60 = vmul.f32 %v4049_v21, %v4907_v49 }
 0x223   : > { %6165 = vst [vmem:[#allocation20_spill] sm:$0xff] %v5052_v17  ;;  %v5056_v26 = vpop.f32.mrb[30].mxu0  ;;  %v2021_v58 = vpop.permute.xlu0 %2020  ;;  %1606 = vst.msk [vmem:[#allocation3 + $0x120] sm:$0xff] %vm1593_vm4, %v1570_v62  ;;  %v2286_v18 = vld [vmem:[#allocation3 + $0x110] sm:$0xff] }
 0x224   : > { %6166 = vst [vmem:[#allocation21_spill] sm:$0xff] %v5056_v26  ;;  %v5060_v29 = vpop.f32.mrb[31].mxu0  ;;  %2056 = vst.msk [vmem:[#allocation3 + $0x128] sm:$0xff] %vm1593_vm4, %v2021_v58  ;;  %450 = vadd.xlane.f32.xlu0 %v397_v57 }
 0x225   : > { %6167 = vst [vmem:[#allocation22_spill] sm:$0xff] %v5060_v29  ;;  %452 = vadd.xlane.f32.xlu1 %v398_v11  ;;  %2601 = vmatmul.mubr.bf16.gmra.mrb[52].mxu1 %v2279_v12  ;;  %v4050_v11 = vld [vmem:[%s4279_s16 + $0xe8] sm:$0xff]  ;;  %v4051_v12 = vld [vmem:[%s4279_s16 + $0xf0] sm:$0xff] }
 0x226   : > { %2608 = vmatprep.mubr.bf16.mxu1 %v2283_v47  ;;  %v1699_v22 = vpop.permute.xlu1 %1698  ;;  %v405_v58 = vmul.f32 %v4050_v11, %v4907_v49  ;;  %v406_v13 = vmul.f32 %v4051_v12, %v4907_v49 }
 0x227   : > { %v2149_v14 = vpop.permute.xlu0 %2148  ;;  %1735 = vst.msk [vmem:[#allocation3 + $0x120] sm:$0xff] %vm1722_vm5, %v1699_v22 }
 0x228   : > { %2184 = vst.msk [vmem:[#allocation3 + $0x128] sm:$0xff] %vm1722_vm5, %v2149_v14  ;;  %454 = vadd.xlane.f32.xlu0 %v399_v16  ;;  %v3947_v16 = vld [vmem:[%s6134_s6] sm:$0xff]   ;;  %v4052_v14 = vld [vmem:[%s4279_s16 + $0xf8] sm:$0xff] }
 0x229   : > { %v5070_v44 = vpop.f32.mrb[32].mxu0  ;;  %456 = vadd.xlane.f32.xlu1 %v400_v6  ;;  %3824 = vmatprep.subr.bf16.mxu0 %v3947_v16  ;;  %v2285_v6 = vld [vmem:[#allocation3 + $0x108] sm:$0xff]  ;;  %v407_v22 = vmul.f32 %v4052_v14, %v4907_v49 }
 0x22a   : > { %6168 = vst [vmem:[#allocation23_spill] sm:$0xff] %v5070_v44  ;;  %v5074_v37 = vpop.f32.mrb[33].mxu0  ;;  %v1443_v61 = vpop.permute.xlu1 %1442  ;;  %3825 = vmatpush3.bf16.msra.mxu0 %v3947_v16 }
 0x22b   : > { %6169 = vst [vmem:[#allocation24_spill] sm:$0xff] %v5074_v37  ;;  %v5076_v40 = vpop.f32.mrb[34].mxu0  ;;  %v1894_v19 = vpop.permute.xlu0 %1893  ;;  %1478 = vst.msk [vmem:[#allocation3 + $0x138] sm:$0xff] %vm1464_vm3, %v1443_v61 }
 0x22c   : > { %6170 = vst [vmem:[#allocation25_spill] sm:$0xff] %v5076_v40  ;;  %v5082_v55 = vpop.f32.mrb[35].mxu0  ;;  %1928 = vst.msk [vmem:[#allocation3 + $0x140] sm:$0xff] %vm1464_vm3, %v1894_v19  ;;  %458 = vadd.xlane.f32.xlu0 %v401_v33 }
 0x22d   : > { %6171 = vst [vmem:[#allocation26_spill] sm:$0xff] %v5082_v55  ;;  %460 = vadd.xlane.f32.xlu1 %v402_v63  ;;  %2609 = vmatmul.mubr.bf16.gmra.mrb[56].mxu1 %v2282_v3  ;;  %v3948_v63 = vld [vmem:[%s6134_s6 + $0x8] sm:$0xff]  }
 0x22e   : > { %2616 = vmatprep.mubr.bf16.mxu1 %v2286_v18  ;;  %v1572_v32 = vpop.permute.xlu1 %1571  ;;  %3826 = vmatprep.subr.bf16.mxu0 %v3948_v63  ;;  %v2288_v18 = vld [vmem:[#allocation3 + $0x120] sm:$0xff] }
 0x22f   : > { %v2025_v57 = vpop.permute.xlu0 %2024  ;;  %1607 = vst.msk [vmem:[#allocation3 + $0x138] sm:$0xff] %vm1593_vm4, %v1572_v32  ;;  %v2289_v33 = vld [vmem:[#allocation3 + $0x128] sm:$0xff]  ;;  %3827 = vmatpush3.bf16.msra.mxu0 %v3948_v63 }
 0x230   : > { %462 = vadd.xlane.f32.xlu0 %v403_v38 }
 0x231   : > { %v5090_v20 = vpop.f32.mrb[36].mxu0  ;;  %464 = vadd.xlane.f32.xlu1 %v404_v60 }
 0x232   : > { %6172 = vst [vmem:[#allocation27_spill] sm:$0xff] %v5090_v20  ;;  %v5094_v25 = vpop.f32.mrb[37].mxu0  ;;  %v1701_v51 = vpop.permute.xlu1 %1700 }
 0x233   : > { %6173 = vst [vmem:[#allocation28_spill] sm:$0xff] %v5094_v25  ;;  %v5096_v24 = vpop.f32.mrb[38].mxu0  ;;  %v2153_v47 = vpop.permute.xlu0 %2152  ;;  %1736 = vst.msk [vmem:[#allocation3 + $0x138] sm:$0xff] %vm1722_vm5, %v1701_v51 }
 0x234   : > { %6174 = vst [vmem:[#allocation29_spill] sm:$0xff] %v5096_v24  ;;  %v5101_v62 = vpop.f32.mrb[39].mxu0  ;;  %466 = vadd.xlane.f32.xlu0 %v405_v58 }
 0x235   : > { %6175 = vst [vmem:[#allocation30_spill] sm:$0xff] %v5101_v62  ;;  %468 = vadd.xlane.f32.xlu1 %v406_v13  ;;  %2617 = vmatmul.mubr.bf16.gmra.mrb[60].mxu1 %v2285_v6 }
 0x236   : > { %2624 = vmatprep.mubr.bf16.mxu1 %v2289_v33  ;;  %v1445_v3 = vpop.permute.xlu1 %1444 }
 0x237   : > { %v2023_v61 = vpop.permute.xlu0 %2022  ;;  %1479 = vst.msk [vmem:[#allocation3 + $0x150] sm:$0xff] %vm1464_vm3, %v1445_v3 }
 0x238   : > { %2057 = vst.msk [vmem:[#allocation3 + $0x140] sm:$0xff] %vm1593_vm4, %v2023_v61  ;;  %470 = vadd.xlane.f32.xlu0 %v407_v22  ;;  %v5141_v61 = vld [vmem:[%s6129_s1 + $0x7] ss:$0 sm:$0xff] }
 0x239   : > { %v5111_v48 = vpop.f32.mrb[40].mxu0 }
 0x23a   : > { %6176 = vst [vmem:[#allocation31_spill] sm:$0xff] %v5111_v48  ;;  %v5113_v56 = vpop.f32.mrb[41].mxu0  ;;  %v1574_v38 = vpop.permute.xlu1 %1573  ;;  %v2291_v12 = vld [vmem:[#allocation3 + $0x138] sm:$0xff] }
 0x23b   : > { %6177 = vst [vmem:[#allocation32_spill] sm:$0xff] %v5113_v56  ;;  %v5118_v19 = vpop.f32.mrb[42].mxu0  ;;  %v2151_v30 = vpop.permute.xlu0 %2150  ;;  %1608 = vst.msk [vmem:[#allocation3 + $0x150] sm:$0xff] %vm1593_vm4, %v1574_v38 }
 0x23c   : > { %6178 = vst [vmem:[#allocation33_spill] sm:$0xff] %v5118_v19  ;;  %v5122_v49 = vpop.f32.mrb[43].mxu0  ;;  %2185 = vst.msk [vmem:[#allocation3 + $0x140] sm:$0xff] %vm1722_vm5, %v2151_v30 }
 0x23d   : > { %6179 = vst [vmem:[#allocation34_spill] sm:$0xff] %v5122_v49  ;;  %2625 = vmatmul.mubr.bf16.gmra.mrb[64].mxu1 %v2288_v18 }
 0x23e   : > { %v1703_v60 = vpop.permute.xlu1 %1702 }
 0x23f   : > { %v1896_v21 = vpop.permute.xlu0 %1895  ;;  %1737 = vst.msk [vmem:[#allocation3 + $0x150] sm:$0xff] %vm1722_vm5, %v1703_v60 }
 0x240   : > { %1929 = vst.msk [vmem:[#allocation3 + $0x158] sm:$0xff] %vm1464_vm3, %v1896_v21 }
 0x241   : > { %2058 = vst.msk [vmem:[#allocation3 + $0x158] sm:$0xff] %vm1593_vm4, %v2025_v57 }
 0x242   : > { %2186 = vst.msk [vmem:[#allocation3 + $0x158] sm:$0xff] %vm1722_vm5, %v2153_v47  ;;  %v1447_v11 = vpop.permute.xlu1 %1446 }
 0x243   : > { %v1898_v32 = vpop.permute.xlu0 %1897  ;;  %v2292_v58 = vld [vmem:[#allocation3 + $0x140] sm:$0xff]  ;;  %1480 = vst.msk [vmem:[#allocation3 + $0x168] sm:$0xff] %vm1464_vm3, %v1447_v11 }
 0x244   : > { %1930 = vst.msk [vmem:[#allocation3 + $0x170] sm:$0xff] %vm1464_vm3, %v1898_v32  ;;  %2632 = vmatprep.mubr.bf16.mxu1 %v2292_v58 }
 0x245   : > { %2633 = vmatmul.mubr.bf16.gmra.mrb[68].mxu1 %v2291_v12 }
 0x246   : > { %v1576_v16 = vpop.permute.xlu1 %1575  ;;  %v2294_v6 = vld [vmem:[#allocation3 + $0x150] sm:$0xff] }
 0x247   : > { %v2027_v13 = vpop.permute.xlu0 %2026  ;;  %1609 = vst.msk [vmem:[#allocation3 + $0x168] sm:$0xff] %vm1593_vm4, %v1576_v16 }
 0x248   : > { %2059 = vst.msk [vmem:[#allocation3 + $0x170] sm:$0xff] %vm1593_vm4, %v2027_v13 }
 0x249   : > { %v2295_v51 = vld [vmem:[#allocation3 + $0x158] sm:$0xff] }
 0x24a   : > { %2640 = vmatprep.mubr.bf16.mxu1 %v2295_v51  ;;  %v1705_v47 = vpop.permute.xlu1 %1704 }
 0x24b   : > { %v2155_v57 = vpop.permute.xlu0 %2154  ;;  %1738 = vst.msk [vmem:[#allocation3 + $0x168] sm:$0xff] %vm1722_vm5, %v1705_v47 }
 0x24c   : > { %2187 = vst.msk [vmem:[#allocation3 + $0x170] sm:$0xff] %vm1722_vm5, %v2155_v57 }
 0x24d   : > { %2641 = vmatmul.mubr.bf16.gmra.mrb[72].mxu1 %v2294_v6 }
 0x252   : > { %v2297_v22 = vld [vmem:[#allocation3 + $0x168] sm:$0xff] }
 0x253   : > { %v2298_v14 = vld [vmem:[#allocation3 + $0x170] sm:$0xff] }
 0x254   : > { %2648 = vmatprep.mubr.bf16.mxu1 %v2298_v14 }
 0x255   : > { %2649 = vmatmul.mubr.bf16.gmra.mrb[76].mxu1 %v2297_v22 }
 0x285   : > { %v5136_v33 = vpop.xlane.xlu0 %408 }
 0x286   : > { %v3608_v63 = vpop.f32.mrb[16].mxu1 }
 0x287   : > { %v3609_v3 = vpop.f32.mrb[17].mxu1 }
 0x288   : > { %v3610_v30 = vadd.f32 %v3609_v3, %v3608_v63  ;;  %v3611_v38 = vpop.f32.mrb[18].mxu1 }
 0x289   : > { %v3612_v18 = vpop.f32.mrb[19].mxu1  ;;  %v5143_v21 = vpop.xlane.xlu0 %412 }
 0x28a   : > { %v2531_v60 = vadd.f32 %v3610_v30, %v5141_v61  ;;  %v3613_v32 = vadd.f32 %v3612_v18, %v3611_v38  ;;  %v5146_v11 = vpop.xlane.xlu1 %410 }
 0x28c   : > { %v2692_v58 = vadd.f32 %v4974_v10, %v2531_v60  ;;  %v2534_v12 = vadd.f32 %v3613_v32, %v5141_v61 }
 0x28d   : > { %v5150_v13 = vpop.xlane.xlu0 %414 }
 0x28e   : > { %v2695_v16 = vadd.f32 %v4985_v7, %v2534_v12  ;;  %v5153_v51 = vpop.xlane.xlu1 %416  ;;  %v2818_v57 = vmax.f32 %v2692_v58, 0.0 }
 0x290   : > { %v2819_v47 = vmax.f32 %v2695_v16, 0.0 }
 0x291   : > { %v5155_v6 = vpop.xlane.xlu0 %418 }
 0x292   : > { %v2850_v14 = vpack.c.bf16 %v2819_v47, %v2818_v57  ;;  %v5157_v22 = vpop.xlane.xlu1 %420 }
 0x294   : > { %3828 = vmatprep.mubr.msk.bf16.mxu0 %vm808_vm0, %v2850_v14 }
 0x295   : > { %v5160_v63 = vpop.xlane.xlu0 %422 }
 0x296   : > { %v5162_v10 = vpop.xlane.xlu1 %424 }
 0x299   : > { %v5164_v3 = vpop.xlane.xlu0 %426 }
 0x29a   : > { %v5166_v30 = vpop.xlane.xlu1 %428 }
 0x29d   : > { %v5168_v7 = vpop.xlane.xlu0 %430 }
 0x29e   : > { %v5170_v38 = vpop.xlane.xlu1 %432 }
 0x2a1   : > { %v5172_v18 = vpop.xlane.xlu0 %434 }
 0x2a2   : > { %v5174_v60 = vpop.xlane.xlu1 %436 }
 0x2a4   : > { %v3614_v32 = vpop.f32.mrb[20].mxu1 }
 0x2a5   : > { %v5176_v58 = vpop.xlane.xlu0 %438  ;;  %v3615_v12 = vpop.f32.mrb[21].mxu1 }
 0x2a6   : > { %v5178_v16 = vpop.xlane.xlu1 %440  ;;  %v3616_v57 = vadd.f32 %v3615_v12, %v3614_v32  ;;  %v3617_v47 = vpop.f32.mrb[22].mxu1 }
 0x2a7   : > { %v3618_v14 = vpop.f32.mrb[23].mxu1  ;;  %v5245_v45 = vpop.f32.mrb[44].mxu0 }
 0x2a8   : > { %v2539_v19 = vadd.f32 %v3616_v57, %v5141_v61  ;;  %v3619_v48 = vadd.f32 %v3618_v14, %v3617_v47  ;;  %6180 = vst [vmem:[#allocation35_spill] sm:$0xff] %v5245_v45  ;;  %v5250_v59 = vpop.f32.mrb[45].mxu0 }
 0x2a9   : > { %v5181_v49 = vpop.xlane.xlu0 %442  ;;  %6181 = vst [vmem:[#allocation36_spill] sm:$0xff] %v5250_v59 }
 0x2aa   : > { %v5183_v56 = vpop.xlane.xlu1 %444  ;;  %v2700_v24 = vadd.f32 %v4967_v4, %v2539_v19  ;;  %v2542_v20 = vadd.f32 %v3619_v48, %v5141_v61  ;;  %v473_v19 = vmax.f32 %v5146_v11, %v5155_v6 }
 0x2ac   : > { %v2703_v62 = vadd.f32 %v4976_v2, %v2542_v20  ;;  %v3620_v25 = vpop.f32.mrb[24].mxu1  ;;  %v2820_v12 = vmax.f32 %v2700_v24, 0.0 }
 0x2ad   : > { %v5188_v40 = vpop.xlane.xlu0 %446  ;;  %v3621_v44 = vpop.f32.mrb[25].mxu1 }
 0x2ae   : > { %v5190_v32 = vpop.xlane.xlu1 %448  ;;  %v2821_v23 = vmax.f32 %v2703_v62, 0.0  ;;  %v3622_v57 = vadd.f32 %v3621_v44, %v3620_v25  ;;  %v3623_v47 = vpop.f32.mrb[26].mxu1 }
 0x2af   : > { %v3624_v14 = vpop.f32.mrb[27].mxu1 }
 0x2b0   : > { %v2851_v55 = vpack.c.bf16 %v2821_v23, %v2820_v12  ;;  %v2547_v1 = vadd.f32 %v3622_v57, %v5141_v61  ;;  %v3625_v35 = vadd.f32 %v3624_v14, %v3623_v47  ;;  %v472_v12 = vmax.f32 %v5136_v33, %v5153_v51 }
 0x2b1   : > { %v5193_v4 = vpop.xlane.xlu0 %450 }
 0x2b2   : > { %v5195_v48 = vpop.xlane.xlu1 %452  ;;  %v2708_v2 = vadd.f32 %v5008_v0, %v2547_v1  ;;  %v2550_v20 = vadd.f32 %v3625_v35, %v5141_v61  ;;  %3829 = vmatmul.mubr.msk.bf16.vlgmr.msra.gmra.mrb[48].mxu0 %vm808_vm0, %v2851_v55  ;;  %v474_v0 = vmax.f32 %v5143_v21, %v5157_v22  ;;  %v477_v55 = vmax.f32 %v473_v19, %v5164_v3 }
 0x2b3   : > { %v476_v47 = vmax.f32 %v472_v12, %v5162_v10 }
 0x2b4   : > { %v2711_v24 = vadd.f32 %v5019_v5, %v2550_v20  ;;  %v2822_v23 = vmax.f32 %v2708_v2, 0.0  ;;  %v475_v5 = vmax.f32 %v5150_v13, %v5160_v63  ;;  %v478_v14 = vmax.f32 %v474_v0, %v5166_v30 }
 0x2b5   : > { %v5201_v62 = vpop.xlane.xlu0 %454  ;;  %v481_v20 = vmax.f32 %v477_v55, %v5172_v18 }
 0x2b6   : > { %v5203_v44 = vpop.xlane.xlu1 %456  ;;  %v2823_v25 = vmax.f32 %v2711_v24, 0.0  ;;  %v479_v2 = vmax.f32 %v475_v5, %v5168_v7  ;;  %v480_v24 = vmax.f32 %v476_v47, %v5170_v38 }
 0x2b7   : > { %v485_v8 = vmax.f32 %v481_v20, %v5181_v49 }
 0x2b8   : > { %v2852_v35 = vpack.c.bf16 %v2823_v25, %v2822_v23  ;;  %v482_v23 = vmax.f32 %v478_v14, %v5174_v60  ;;  %v483_v19 = vmax.f32 %v479_v2, %v5176_v58  ;;  %v484_v12 = vmax.f32 %v480_v24, %v5178_v16 }
 0x2b9   : > { %v5211_v1 = vpop.xlane.xlu0 %458  ;;  %v489_v5 = vmax.f32 %v485_v8, %v5193_v4 }
 0x2ba   : > { %v5216_v57 = vpop.xlane.xlu1 %460  ;;  %3832 = vmatprep.mubr.msk.bf16.mxu0 %vm808_vm0, %v2852_v35  ;;  %v486_v0 = vmax.f32 %v482_v23, %v5183_v56  ;;  %v487_v35 = vmax.f32 %v483_v19, %v5188_v40  ;;  %v488_v47 = vmax.f32 %v484_v12, %v5190_v32 }
 0x2bb   : > { %v493_v20 = vmax.f32 %v489_v5, %v5211_v1 }
 0x2bc   : > { %v490_v14 = vmax.f32 %v486_v0, %v5195_v48  ;;  %v491_v2 = vmax.f32 %v487_v35, %v5201_v62  ;;  %v492_v19 = vmax.f32 %v488_v47, %v5203_v44 }
 0x2bd   : > { %v5225_v25 = vpop.xlane.xlu0 %462 }
 0x2be   : > { %v5229_v37 = vpop.xlane.xlu1 %464  ;;  %v494_v8 = vmax.f32 %v490_v14, %v5216_v57  ;;  %v495_v12 = vmax.f32 %v491_v2, %v5225_v25 }
 0x2c0   : > { %v3626_v55 = vpop.f32.mrb[28].mxu1 }
 0x2c1   : > { %v3627_v26 = vpop.f32.mrb[29].mxu1  ;;  %v5237_v28 = vpop.xlane.xlu0 %466 }
 0x2c2   : > { %v3628_v52 = vadd.f32 %v3627_v26, %v3626_v55  ;;  %v5241_v24 = vpop.xlane.xlu1 %468  ;;  %v3629_v23 = vpop.f32.mrb[30].mxu1  ;;  %v497_v27 = vmax.f32 %v493_v20, %v5237_v28  ;;  %v496_v26 = vmax.f32 %v492_v19, %v5229_v37 }
 0x2c3   : > { %v3630_v9 = vpop.f32.mrb[31].mxu1  ;;  %v5255_v55 = vpop.f32.mrb[46].mxu0  ;;  %v498_v14 = vmax.f32 %v494_v8, %v5241_v24 }
 0x2c4   : > { %v2555_v0 = vadd.f32 %v3628_v52, %v5141_v61  ;;  %v3631_v35 = vadd.f32 %v3630_v9, %v3629_v23  ;;  %6182 = vst [vmem:[#allocation37_spill] sm:$0xff] %v5255_v55  ;;  %v5261_v52 = vpop.f32.mrb[47].mxu0  ;;  %v500_v20 = vmax.f32 %v496_v26, %v497_v27 }
 0x2c5   : > { %v5253_v5 = vpop.xlane.xlu0 %470  ;;  %6183 = vst [vmem:[#allocation38_spill] sm:$0xff] %v5261_v52 }
 0x2c6   : > { %v2716_v47 = vadd.f32 %v5001_v53, %v2555_v0  ;;  %v2558_v45 = vadd.f32 %v3631_v35, %v5141_v61  ;;  %v499_v2 = vmax.f32 %v495_v12, %v5253_v5 }
 0x2c8   : > { %v2719_v9 = vadd.f32 %v5010_v34, %v2558_v45  ;;  %v501_v23 = vmax.f32 %v498_v14, %v499_v2  ;;  %v3632_v59 = vpop.f32.mrb[32].mxu1  ;;  %v2824_v29 = vmax.f32 %v2716_v47, 0.0 }
 0x2c9   : > { %v3633_v19 = vpop.f32.mrb[33].mxu1 }
 0x2ca   : > { %v2825_v41 = vmax.f32 %v2719_v9, 0.0  ;;  %v502_v50 = vmax.f32 %v500_v20, %v501_v23  ;;  %v3634_v55 = vadd.f32 %v3633_v19, %v3632_v59  ;;  %v3635_v15 = vpop.f32.mrb[34].mxu1 }
 0x2cb   : > { %v3636_v53 = vpop.f32.mrb[35].mxu1 }
 0x2cc   : > { %v2853_v0 = vpack.c.bf16 %v2825_v41, %v2824_v29  ;;  %v503_v8 = vrot.slane %v502_v50, 4  ;;  %v2563_v35 = vadd.f32 %v3634_v55, %v5141_v61  ;;  %v3637_v17 = vadd.f32 %v3636_v53, %v3635_v15 }
 0x2ce   : > { %v504_v12 = vmax.f32 %v502_v50, %v503_v8  ;;  %v2724_v52 = vadd.f32 %v5034_v43, %v2563_v35  ;;  %v2566_v27 = vadd.f32 %v3637_v17, %v5141_v61  ;;  %3833 = vmatmul.mubr.msk.bf16.gmra.mrb[52].mxu0 %vm808_vm0, %v2853_v0 }
 0x2d0   : > { %v505_v45 = vrot.slane %v504_v12, 2  ;;  %v2727_v34 = vadd.f32 %v5040_v31, %v2566_v27  ;;  %v2826_v47 = vmax.f32 %v2724_v52, 0.0 }
 0x2d2   : > { %v506_v26 = vmax.f32 %v504_v12, %v505_v45  ;;  %v2827_v59 = vmax.f32 %v2727_v34, 0.0 }
 0x2d4   : > { %v507_v14 = vrot.slane %v506_v26, 1  ;;  %v2854_v2 = vpack.c.bf16 %v2827_v59, %v2826_v47 }
 0x2d6   : > { %3836 = vmatprep.mubr.msk.bf16.mxu0 %vm808_vm0, %v2854_v2  ;;  %v5270_v41 = vmax.f32 %v506_v26, %v507_v14 }
 0x2d8   : > { %v3638_v15 = vpop.f32.mrb[36].mxu1  ;;  %v509_v17 = vsub.f32 %v5136_v33, %v5270_v41  ;;  %v510_v55 = vsub.f32 %v5146_v11, %v5270_v41  ;;  %v511_v31 = vsub.f32 %v5143_v21, %v5270_v41  ;;  %v512_v52 = vsub.f32 %v5150_v13, %v5270_v41 }
 0x2d9   : > { %v3639_v50 = vpop.f32.mrb[37].mxu1  ;;  %v513_v20 = vsub.f32 %v5153_v51, %v5270_v41  ;;  %v514_v0 = vsub.f32 %v5155_v6, %v5270_v41  ;;  %v515_v11 = vsub.f32 %v5157_v22, %v5270_v41  ;;  %v516_v21 = vsub.f32 %v5160_v63, %v5270_v41 }
 0x2da   : > { %v3641_v29 = vpop.f32.mrb[38].mxu1  ;;  %v541_v9 = vmul.f32 1.442695, %v509_v17  ;;  %v543_v23 = vmul.f32 1.442695, %v510_v55  ;;  %v3640_v53 = vadd.f32 %v3639_v50, %v3638_v15  ;;  %v517_v13 = vsub.f32 %v5162_v10, %v5270_v41 }
 0x2db   : > { %v3642_v43 = vpop.f32.mrb[39].mxu1  ;;  %v545_v19 = vmul.f32 1.442695, %v511_v31  ;;  %v547_v33 = vmul.f32 1.442695, %v512_v52  ;;  %v518_v51 = vsub.f32 %v5164_v3, %v5270_v41  ;;  %v519_v6 = vsub.f32 %v5166_v30, %v5270_v41 }
 0x2dc   : > { %v3643_v8 = vadd.f32 %v3642_v43, %v3641_v29  ;;  %3949 = vpow2.f32 %v541_v9  ;;  %v549_v35 = vmul.f32 1.442695, %v513_v20  ;;  %v520_v12 = vsub.f32 %v5168_v7, %v5270_v41 }
 0x2dd   : > { %3951 = vpow2.f32 %v543_v23  ;;  %v521_v22 = vsub.f32 %v5170_v38, %v5270_v41  ;;  %v522_v63 = vsub.f32 %v5172_v18, %v5270_v41  ;;  %v523_v10 = vsub.f32 %v5174_v60, %v5270_v41 }
 0x2de   : > { %3953 = vpow2.f32 %v545_v19  ;;  %v551_v3 = vmul.f32 1.442695, %v514_v0  ;;  %v524_v27 = vsub.f32 %v5176_v58, %v5270_v41  ;;  %v525_v30 = vsub.f32 %v5178_v16, %v5270_v41 }
 0x2df   : > { %3955 = vpow2.f32 %v547_v33  ;;  %v526_v7 = vsub.f32 %v5181_v49, %v5270_v41  ;;  %v527_v38 = vsub.f32 %v5183_v56, %v5270_v41  ;;  %v528_v18 = vsub.f32 %v5188_v40, %v5270_v41 }
 0x2e0   : > { %v529_v60 = vsub.f32 %v5190_v32, %v5270_v41  ;;  %3957 = vpow2.f32 %v549_v35  ;;  %v553_v45 = vmul.f32 1.442695, %v515_v11  ;;  %v530_v58 = vsub.f32 %v5193_v4, %v5270_v41  ;;  %v3644_v17 = vpop.f32.mrb[40].mxu1  ;;  %v6189_v32 = vld [vmem:[#allocation10_spill] sm:$0xff] }
 0x2e1   : > { %v531_v34 = vsub.f32 %v5195_v48, %v5270_v41  ;;  %v532_v26 = vsub.f32 %v5201_v62, %v5270_v41  ;;  %v533_v47 = vsub.f32 %v5203_v44, %v5270_v41  ;;  %3959 = vpow2.f32 %v551_v3  ;;  %v3645_v20 = vpop.f32.mrb[41].mxu1 }
 0x2e2   : > { %v555_v2 = vmul.f32 1.442695, %v516_v21  ;;  %v2571_v43 = vadd.f32 %v3640_v53, %v5141_v61  ;;  %3961 = vpow2.f32 %v553_v45  ;;  %v557_v31 = vmul.f32 1.442695, %v517_v13  ;;  %v3647_v11 = vpop.f32.mrb[42].mxu1 }
 0x2e3   : > { %v2574_v52 = vadd.f32 %v3643_v8, %v5141_v61  ;;  %v559_v19 = vmul.f32 1.442695, %v518_v51  ;;  %v3646_v33 = vadd.f32 %v3645_v20, %v3644_v17  ;;  %v561_v53 = vmul.f32 1.442695, %v519_v6  ;;  %v3648_v13 = vpop.f32.mrb[43].mxu1 }
 0x2e4   : > { %v2732_v0 = vadd.f32 %v5030_v54, %v2571_v43  ;;  %3963 = vpow2.f32 %v555_v2  ;;  %v563_v8 = vmul.f32 1.442695, %v520_v12  ;;  %v565_v55 = vmul.f32 1.442695, %v521_v22 }
 0x2e5   : > { %v2735_v3 = vadd.f32 %v5036_v39, %v2574_v52  ;;  %3965 = vpow2.f32 %v557_v31  ;;  %v2579_v17 = vadd.f32 %v3646_v33, %v5141_v61  ;;  %v567_v6 = vmul.f32 1.442695, %v522_v63 }
 0x2e6   : > { %v3950_v9 = vpop.eup %3949  ;;  %v2828_v54 = vmax.f32 %v2732_v0, 0.0  ;;  %3967 = vpow2.f32 %v559_v19  ;;  %v569_v22 = vmul.f32 1.442695, %v523_v10  ;;  %v571_v31 = vmul.f32 1.442695, %v524_v27  ;;  %v6185_v0 = vld [vmem:[#allocation7_spill] sm:$0xff] }
 0x2e7   : > { %v3952_v21 = vpop.eup %3951  ;;  %v605_v35 = vmul.f32 %v4912_v36, %v3950_v9  ;;  %v2829_v43 = vmax.f32 %v2735_v3, 0.0  ;;  %3969 = vpow2.f32 %v561_v53  ;;  %v575_v10 = vmul.f32 1.442695, %v526_v7  ;;  %v6186_v19 = vld [vmem:[#allocation8_spill] sm:$0xff] }
 0x2e8   : > { %v3954_v45 = vpop.eup %3953  ;;  %v606_v29 = vmul.f32 %v4930_v46, %v3952_v21  ;;  %v674_v50 = vadd.f32 %v3952_v21, %v3950_v9  ;;  %v3650_v23 = vpop.f32.mrb[44].mxu1  ;;  %v6184_v9 = vld [vmem:[#allocation20_spill] sm:$0xff]  ;;  %v577_v27 = vmul.f32 1.442695, %v527_v38  ;;  %3971 = vpow2.f32 %v563_v8  ;;  %v6187_v38 = vld [vmem:[#allocation9_spill] sm:$0xff] }
 0x2e9   : > { %v3956_v51 = vpop.eup %3955  ;;  %v3651_v2 = vpop.f32.mrb[45].mxu1  ;;  %v607_v36 = vmul.f32 %v4925_v42, %v3954_v45  ;;  %v2855_v46 = vpack.c.bf16 %v2829_v43, %v2828_v54  ;;  %v2740_v21 = vadd.f32 %v6184_v9, %v2579_v17  ;;  %v573_v42 = vmul.f32 1.442695, %v525_v30  ;;  %v6191_v9 = vld [vmem:[#allocation11_spill] sm:$0xff] }
 0x2ea   : > { %v637_v20 = vadd.f32 %v606_v29, %v605_v35  ;;  %v675_v39 = vadd.f32 %v3954_v45, %v674_v50  ;;  %v5344_v52 = vpop.f32.mrb[46].mxu1  ;;  %v3958_v12 = vpop.eup %3957  ;;  %v608_v3 = vmul.f32 %v6185_v0, %v3956_v51  ;;  %v3649_v50 = vadd.f32 %v3648_v13, %v3647_v11 }
 0x2eb   : > { %v3654_v15 = vpop.f32.mrb[47].mxu1  ;;  %v3960_v63 = vpop.eup %3959  ;;  %3837 = vmatmul.mubr.msk.bf16.gmra.mrb[56].mxu0 %vm808_vm0, %v2855_v46  ;;  %v609_v35 = vmul.f32 %v6186_v19, %v3958_v12  ;;  %v579_v49 = vmul.f32 1.442695, %v528_v18  ;;  %v3652_v7 = vadd.f32 %v3651_v2, %v3650_v23  ;;  %v581_v56 = vmul.f32 1.442695, %v529_v60  ;;  %v6188_v18 = vld [vmem:[#allocation22_spill] sm:$0xff] }
 0x2ec   : > { %v638_v14 = vadd.f32 %v637_v20, %v607_v36  ;;  %v676_v33 = vadd.f32 %v3956_v51, %v675_v39  ;;  %v3962_v16 = vpop.eup %3961  ;;  %v2582_v30 = vadd.f32 %v3649_v50, %v5141_v61  ;;  %3973 = vpow2.f32 %v565_v55  ;;  %v6190_v46 = vld [vmem:[#allocation19_spill] sm:$0xff] }
 0x2ed   : > { %v583_v40 = vmul.f32 1.442695, %v530_v58  ;;  %v2587_v23 = vadd.f32 %v3652_v7, %v5141_v61  ;;  %v585_v17 = vmul.f32 1.442695, %v531_v34  ;;  %v611_v60 = vmul.f32 %v6189_v32, %v3962_v16  ;;  %v6200_v32 = vld [vmem:[#allocation15_spill] sm:$0xff] }
 0x2ee   : > { %v639_v45 = vadd.f32 %v638_v14, %v608_v3  ;;  %v677_v53 = vadd.f32 %v3958_v12, %v676_v33  ;;  %v610_v14 = vmul.f32 %v6187_v38, %v3960_v63  ;;  %v3964_v43 = vpop.eup %3963  ;;  %v2743_v8 = vadd.f32 %v6188_v18, %v2582_v30  ;;  %v6199_v18 = vld [vmem:[#allocation24_spill] sm:$0xff] }
 0x2ef   : > { %v3966_v39 = vpop.eup %3965  ;;  %3975 = vpow2.f32 %v567_v6  ;;  %v2830_v55 = vmax.f32 %v2740_v21, 0.0  ;;  %v2748_v4 = vadd.f32 %v6190_v46, %v2587_v23  ;;  %v612_v0 = vmul.f32 %v6191_v9, %v3964_v43 }
 0x2f0   : > { %v3656_v59 = vpop.f32.mrb[48].mxu1  ;;  %v640_v13 = vadd.f32 %v639_v45, %v609_v35  ;;  %v678_v54 = vadd.f32 %v3960_v63, %v677_v53  ;;  %v2831_v12 = vmax.f32 %v2743_v8, 0.0  ;;  %3977 = vpow2.f32 %v569_v22  ;;  %v3968_v48 = vpop.eup %3967  ;;  %v6192_v22 = vld [vmem:[#allocation12_spill] sm:$0xff] }
 0x2f1   : > { %v3657_v29 = vpop.f32.mrb[49].mxu1  ;;  %3979 = vpow2.f32 %v571_v31  ;;  %v587_v34 = vmul.f32 1.442695, %v532_v26  ;;  %v5388_v6 = vmul.f32 1.442695, %v533_v47  ;;  %v613_v19 = vmul.f32 %v6192_v22, %v3966_v39  ;;  %v3970_v53 = vpop.eup %3969  ;;  %v6194_v26 = vld [vmem:[#allocation13_spill] sm:$0xff] }
 0x2f2   : > { %v5359_v51 = vpop.f32.mrb[50].mxu1  ;;  %v641_v2 = vadd.f32 %v640_v13, %v610_v14  ;;  %v679_v36 = vadd.f32 %v3962_v16, %v678_v54  ;;  %v2856_v21 = vpack.c.bf16 %v2831_v12, %v2830_v55  ;;  %3981 = vpow2.f32 %v573_v42  ;;  %v3972_v7 = vpop.eup %3971 }
 0x2f3   : > { %v5365_v11 = vpop.f32.mrb[51].mxu1  ;;  %3983 = vpow2.f32 %v575_v10  ;;  %v6193_v31 = vsub.f32 %v5211_v1, %v5270_v41  ;;  %v3655_v62 = vadd.f32 %v3654_v15, %v5344_v52  ;;  %v3658_v44 = vadd.f32 %v3657_v29, %v3656_v59  ;;  %v6196_v15 = vld [vmem:[#allocation14_spill] sm:$0xff] }
 0x2f4   : > { %v642_v3 = vadd.f32 %v641_v2, %v611_v60  ;;  %v680_v33 = vadd.f32 %v3964_v43, %v679_v36  ;;  %3840 = vmatprep.mubr.msk.bf16.mxu0 %vm808_vm0, %v2856_v21  ;;  %3985 = vpow2.f32 %v577_v27  ;;  %v614_v47 = vmul.f32 %v6194_v26, %v3968_v48  ;;  %v6205_v26 = vld [vmem:[#allocation23_spill] sm:$0xff] }
 0x2f5   : > { %v5394_v16 = vmul.f32 1.442695, %v6193_v31  ;;  %3987 = vpow2.f32 %v579_v49  ;;  %v6195_v10 = vsub.f32 %v5216_v57, %v5270_v41  ;;  %v2590_v1 = vadd.f32 %v3655_v62, %v5141_v61  ;;  %v6198_v57 = vld [vmem:[#allocation21_spill] sm:$0xff]  ;;  %v6204_v62 = vld [vmem:[#allocation18_spill] sm:$0xff] }
 0x2f6   : > { %v643_v35 = vadd.f32 %v642_v3, %v612_v0  ;;  %v681_v45 = vadd.f32 %v3966_v39, %v680_v33  ;;  %v2595_v14 = vadd.f32 %v3658_v44, %v5141_v61  ;;  %3989 = vpow2.f32 %v581_v56  ;;  %v3974_v13 = vpop.eup %3973  ;;  %v6201_v0 = vld [vmem:[#allocation16_spill] sm:$0xff] }
 0x2f7   : > { %v5402_v38 = vmul.f32 1.442695, %v6195_v10  ;;  %v615_v52 = vmul.f32 %v6196_v15, %v3970_v53  ;;  %3991 = vpow2.f32 %v583_v40  ;;  %v6197_v49 = vsub.f32 %v5225_v25, %v5270_v41 }
 0x2f8   : > { %v3662_v20 = vpop.f32.mrb[52].mxu1  ;;  %v644_v42 = vadd.f32 %v643_v35, %v613_v19  ;;  %v682_v30 = vadd.f32 %v3968_v48, %v681_v45  ;;  %v2751_v43 = vadd.f32 %v6198_v57, %v2590_v1  ;;  %v2756_v8 = vadd.f32 %v6199_v18, %v2595_v14  ;;  %v6202_v45 = vld [vmem:[#allocation17_spill] sm:$0xff]  ;;  %v4053_v57 = vld [vmem:[%s4279_s16 + $0x78] sm:$0xff] }
 0x2f9   : > { %v3663_v58 = vpop.f32.mrb[53].mxu1  ;;  %v5410_v54 = vmul.f32 1.442695, %v6197_v49  ;;  %v616_v60 = vmul.f32 %v6200_v32, %v3972_v7  ;;  %v3661_v36 = vadd.f32 %v5365_v11, %v5359_v51  ;;  %v3976_v55 = vpop.eup %3975  ;;  %3993 = vpow2.f32 %v585_v17 }
 0x2fa   : > { %v3665_v63 = vpop.f32.mrb[54].mxu1  ;;  %v645_v59 = vadd.f32 %v644_v42, %v614_v47  ;;  %v683_v29 = vadd.f32 %v3970_v53, %v682_v30  ;;  %v2832_v40 = vmax.f32 %v2748_v4, 0.0  ;;  %v2833_v12 = vmax.f32 %v2751_v43, 0.0  ;;  %v3978_v9 = vpop.eup %3977 }
 0x2fb   : > { %v3666_v50 = vpop.f32.mrb[55].mxu1  ;;  %v3664_v25 = vadd.f32 %v3663_v58, %v3662_v20  ;;  %v617_v3 = vmul.f32 %v6201_v0, %v3974_v13  ;;  %v2598_v21 = vadd.f32 %v3661_v36, %v5141_v61  ;;  %v3980_v22 = vpop.eup %3979  ;;  %3995 = vpow2.f32 %v587_v34  ;;  %v6203_v20 = vld [vmem:[#allocation26_spill] sm:$0xff] }
 0x2fc   : > { %v646_v56 = vadd.f32 %v645_v59, %v615_v52  ;;  %v684_v2 = vadd.f32 %v3972_v7, %v683_v29  ;;  %v2857_v19 = vpack.c.bf16 %v2833_v12, %v2832_v40  ;;  %v3667_v51 = vadd.f32 %v3666_v50, %v3665_v63  ;;  %v3982_v11 = vpop.eup %3981  ;;  %v6207_v59 = vld [vmem:[#allocation25_spill] sm:$0xff]  ;;  %v4054_v40 = vld [vmem:[%s4279_s16 + $0x80] sm:$0xff] }
 0x2fd   : > { %v2603_v35 = vadd.f32 %v3664_v25, %v5141_v61  ;;  %v618_v17 = vmul.f32 %v6202_v45, %v3976_v55  ;;  %v2759_v58 = vadd.f32 %v6203_v20, %v2598_v21  ;;  %v3984_v31 = vpop.eup %3983  ;;  %v619_v44 = vmul.f32 %v6204_v62, %v3978_v9  ;;  %v6211_v62 = vld [vmem:[#allocation27_spill] sm:$0xff] }
 0x2fe   : > { %v647_v33 = vadd.f32 %v646_v56, %v616_v60  ;;  %v685_v48 = vadd.f32 %v3974_v13, %v684_v2  ;;  %3841 = vmatmul.mubr.msk.bf16.gmra.mrb[60].mxu0 %vm808_vm0, %v2857_v19  ;;  %v2606_v34 = vadd.f32 %v3667_v51, %v5141_v61  ;;  %v3986_v30 = vpop.eup %3985  ;;  %v2834_v7 = vmax.f32 %v2756_v8, 0.0  ;;  %v6208_v56 = vld [vmem:[#allocation28_spill] sm:$0xff] }
 0x2ff   : > { %v2764_v47 = vadd.f32 %v6205_v26, %v2603_v35  ;;  %v2835_v10 = vmax.f32 %v2759_v58, 0.0  ;;  %v3988_v14 = vpop.eup %3987  ;;  %3997 = vpow2.f32 %v5388_v6  ;;  %v6206_v15 = vsub.f32 %v5229_v37, %v5270_v41 }
 0x300   : > { %v3668_v27 = vpop.f32.mrb[56].mxu1  ;;  %v648_v4 = vadd.f32 %v647_v33, %v617_v3  ;;  %v686_v53 = vadd.f32 %v3976_v55, %v685_v48  ;;  %v2767_v29 = vadd.f32 %v6207_v59, %v2606_v34  ;;  %v3990_v49 = vpop.eup %3989  ;;  %v620_v43 = vmul.f32 %v4053_v57, %v3980_v22 }
 0x301   : > { %v3669_v23 = vpop.f32.mrb[57].mxu1  ;;  %v5430_v52 = vmul.f32 1.442695, %v6206_v15  ;;  %v5435_v60 = vpop.eup %3991  ;;  %v2836_v6 = vmax.f32 %v2764_v47, 0.0  ;;  %v621_v12 = vmul.f32 %v4054_v40, %v3982_v11  ;;  %3999 = vpow2.f32 %v5394_v16  ;;  %v6212_v47 = vld [vmem:[#allocation29_spill] sm:$0xff] }
 0x302   : > { %v3671_v39 = vpop.f32.mrb[58].mxu1  ;;  %v3670_v42 = vadd.f32 %v3669_v23, %v3668_v27  ;;  %v649_v63 = vadd.f32 %v648_v4, %v618_v17  ;;  %v687_v50 = vadd.f32 %v3978_v9, %v686_v53  ;;  %v2858_v23 = vpack.c.bf16 %v2835_v10, %v2834_v7  ;;  %v6210_v17 = vld [vmem:[#allocation30_spill] sm:$0xff]  ;;  %v4056_v53 = vld [vmem:[%s4279_s16 + $0x90] sm:$0xff] }
 0x303   : > { %v3672_v46 = vpop.f32.mrb[59].mxu1  ;;  %v2837_v37 = vmax.f32 %v2767_v29, 0.0  ;;  %v3994_v3 = vpop.eup %3993  ;;  %4001 = vpow2.f32 %v5402_v38  ;;  %v623_v20 = vmul.f32 %v4056_v53, %v3986_v30  ;;  %v4058_v29 = vld [vmem:[%s4279_s16 + $0xa0] sm:$0xff] }
 0x304   : > { %v2611_v13 = vadd.f32 %v3670_v42, %v5141_v61  ;;  %v650_v18 = vadd.f32 %v649_v63, %v619_v44  ;;  %v688_v8 = vadd.f32 %v3980_v22, %v687_v50  ;;  %v3673_v36 = vadd.f32 %v3672_v46, %v3671_v39  ;;  %3844 = vmatprep.mubr.msk.bf16.mxu0 %vm808_vm0, %v2858_v23  ;;  %v4055_v22 = vld [vmem:[%s4279_s16 + $0x88] sm:$0xff]  ;;  %v4057_v63 = vld [vmem:[%s4279_s16 + $0x98] sm:$0xff] }
 0x305   : > { %v2859_v33 = vpack.c.bf16 %v2837_v37, %v2836_v6  ;;  %v622_v19 = vmul.f32 %v4055_v22, %v3984_v31  ;;  %v3996_v51 = vpop.eup %3995  ;;  %4003 = vpow2.f32 %v5410_v54  ;;  %v624_v50 = vmul.f32 %v4057_v63, %v3988_v14  ;;  %v4059_v6 = vld [vmem:[%s4279_s16 + $0xa8] sm:$0xff] }
 0x306   : > { %v2772_v2 = vadd.f32 %v6208_v56, %v2611_v13  ;;  %v651_v25 = vadd.f32 %v650_v18, %v620_v43  ;;  %v689_v9 = vadd.f32 %v3982_v11, %v688_v8  ;;  %v2614_v48 = vadd.f32 %v3673_v36, %v5141_v61  ;;  %v6214_v36 = vld [vmem:[#allocation32_spill] sm:$0xff] }
 0x307   : > { %v6209_v11 = vsub.f32 %v5237_v28, %v5270_v41  ;;  %3845 = vmatmul.mubr.msk.bf16.gmra.mrb[64].mxu0 %vm808_vm0, %v2859_v33  ;;  %4005 = vpow2.f32 %v5430_v52  ;;  %v626_v37 = vmul.f32 %v4059_v6, %v5435_v60 }
 0x308   : > { %v3674_v1 = vpop.f32.mrb[60].mxu1  ;;  %v652_v35 = vadd.f32 %v651_v25, %v621_v12  ;;  %v690_v39 = vadd.f32 %v3984_v31, %v689_v9  ;;  %v2775_v16 = vadd.f32 %v6210_v17, %v2614_v48  ;;  %v2838_v38 = vmax.f32 %v2772_v2, 0.0  ;;  %v4060_v25 = vld [vmem:[%s4279_s16 + $0xb0] sm:$0xff]  ;;  %v6216_v48 = vld [vmem:[#allocation34_spill] sm:$0xff] }
 0x309   : > { %v3675_v27 = vpop.f32.mrb[61].mxu1  ;;  %v599_v45 = vmul.f32 1.442695, %v6209_v11  ;;  %v3998_v59 = vpop.eup %3997  ;;  %v627_v9 = vmul.f32 %v4060_v25, %v3994_v3 }
 0x30a   : > { %v3677_v32 = vpop.f32.mrb[62].mxu1  ;;  %v3676_v0 = vadd.f32 %v3675_v27, %v3674_v1  ;;  %v653_v58 = vadd.f32 %v652_v35, %v622_v19  ;;  %v691_v31 = vadd.f32 %v3986_v30, %v690_v39  ;;  %v2839_v28 = vmax.f32 %v2775_v16, 0.0  ;;  %v4061_v19 = vld [vmem:[%s4279_s16 + $0xb8] sm:$0xff] }
 0x30b   : > { %v3678_v55 = vpop.f32.mrb[63].mxu1  ;;  %v625_v30 = vmul.f32 %v4058_v29, %v3990_v49  ;;  %v4000_v12 = vpop.eup %3999  ;;  %4007 = vpow2.f32 %v599_v45  ;;  %v628_v35 = vmul.f32 %v4061_v19, %v3996_v51  ;;  %v6218_v29 = vld [vmem:[#allocation33_spill] sm:$0xff] }
 0x30c   : > { %v3679_v21 = vadd.f32 %v3678_v55, %v3677_v32  ;;  %v2619_v46 = vadd.f32 %v3676_v0, %v5141_v61  ;;  %v654_v7 = vadd.f32 %v653_v58, %v623_v20  ;;  %v692_v10 = vadd.f32 %v3988_v14, %v691_v31 }
 0x30d   : > { %v2860_v13 = vpack.c.bf16 %v2839_v28, %v2838_v38  ;;  %v6213_v14 = vsub.f32 %v5241_v24, %v5270_v41  ;;  %v6215_v24 = vsub.f32 %v5253_v5, %v5270_v41  ;;  %v4002_v22 = vpop.eup %4001 }
 0x30e   : > { %v2622_v4 = vadd.f32 %v3679_v21, %v5141_v61  ;;  %v2780_v44 = vadd.f32 %v6211_v62, %v2619_v46  ;;  %v655_v54 = vadd.f32 %v654_v7, %v624_v50  ;;  %v693_v18 = vadd.f32 %v3990_v49, %v692_v10  ;;  %v5485_v50 = vld [vmem:[%s4279_s16 + $0xd0] sm:$0xff] }
 0x30f   : > { %v601_v32 = vmul.f32 1.442695, %v6213_v14  ;;  %3848 = vmatprep.mubr.msk.bf16.mxu0 %vm808_vm0, %v2860_v13  ;;  %v603_v52 = vmul.f32 1.442695, %v6215_v24  ;;  %v4004_v16 = vpop.eup %4003  ;;  %v631_v7 = vmul.f32 %v5485_v50, %v4002_v22  ;;  %v5494_v14 = vld [vmem:[%s4279_s16 + $0xe0] sm:$0xff] }
 0x310   : > { %v3680_v26 = vpop.f32.mrb[64].mxu1  ;;  %v2783_v34 = vadd.f32 %v6212_v47, %v2622_v4  ;;  %v2840_v27 = vmax.f32 %v2780_v44, 0.0  ;;  %v656_v2 = vadd.f32 %v655_v54, %v625_v30  ;;  %v694_v49 = vadd.f32 %v5435_v60, %v693_v18  ;;  %v4062_v4 = vld [vmem:[%s4279_s16 + $0xc0] sm:$0xff] }
 0x311   : > { %v3681_v42 = vpop.f32.mrb[65].mxu1  ;;  %4009 = vpow2.f32 %v601_v32  ;;  %v6217_v47 = vld [vmem:[#allocation31_spill] sm:$0xff] }
 0x312   : > { %v3682_v1 = vadd.f32 %v3681_v42, %v3680_v26  ;;  %v3683_v15 = vpop.f32.mrb[66].mxu1  ;;  %v2841_v57 = vmax.f32 %v2783_v34, 0.0  ;;  %v657_v0 = vadd.f32 %v656_v2, %v626_v37  ;;  %v695_v33 = vadd.f32 %v3994_v3, %v694_v49  ;;  %v5478_v26 = vld [vmem:[%s4279_s16 + $0xc8] sm:$0xff]  ;;  %v4006_v42 = vpop.eup %4005 }
 0x313   : > { %v3684_v43 = vpop.f32.mrb[67].mxu1  ;;  %4011 = vpow2.f32 %v603_v52  ;;  %v629_v3 = vmul.f32 %v4062_v4, %v3998_v59  ;;  %v633_v32 = vmul.f32 %v5494_v14, %v4006_v42 }
 0x314   : > { %v2627_v8 = vadd.f32 %v3682_v1, %v5141_v61  ;;  %v3685_v23 = vadd.f32 %v3684_v43, %v3683_v15  ;;  %v2861_v56 = vpack.c.bf16 %v2841_v57, %v2840_v27  ;;  %v658_v11 = vadd.f32 %v657_v0, %v627_v9  ;;  %v5490_v27 = vld [vmem:[%s4279_s16 + $0xd8] sm:$0xff]  ;;  %v6219_v0 = vld [vmem:[#allocation36_spill] sm:$0xff] }
 0x315   : > { %v696_v5 = vadd.f32 %v3996_v51, %v695_v33  ;;  %v630_v51 = vmul.f32 %v5478_v26, %v4000_v12  ;;  %v632_v57 = vmul.f32 %v5490_v27, %v4004_v16 }
 0x316   : > { %v2788_v55 = vadd.f32 %v6214_v36, %v2627_v8  ;;  %v2630_v40 = vadd.f32 %v3685_v23, %v5141_v61  ;;  %3849 = vmatmul.mubr.msk.bf16.gmra.mrb[68].mxu0 %vm808_vm0, %v2861_v56  ;;  %v659_v20 = vadd.f32 %v658_v11, %v628_v35  ;;  %v6220_v35 = vld [vmem:[#allocation38_spill] sm:$0xff] }
 0x317   : > { %v697_v58 = vadd.f32 %v3998_v59, %v696_v5  ;;  %v4008_v59 = vpop.eup %4007  ;;  %v5511_v11 = vld [vmem:[%s4279_s16 + $0xf8] sm:$0xff] }
 0x318   : > { %v2791_v21 = vadd.f32 %v6216_v48, %v2630_v40  ;;  %v3686_v60 = vpop.f32.mrb[68].mxu1  ;;  %v2842_v39 = vmax.f32 %v2788_v55, 0.0  ;;  %v660_v38 = vadd.f32 %v659_v20, %v629_v3 }
 0x319   : > { %v3687_v46 = vpop.f32.mrb[69].mxu1  ;;  %v698_v28 = vadd.f32 %v4000_v12, %v697_v58  ;;  %v5499_v12 = vld [vmem:[%s4279_s16 + $0xe8] sm:$0xff] }
 0x31a   : > { %v2843_v41 = vmax.f32 %v2791_v21, 0.0  ;;  %v3688_v45 = vadd.f32 %v3687_v46, %v3686_v60  ;;  %v3689_v17 = vpop.f32.mrb[70].mxu1  ;;  %v661_v10 = vadd.f32 %v660_v38, %v630_v51  ;;  %v634_v24 = vmul.f32 %v5499_v12, %v4008_v59  ;;  %v5506_v21 = vld [vmem:[%s4279_s16 + $0xf0] sm:$0xff] }
 0x31b   : > { %v3690_v53 = vpop.f32.mrb[71].mxu1  ;;  %v699_v1 = vadd.f32 %v4002_v22, %v698_v28  ;;  %v4010_v23 = vpop.eup %4009 }
 0x31c   : > { %v2862_v31 = vpack.c.bf16 %v2843_v41, %v2842_v39  ;;  %v2635_v62 = vadd.f32 %v3688_v45, %v5141_v61  ;;  %v3691_v44 = vadd.f32 %v3690_v53, %v3689_v17  ;;  %v662_v43 = vadd.f32 %v661_v10, %v631_v7 }
 0x31d   : > { %v700_v54 = vadd.f32 %v4004_v16, %v699_v1  ;;  %v4012_v40 = vpop.eup %4011  ;;  %v635_v60 = vmul.f32 %v5506_v21, %v4010_v23  ;;  %v6222_v1 = vld [vmem:[#allocation37_spill] sm:$0xff] }
 0x31e   : > { %v2796_v34 = vadd.f32 %v6217_v47, %v2635_v62  ;;  %3852 = vmatprep.mubr.msk.bf16.mxu0 %vm808_vm0, %v2862_v31  ;;  %v2638_v63 = vadd.f32 %v3691_v44, %v5141_v61  ;;  %v663_v2 = vadd.f32 %v662_v43, %v632_v57  ;;  %v636_v5 = vmul.f32 %v5511_v11, %v4012_v40  ;;  %v6221_v47 = vld [vmem:[#allocation35_spill] sm:$0xff] }
 0x31f   : > { %v701_v49 = vadd.f32 %v4006_v42, %v700_v54  ;;  %v4070_v42 = vld [vmem:[%s6129_s1 + $0x7] ss:$0 sm:$0xff] }
 0x320   : > { %v3692_v15 = vpop.f32.mrb[72].mxu1  ;;  %v2799_v30 = vadd.f32 %v6218_v29, %v2638_v63  ;;  %v2844_v6 = vmax.f32 %v2796_v34, 0.0  ;;  %v664_v25 = vadd.f32 %v663_v2, %v633_v32 }
 0x321   : > { %v3693_v13 = vpop.f32.mrb[73].mxu1  ;;  %v702_v9 = vadd.f32 %v4008_v59, %v701_v49 }
 0x322   : > { %v3694_v18 = vadd.f32 %v3693_v13, %v3692_v15  ;;  %v3695_v8 = vpop.f32.mrb[74].mxu1  ;;  %v2845_v37 = vmax.f32 %v2799_v30, 0.0  ;;  %v665_v22 = vadd.f32 %v664_v25, %v634_v24  ;;  %v5527_v24 = vld [vmem:[%s6129_s1 + $0x2] ss:$0 sm:$0xff]  ;;  %v777_v25 = vld [vmem:[%s6130_s2 + $0x8] sm:$0xff] }
 0x323   : > { %v3696_v56 = vpop.f32.mrb[75].mxu1  ;;  %v703_v19 = vadd.f32 %v4010_v23, %v702_v9  ;;  %v776_v9 = vld [vmem:[%s6130_s2] sm:$0xff] }
 0x324   : > { %v3697_v36 = vadd.f32 %v3696_v56, %v3695_v8  ;;  %v2643_v55 = vadd.f32 %v3694_v18, %v5141_v61  ;;  %v2863_v52 = vpack.c.bf16 %v2845_v37, %v2844_v6  ;;  %v666_v17 = vadd.f32 %v665_v22, %v635_v60 }
 0x325   : > { %v704_v16 = vadd.f32 %v4012_v40, %v703_v19 }
 0x326   : > { %v2804_v33 = vadd.f32 %v6219_v0, %v2643_v55  ;;  %v2646_v48 = vadd.f32 %v3697_v36, %v5141_v61  ;;  %3853 = vmatmul.mubr.msk.bf16.gmra.mrb[72].mxu0 %vm808_vm0, %v2863_v52  ;;  %v667_v58 = vadd.f32 %v666_v17, %v636_v5 }
 0x327   : > { %v705_v31 = vrot.slane %v704_v16, 4 }
 0x328   : > { %v2807_v39 = vadd.f32 %v6220_v35, %v2646_v48  ;;  %v3698_v46 = vpop.f32.mrb[76].mxu1  ;;  %v2846_v41 = vmax.f32 %v2804_v33, 0.0  ;;  %v668_v38 = vrot.slane %v667_v58, 4  ;;  %v778_v35 = vld [vmem:[%s6130_s2 + $0x10] sm:$0xff] }
 0x329   : > { %v3699_v45 = vpop.f32.mrb[77].mxu1  ;;  %v706_v28 = vadd.f32 %v705_v31, %v704_v16 }
 0x32a   : > { %v2847_v4 = vmax.f32 %v2807_v39, 0.0  ;;  %v3700_v3 = vadd.f32 %v3699_v45, %v3698_v46  ;;  %v3701_v53 = vpop.f32.mrb[78].mxu1  ;;  %v669_v10 = vadd.f32 %v668_v38, %v667_v58 }
 0x32b   : > { %v3702_v20 = vpop.f32.mrb[79].mxu1  ;;  %v707_v7 = vrot.slane %v706_v28, 2 }
 0x32c   : > { %v2864_v62 = vpack.c.bf16 %v2847_v4, %v2846_v41  ;;  %v2651_v44 = vadd.f32 %v3700_v3, %v5141_v61  ;;  %v3703_v51 = vadd.f32 %v3702_v20, %v3701_v53  ;;  %v670_v13 = vrot.slane %v669_v10, 2  ;;  %v780_v4 = vld [vmem:[%s6130_s2 + $0x20] sm:$0xff]  ;;  %v779_v3 = vld [vmem:[%s6130_s2 + $0x18] sm:$0xff] }
 0x32d   : > { %v708_v59 = vadd.f32 %v707_v7, %v706_v28 }
 0x32e   : > { %v2812_v34 = vadd.f32 %v6221_v47, %v2651_v44  ;;  %3856 = vmatprep.mubr.msk.bf16.mxu0 %vm808_vm0, %v2864_v62  ;;  %v2654_v63 = vadd.f32 %v4070_v42, %v3703_v51  ;;  %v671_v54 = vadd.f32 %v670_v13, %v669_v10  ;;  %v781_v42 = vld [vmem:[%s6130_s2 + $0x28] sm:$0xff] }
 0x32f   : > { %v709_v61 = vrot.slane %v708_v59, 1 }
 0x330   : > { %v2815_v15 = vadd.f32 %v6222_v1, %v2654_v63  ;;  %v2848_v29 = vmax.f32 %v2812_v34, 0.0  ;;  %v672_v18 = vrot.slane %v671_v54, 1  ;;  %v782_v34 = vld [vmem:[%s6130_s2 + $0x30] sm:$0xff] }
 0x331   : > { %v710_v43 = vadd.f32 %v709_v61, %v708_v59 }
 0x332   : > { %v2849_v30 = vmax.f32 %v2815_v15, 0.0  ;;  %v673_v8 = vadd.f32 %v672_v18, %v671_v54  ;;  %v784_v54 = vld [vmem:[%s6130_s2 + $0x40] sm:$0xff] }
 0x333   : > { %4013 = vrcp.f32 %v710_v43 }
 0x334   : > { %v2865_v57 = vpack.c.bf16 %v2849_v30, %v2848_v29 }
 0x336   : > { %3857 = vmatmul.mubr.msk.bf16.gmra.mrb[76].mxu0 %vm808_vm0, %v2865_v57 }
 0x33d   : > { %v4014_v23 = vpop.eup %4013 }
 0x33e   : > { %v712_v32 = vmul.f32 %v4014_v23, %v673_v8  ;;  %v783_v8 = vld [vmem:[%s6130_s2 + $0x38] sm:$0xff] }
 0x340   : > { %718 = vbcast.lane.b32.xlu0 %v712_v32, 264  ;;  %714 = vbcast.lane.b32.xlu1 %v712_v32, 256 }
 0x344   : > { %730 = vbcast.lane.b32.xlu0 %v712_v32, 288  ;;  %722 = vbcast.lane.b32.xlu1 %v712_v32, 272 }
 0x348   : > { %738 = vbcast.lane.b32.xlu0 %v712_v32, 304  ;;  %726 = vbcast.lane.b32.xlu1 %v712_v32, 280 }
 0x34c   : > { %746 = vbcast.lane.b32.xlu0 %v712_v32, 320  ;;  %734 = vbcast.lane.b32.xlu1 %v712_v32, 296 }
 0x350   : > { %754 = vbcast.lane.b32.xlu0 %v712_v32, 336  ;;  %742 = vbcast.lane.b32.xlu1 %v712_v32, 312 }
 0x354   : > { %762 = vbcast.lane.b32.xlu0 %v712_v32, 352  ;;  %750 = vbcast.lane.b32.xlu1 %v712_v32, 328 }
 0x358   : > { %770 = vbcast.lane.b32.xlu0 %v712_v32, 368  ;;  %758 = vbcast.lane.b32.xlu1 %v712_v32, 344 }
 0x35c   : > { %766 = vbcast.lane.b32.xlu1 %v712_v32, 360 }
 0x360   : > { %774 = vbcast.lane.b32.xlu1 %v712_v32, 376 }
 0x385   : > { %v3830_v6 = vpop.f32.mrb[48].mxu0 }
 0x386   : > { %v2968_v37 = vpop.f32.mrb[49].mxu0  ;;  %v5547_v39 = vadd.f32 %v3830_v6, %v5527_v24 }
 0x387   : > { %v3831_v56 = vpop.f32.mrb[50].mxu0  ;;  %v5539_v0 = vadd.f32 %v5527_v24, %v2968_v37 }
 0x388   : > { %v2971_v2 = vpop.f32.mrb[51].mxu0  ;;  %v5559_v53 = vadd.f32 %v3831_v56, %v5527_v24 }
 0x389   : > { %v5530_v52 = vadd.f32 %v5527_v24, %v2971_v2 }
 0x38b   : > { %v3095_v60 = vadd.f32 %v5530_v52, %v5539_v0 }
 0x38d   : > { %v3096_v41 = vadd.f32 %v3095_v60, %v5547_v39  ;;  %v786_v60 = vld [vmem:[%s6130_s2 + $0x50] sm:$0xff] }
 0x38f   : > { %v3097_v51 = vadd.f32 %v3096_v41, %v5559_v53 }
 0x3a1   : > { %v3834_v49 = vpop.f32.mrb[52].mxu0 }
 0x3a2   : > { %v2984_v36 = vpop.f32.mrb[53].mxu0  ;;  %v5587_v37 = vadd.f32 %v3834_v49, %v5527_v24 }
 0x3a3   : > { %v5522_v55 = vpop.f32.mrb[54].mxu0  ;;  %v5562_v20 = vadd.f32 %v5527_v24, %v2984_v36 }
 0x3a4   : > { %v2987_v40 = vpop.f32.mrb[55].mxu0 }
 0x3a5   : > { %v3098_v63 = vadd.f32 %v3097_v51, %v5562_v20  ;;  %v5574_v7 = vadd.f32 %v5527_v24, %v2987_v40 }
 0x3a7   : > { %v3099_v57 = vadd.f32 %v3098_v63, %v5574_v7 }
 0x3b2   : > { %v719_v33 = vpop.permute.xlu0 %718  ;;  %v715_v48 = vpop.permute.xlu1 %714 }
 0x3b3   : > { %v793_v22 = vmul.f32 %v777_v25, %v719_v33  ;;  %v792_v19 = vmul.f32 %v776_v9, %v715_v48  ;;  %v3100_v48 = vadd.f32 %v3099_v57, %v5587_v37 }
 0x3b5   : > { %v810_v45 = vsel %vm808_vm0, %v793_v22, 0.0  ;;  %v809_v17 = vsel %vm808_vm0, %v792_v19, 0.0  ;;  %v785_v22 = vld [vmem:[%s6130_s2 + $0x48] sm:$0xff]  ;;  %v5600_v19 = vadd.f32 %v5522_v55, %v5527_v24  ;;  %v787_v55 = vld [vmem:[%s6130_s2 + $0x58] sm:$0xff] }
 0x3b6   : > { %v731_v46 = vpop.permute.xlu0 %730  ;;  %v723_v5 = vpop.permute.xlu1 %722  ;;  %v811_v31 = vadd.f32 %v810_v45, %v809_v17 }
 0x3b7   : > { %v794_v16 = vmul.f32 %v778_v35, %v723_v5  ;;  %v796_v38 = vmul.f32 %v780_v4, %v731_v46  ;;  %v3101_v4 = vadd.f32 %v3100_v48, %v5600_v19 }
 0x3b9   : > { %v812_v58 = vsel %vm808_vm0, %v794_v16, 0.0  ;;  %v816_v29 = vsel %vm808_vm0, %v796_v38, 0.0 }
 0x3ba   : > { %v739_v62 = vpop.permute.xlu0 %738  ;;  %v727_v44 = vpop.permute.xlu1 %726  ;;  %v813_v47 = vadd.f32 %v812_v58, %v811_v31 }
 0x3bb   : > { %v795_v28 = vmul.f32 %v779_v3, %v727_v44  ;;  %v798_v30 = vmul.f32 %v782_v34, %v739_v62  ;;  %v788_v3 = vld [vmem:[%s6130_s2 + $0x60] sm:$0xff] }
 0x3bd   : > { %v814_v10 = vsel %vm808_vm0, %v795_v28, 0.0  ;;  %v820_v56 = vsel %vm808_vm0, %v798_v30, 0.0 }
 0x3be   : > { %v815_v1 = vadd.f32 %v814_v10, %v813_v47  ;;  %v747_v15 = vpop.permute.xlu0 %746  ;;  %v735_v59 = vpop.permute.xlu1 %734 }
 0x3bf   : > { %v797_v61 = vmul.f32 %v781_v42, %v735_v59  ;;  %v3838_v43 = vpop.f32.mrb[56].mxu0  ;;  %v800_v25 = vmul.f32 %v784_v54, %v747_v15  ;;  %v790_v42 = vld [vmem:[%s6130_s2 + $0x70] sm:$0xff] }
 0x3c0   : > { %v817_v13 = vadd.f32 %v816_v29, %v815_v1  ;;  %v3000_v23 = vpop.f32.mrb[57].mxu0  ;;  %v789_v1 = vld [vmem:[%s6130_s2 + $0x68] sm:$0xff]  ;;  %v5629_v54 = vadd.f32 %v3838_v43, %v5527_v24 }
 0x3c1   : > { %v818_v18 = vsel %vm808_vm0, %v797_v61, 0.0  ;;  %v3839_v2 = vpop.f32.mrb[58].mxu0  ;;  %v5603_v35 = vadd.f32 %v5527_v24, %v3000_v23  ;;  %v824_v45 = vsel %vm808_vm0, %v800_v25, 0.0 }
 0x3c2   : > { %v819_v32 = vadd.f32 %v818_v18, %v817_v13  ;;  %v755_v6 = vpop.permute.xlu0 %754  ;;  %v743_v36 = vpop.permute.xlu1 %742  ;;  %v5638_v25 = vadd.f32 %v3839_v2, %v5527_v24 }
 0x3c3   : > { %v3003_v40 = vpop.f32.mrb[59].mxu0  ;;  %v799_v33 = vmul.f32 %v783_v8, %v743_v36  ;;  %v802_v17 = vmul.f32 %v786_v60, %v755_v6  ;;  %v3102_v62 = vadd.f32 %v3101_v4, %v5603_v35  ;;  %v791_v8 = vld [vmem:[%s6130_s2 + $0x78] sm:$0xff] }
 0x3c4   : > { %v821_v9 = vadd.f32 %v820_v56, %v819_v32  ;;  %v5616_v44 = vadd.f32 %v5527_v24, %v3003_v40 }
 0x3c5   : > { %v822_v49 = vsel %vm808_vm0, %v799_v33, 0.0  ;;  %v828_v28 = vsel %vm808_vm0, %v802_v17, 0.0 }
 0x3c6   : > { %v823_v46 = vadd.f32 %v822_v49, %v821_v9  ;;  %v763_v5 = vpop.permute.xlu0 %762  ;;  %v751_v41 = vpop.permute.xlu1 %750  ;;  %v3103_v59 = vadd.f32 %v3102_v62, %v5616_v44 }
 0x3c7   : > { %v801_v16 = vmul.f32 %v785_v22, %v751_v41  ;;  %v804_v47 = vmul.f32 %v788_v3, %v763_v5 }
 0x3c8   : > { %v825_v58 = vadd.f32 %v824_v45, %v823_v46  ;;  %v3104_v32 = vadd.f32 %v3103_v59, %v5629_v54 }
 0x3c9   : > { %v826_v31 = vsel %vm808_vm0, %v801_v16, 0.0  ;;  %v832_v61 = vsel %vm808_vm0, %v804_v47, 0.0 }
 0x3ca   : > { %v827_v51 = vadd.f32 %v826_v31, %v825_v58  ;;  %v759_v38 = vpop.permute.xlu1 %758  ;;  %v771_v63 = vpop.permute.xlu0 %770  ;;  %v3105_v22 = vadd.f32 %v3104_v32, %v5638_v25 }
 0x3cb   : > { %v803_v34 = vmul.f32 %v787_v55, %v759_v38  ;;  %v806_v13 = vmul.f32 %v790_v42, %v771_v63 }
 0x3cc   : > { %v829_v10 = vadd.f32 %v828_v28, %v827_v51 }
 0x3cd   : > { %v830_v15 = vsel %vm808_vm0, %v803_v34, 0.0  ;;  %v836_v36 = vsel %vm808_vm0, %v806_v13, 0.0 }
 0x3ce   : > { %v831_v29 = vadd.f32 %v830_v15, %v829_v10  ;;  %v767_v30 = vpop.permute.xlu1 %766 }
 0x3cf   : > { %v805_v57 = vmul.f32 %v789_v1, %v767_v30  ;;  %v367_v1 = vld [vmem:[%s6129_s1 + $0x3] sm:$0x1] }
 0x3d0   : > { %v833_v18 = vadd.f32 %v832_v61, %v831_v29 }
 0x3d1   : > { %v834_v23 = vsel %vm808_vm0, %v805_v57, 0.0  ;;  %v3842_v9 = vpop.f32.mrb[60].mxu0 }
 0x3d2   : > { %v835_v6 = vadd.f32 %v834_v23, %v833_v18  ;;  %v775_v56 = vpop.permute.xlu1 %774  ;;  %v3016_v33 = vpop.f32.mrb[61].mxu0  ;;  %v5650_v17 = vadd.f32 %v3842_v9, %v5527_v24 }
 0x3d3   : > { %v807_v40 = vmul.f32 %v791_v8, %v775_v56  ;;  %v5642_v60 = vadd.f32 %v5527_v24, %v3016_v33  ;;  %v3843_v49 = vpop.f32.mrb[62].mxu0 }
 0x3d4   : > { %v837_v43 = vadd.f32 %v836_v36, %v835_v6  ;;  %v3019_v5 = vpop.f32.mrb[63].mxu0  ;;  %v5654_v3 = vadd.f32 %v3843_v49, %v5527_v24 }
 0x3d5   : > { %v838_v48 = vsel %vm808_vm0, %v807_v40, 0.0  ;;  %v3106_v41 = vadd.f32 %v3105_v22, %v5642_v60  ;;  %v5647_v45 = vadd.f32 %v5527_v24, %v3019_v5 }
 0x3d6   : > { %v839_v46 = vadd.f32 %v838_v48, %v837_v43 }
 0x3d7   : > { %v3107_v16 = vadd.f32 %v3106_v41, %v5647_v45 }
 0x3d8   : > { %v840_v2 = vrot.slane %v839_v46, 4 }
 0x3d9   : > { %v3108_v58 = vadd.f32 %v3107_v16, %v5650_v17 }
 0x3da   : > { %v841_v4 = vadd.f32 %v840_v2, %v839_v46  ;;  %v3846_v31 = vpop.f32.mrb[64].mxu0 }
 0x3db   : > { %v3032_v62 = vpop.f32.mrb[65].mxu0  ;;  %v3109_v28 = vadd.f32 %v3108_v58, %v5654_v3  ;;  %v5670_v29 = vadd.f32 %v3846_v31, %v5527_v24 }
 0x3dc   : > { %v842_v55 = vrot.slane %v841_v4, 2  ;;  %v5658_v38 = vadd.f32 %v5527_v24, %v3032_v62  ;;  %v3847_v47 = vpop.f32.mrb[66].mxu0 }
 0x3dd   : > { %v3035_v34 = vpop.f32.mrb[67].mxu0  ;;  %v5678_v32 = vadd.f32 %v3847_v47, %v5527_v24 }
 0x3de   : > { %v843_v51 = vadd.f32 %v842_v55, %v841_v4  ;;  %v3110_v42 = vadd.f32 %v3109_v28, %v5658_v38  ;;  %v5663_v63 = vadd.f32 %v5527_v24, %v3035_v34 }
 0x3e0   : > { %v844_v10 = vrot.slane %v843_v51, 1  ;;  %v3111_v15 = vadd.f32 %v3110_v42, %v5663_v63 }
 0x3e2   : > { %v845_v59 = vadd.f32 %v844_v10, %v843_v51  ;;  %v3112_v57 = vadd.f32 %v3111_v15, %v5670_v29 }
 0x3e4   : > { %v5672_v30 = vadd.f32 %v845_v59, %v367_v1  ;;  %v3113_v56 = vadd.f32 %v3112_v57, %v5678_v32 }
 0x3e6   : > { %v848_v18 = vsel %vm847_vm2, %v5672_v30, 0.0 }
 0x3e7   : > { %849 = vadd.xlane.f32.xlu0 %v848_v18 }
 0x3e9   : > { %v3850_v61 = vpop.f32.mrb[68].mxu0 }
 0x3ea   : > { %v3048_v13 = vpop.f32.mrb[69].mxu0  ;;  %v5690_v43 = vadd.f32 %v3850_v61, %v5527_v24 }
 0x3eb   : > { %v3851_v8 = vpop.f32.mrb[70].mxu0  ;;  %v5681_v6 = vadd.f32 %v5527_v24, %v3048_v13 }
 0x3ec   : > { %v3051_v23 = vpop.f32.mrb[71].mxu0  ;;  %v5694_v49 = vadd.f32 %v3851_v8, %v5527_v24 }
 0x3ed   : > { %v3114_v36 = vadd.f32 %v3113_v56, %v5681_v6  ;;  %v5686_v40 = vadd.f32 %v5527_v24, %v3051_v23 }
 0x3ef   : > { %v3115_v9 = vadd.f32 %v3114_v36, %v5686_v40 }
 0x3f1   : > { %v3116_v33 = vadd.f32 %v3115_v9, %v5690_v43 }
 0x3f3   : > { %v3117_v2 = vadd.f32 %v3116_v33, %v5694_v49 }
 0x3f9   : > { %v3854_v48 = vpop.f32.mrb[72].mxu0 }
 0x3fa   : > { %v3064_v22 = vpop.f32.mrb[73].mxu0  ;;  %v5706_v55 = vadd.f32 %v3854_v48, %v5527_v24 }
 0x3fb   : > { %v5697_v46 = vadd.f32 %v5527_v24, %v3064_v22  ;;  %v3855_v5 = vpop.f32.mrb[74].mxu0 }
 0x3fc   : > { %v3067_v41 = vpop.f32.mrb[75].mxu0  ;;  %v5710_v62 = vadd.f32 %v3855_v5, %v5527_v24 }
 0x3fd   : > { %v3118_v16 = vadd.f32 %v3117_v2, %v5697_v46  ;;  %v5702_v4 = vadd.f32 %v5527_v24, %v3067_v41 }
 0x3ff   : > { %v3119_v58 = vadd.f32 %v3118_v16, %v5702_v4 }
 0x401   : > { %v3120_v31 = vadd.f32 %v3119_v58, %v5706_v55 }
 0x403   : > { %v3121_v34 = vadd.f32 %v3120_v31, %v5710_v62 }
 0x409   : > { %v3858_v51 = vpop.f32.mrb[76].mxu0 }
 0x40a   : > { %v3080_v28 = vpop.f32.mrb[77].mxu0  ;;  %v5721_v59 = vadd.f32 %v3858_v51, %v5527_v24  ;;  %v3198_v51 = vld [vmem:[%s6135_s7 + $0x8] sm:$0xff] }
 0x40b   : > { %v5713_v47 = vadd.f32 %v5527_v24, %v3080_v28  ;;  %v3859_v42 = vpop.f32.mrb[78].mxu0 }
 0x40c   : > { %v3083_v10 = vpop.f32.mrb[79].mxu0  ;;  %v5725_v13 = vadd.f32 %v3859_v42, %v5527_v24 }
 0x40d   : > { %v3122_v1 = vadd.f32 %v3121_v34, %v5713_v47  ;;  %v5718_v15 = vadd.f32 %v5527_v24, %v3083_v10  ;;  %v3197_v34 = vld [vmem:[%s6135_s7] sm:$0xff]  ;;  %v3200_v10 = vld [vmem:[%s6135_s7 + $0x18] sm:$0xff] }
 0x40f   : > { %v3123_v61 = vadd.f32 %v3122_v1, %v5718_v15 }
 0x411   : > { %v3124_v57 = vadd.f32 %v3123_v61, %v5721_v59 }
 0x413   : > { %v3125_v18 = vadd.f32 %v3124_v57, %v5725_v13 }
 0x415   : > { %v3126_v8 = vrot.slane %v3125_v18, 4 }
 0x417   : > { %v3127_v23 = vadd.f32 %v3126_v8, %v3125_v18  ;;  %v3201_v18 = vld [vmem:[%s6135_s7 + $0x20] sm:$0xff] }
 0x419   : > { %v3128_v56 = vrot.slane %v3127_v23, 2 }
 0x41b   : > { %v3129_v36 = vadd.f32 %v3128_v56, %v3127_v23  ;;  %v3202_v56 = vld [vmem:[%s6135_s7 + $0x28] sm:$0xff] }
 0x41d   : > { %v3130_v9 = vrot.slane %v3129_v36, 1 }
 0x41f   : > { %v3131_v33 = vadd.f32 %v3130_v9, %v3129_v36 }
 0x421   : > { %v3133_v48 = vmul.f32 0.00390625, %v3131_v33 }
 0x423   : > { %3135 = vbcast.lane.b32.xlu1 %v3133_v48, 256  ;;  %3167 = vbcast.lane.b32.xlu0 %v3133_v48, 320 }
 0x427   : > { %3139 = vbcast.lane.b32.xlu1 %v3133_v48, 264  ;;  %3187 = vbcast.lane.b32.xlu0 %v3133_v48, 360 }
 0x42b   : > { %3143 = vbcast.lane.b32.xlu1 %v3133_v48, 272  ;;  %3191 = vbcast.lane.b32.xlu0 %v3133_v48, 368 }
 0x42f   : > { %3147 = vbcast.lane.b32.xlu1 %v3133_v48, 280  ;;  %3195 = vbcast.lane.b32.xlu0 %v3133_v48, 376 }
 0x433   : > { %3151 = vbcast.lane.b32.xlu1 %v3133_v48, 288 }
 0x437   : > { %3155 = vbcast.lane.b32.xlu1 %v3133_v48, 296 }
 0x43b   : > { %3159 = vbcast.lane.b32.xlu1 %v3133_v48, 304 }
 0x43f   : > { %3163 = vbcast.lane.b32.xlu1 %v3133_v48, 312 }
 0x443   : > { %3171 = vbcast.lane.b32.xlu1 %v3133_v48, 328 }
 0x447   : > { %3175 = vbcast.lane.b32.xlu1 %v3133_v48, 336 }
 0x44b   : > { %3179 = vbcast.lane.b32.xlu1 %v3133_v48, 344 }
 0x44f   : > { %3183 = vbcast.lane.b32.xlu1 %v3133_v48, 352 }
 0x474   : > { %v850_v24 = vpop.xlane.xlu0 %849 }
 0x475   : > { %v852_v22 = vmul.f32 0.03125, %v850_v24 }
 0x477   : > { %v5730_v5 = vsub.f32 %v5672_v30, %v852_v22  ;;  %v3199_v30 = vld [vmem:[%s6135_s7 + $0x10] sm:$0xff] }
 0x478   : > { %v3203_v22 = vld [vmem:[%s6135_s7 + $0x30] sm:$0xff] }
 0x479   : > { %v854_v41 = vmul.f32 %v5730_v5, %v5730_v5 }
 0x47b   : > { %v855_v2 = vsel %vm847_vm2, %v854_v41, 0.0 }
 0x47c   : > { %856 = vadd.xlane.f32.xlu1 %v855_v2 }
 0x495   : > { %v3136_v16 = vpop.permute.xlu1 %3135 }
 0x496   : > { %v3213_v61 = vmul.f32 %v3197_v34, %v3136_v16  ;;  %v3204_v34 = vld [vmem:[%s6135_s7 + $0x38] sm:$0xff] }
 0x498   : > { %v3230_v9 = vsel %vm3229_vm6, %v3213_v61, 0.0 }
 0x499   : > { %v3140_v58 = vpop.permute.xlu1 %3139 }
 0x49a   : > { %v3214_v42 = vmul.f32 %v3198_v51, %v3140_v58 }
 0x49c   : > { %v3231_v8 = vsel %vm3229_vm6, %v3214_v42, 0.0  ;;  %v3168_v42 = vpop.permute.xlu0 %3167 }
 0x49d   : > { %v3144_v31 = vpop.permute.xlu1 %3143  ;;  %v3232_v24 = vadd.f32 %v3231_v8, %v3230_v9 }
 0x49e   : > { %v3215_v57 = vmul.f32 %v3199_v30, %v3144_v31 }
 0x4a0   : > { %v3233_v33 = vsel %vm3229_vm6, %v3215_v57, 0.0 }
 0x4a1   : > { %v3148_v28 = vpop.permute.xlu1 %3147  ;;  %v3234_v16 = vadd.f32 %v3233_v33, %v3232_v24 }
 0x4a2   : > { %v3216_v23 = vmul.f32 %v3200_v10, %v3148_v28 }
 0x4a4   : > { %v3235_v41 = vsel %vm3229_vm6, %v3216_v23, 0.0 }
 0x4a5   : > { %v3152_v1 = vpop.permute.xlu1 %3151  ;;  %v3236_v28 = vadd.f32 %v3235_v41, %v3234_v16 }
 0x4a6   : > { %v3217_v48 = vmul.f32 %v3201_v18, %v3152_v1  ;;  %v3205_v18 = vld [vmem:[%s6135_s7 + $0x40] sm:$0xff] }
 0x4a7   : > { %v3221_v33 = vmul.f32 %v3205_v18, %v3168_v42 }
 0x4a8   : > { %v3237_v31 = vsel %vm3229_vm6, %v3217_v48, 0.0  ;;  %v3188_v48 = vpop.permute.xlu0 %3187 }
 0x4a9   : > { %v3156_v36 = vpop.permute.xlu1 %3155  ;;  %v3238_v10 = vadd.f32 %v3237_v31, %v3236_v28  ;;  %v3245_v16 = vsel %vm3229_vm6, %v3221_v33, 0.0  ;;  %v3212_v33 = vld [vmem:[%s6135_s7 + $0x78] sm:$0xff] }
 0x4aa   : > { %v3218_v2 = vmul.f32 %v3202_v56, %v3156_v36  ;;  %v3206_v36 = vld [vmem:[%s6135_s7 + $0x48] sm:$0xff] }
 0x4ac   : > { %v3239_v30 = vsel %vm3229_vm6, %v3218_v2, 0.0 }
 0x4ad   : > { %v3160_v58 = vpop.permute.xlu1 %3159  ;;  %v3240_v8 = vadd.f32 %v3239_v30, %v3238_v10 }
 0x4ae   : > { %v3219_v51 = vmul.f32 %v3203_v22, %v3160_v58  ;;  %v3207_v22 = vld [vmem:[%s6135_s7 + $0x50] sm:$0xff] }
 0x4b0   : > { %v3241_v61 = vsel %vm3229_vm6, %v3219_v51, 0.0  ;;  %v3208_v51 = vld [vmem:[%s6135_s7 + $0x58] sm:$0xff] }
 0x4b1   : > { %v3164_v1 = vpop.permute.xlu1 %3163  ;;  %v3242_v56 = vadd.f32 %v3241_v61, %v3240_v8  ;;  %v3211_v8 = vld [vmem:[%s6135_s7 + $0x70] sm:$0xff] }
 0x4b2   : > { %v3220_v57 = vmul.f32 %v3204_v34, %v3164_v1  ;;  %v3192_v34 = vpop.permute.xlu0 %3191  ;;  %v3210_v1 = vld [vmem:[%s6135_s7 + $0x68] sm:$0xff] }
 0x4b4   : > { %v3243_v23 = vsel %vm3229_vm6, %v3220_v57, 0.0  ;;  %v3209_v57 = vld [vmem:[%s6135_s7 + $0x60] sm:$0xff] }
 0x4b5   : > { %v3172_v9 = vpop.permute.xlu1 %3171  ;;  %v3244_v24 = vadd.f32 %v3243_v23, %v3242_v56 }
 0x4b6   : > { %v3222_v41 = vmul.f32 %v3206_v36, %v3172_v9  ;;  %v3226_v36 = vmul.f32 %v3210_v1, %v3188_v48 }
 0x4b7   : > { %v3246_v31 = vadd.f32 %v3245_v16, %v3244_v24  ;;  %v3196_v24 = vpop.permute.xlu0 %3195 }
 0x4b8   : > { %v3247_v28 = vsel %vm3229_vm6, %v3222_v41, 0.0  ;;  %v3227_v41 = vmul.f32 %v3211_v8, %v3192_v34 }
 0x4b9   : > { %v3176_v2 = vpop.permute.xlu1 %3175  ;;  %v3248_v61 = vadd.f32 %v3247_v28, %v3246_v31  ;;  %v3228_v31 = vmul.f32 %v3212_v33, %v3196_v24  ;;  %v368_v24 = vld [vmem:[%s6129_s1 + $0x4] sm:$0x1] }
 0x4ba   : > { %v3223_v58 = vmul.f32 %v3207_v22, %v3176_v2  ;;  %v3257_v28 = vsel %vm3229_vm6, %v3227_v41, 0.0 }
 0x4bb   : > { %v3259_v48 = vsel %vm3229_vm6, %v3228_v31, 0.0 }
 0x4bc   : > { %v3249_v42 = vsel %vm3229_vm6, %v3223_v58, 0.0  ;;  %v3255_v58 = vsel %vm3229_vm6, %v3226_v36, 0.0  ;;  %v865_v36 = vlaneseq }
 0x4bd   : > { %v3180_v30 = vpop.permute.xlu1 %3179  ;;  %v3250_v23 = vadd.f32 %v3249_v42, %v3248_v61 }
 0x4be   : > { %v3224_v10 = vmul.f32 %v3208_v51, %v3180_v30  ;;  %v5803_v41 = vshrl.u32 %v865_v36, 7  ;;  %v884_v36 = vld [vmem:[%s6131_s3] sm:$0xff] }
 0x4c0   : > { %v3251_v18 = vsel %vm3229_vm6, %v3224_v10, 0.0  ;;  %v867_v31 = vsub.s32 0, %v5803_v41  ;;  %v4072_v41 = vld [vmem:[%s4279_s16 + $0x8] sm:$0xff] }
 0x4c1   : > { %v3184_v56 = vpop.permute.xlu1 %3183  ;;  %v3252_v22 = vadd.f32 %v3251_v18, %v3250_v23 }
 0x4c2   : > { %v3225_v9 = vmul.f32 %v3209_v57, %v3184_v56 }
 0x4c4   : > { %v3253_v2 = vsel %vm3229_vm6, %v3225_v9, 0.0 }
 0x4c5   : > { %v3254_v16 = vadd.f32 %v3253_v2, %v3252_v22  ;;  %v369_v2 = vld [vmem:[%s6129_s1 + $0x5] sm:$0x1] }
 0x4c7   : > { %v3256_v51 = vadd.f32 %v3255_v58, %v3254_v16 }
 0x4c9   : > { %v3258_v30 = vadd.f32 %v3257_v28, %v3256_v51 }
 0x4cb   : > { %v3260_v42 = vadd.f32 %v3259_v48, %v3258_v30 }
 0x4cd   : > { %v3261_v10 = vrot.slane %v3260_v42, 4 }
 0x4cf   : > { %v3262_v1 = vadd.f32 %v3261_v10, %v3260_v42 }
 0x4d1   : > { %v3263_v61 = vrot.slane %v3262_v1, 2 }
 0x4d3   : > { %v3264_v57 = vadd.f32 %v3263_v61, %v3262_v1 }
 0x4d5   : > { %v3265_v56 = vrot.slane %v3264_v57, 1 }
 0x4d7   : > { %v3266_v18 = vadd.f32 %v3265_v56, %v3264_v57 }
 0x4d9   : > { %v3267_v34 = vmax.f32 %v3266_v18, 0.0 }
 0x4db   : > { %3269 = vbcast.lane.b32.xlu0 %v3267_v34, 256 }
 0x509   : > { %v857_v8 = vpop.xlane.xlu1 %856 }
 0x50a   : > { %v858_v23 = vmul.f32 0.03125, %v857_v8 }
 0x50c   : > { %v859_v9 = vadd.f32 1e-05, %v858_v23  ;;  %v885_v23 = vld [vmem:[%s6131_s3 + $0x8] sm:$0xff] }
 0x50e   : > { %4015 = vrsqrt.f32 %v859_v9 }
 0x518   : > { %v4016_v33 = vpop.eup %4015 }
 0x519   : > { %v861_v22 = vmul.f32 %v4016_v33, %v5730_v5  ;;  %v3271_v5 = vld [vmem:[%s6136_s8] sm:$0xff]  ;;  %v886_v33 = vld [vmem:[%s6131_s3 + $0x10] sm:$0xff] }
 0x51b   : > { %v862_v16 = vmul.f32 %v861_v22, %v368_v24 }
 0x51d   : > { %v863_v58 = vadd.f32 %v862_v16, %v369_v2 }
 0x51f   : > { %v864_v51 = vmax.f32 %v863_v58, 0.0 }
 0x521   : > { %v868_v28 = vrot.slane %v864_v51, %v867_v31  ;;  %v887_v51 = vld [vmem:[%s6131_s3 + $0x18] sm:$0xff] }
 0x523   : > { %870 = vbcast.lane.b32.xlu0 %v868_v28, 256 }
 0x527   : > { %874 = vbcast.lane.b32.xlu0 %v868_v28, 264 }
 0x52b   : > { %878 = vbcast.lane.b32.xlu0 %v868_v28, 272 }
 0x52f   : > { %882 = vbcast.lane.b32.xlu0 %v868_v28, 280 }
 0x54d   : > { %v3270_v30 = vpop.permute.xlu0 %3269 }
 0x54e   : > { %v3272_v48 = vmul.f32 %v3271_v5, %v3270_v30 }
 0x550   : > { %v3273_v42 = vrot.slane %v3272_v48, 4 }
 0x552   : > { %v3274_v10 = vadd.f32 %v3273_v42, %v3272_v48 }
 0x554   : > { %v3275_v1 = vrot.slane %v3274_v10, 2 }
 0x556   : > { %v3276_v61 = vadd.f32 %v3275_v1, %v3274_v10 }
 0x558   : > { %v3277_v57 = vrot.slane %v3276_v61, 1 }
 0x55a   : > { %v3278_v56 = vadd.f32 %v3277_v57, %v3276_v61 }
 0x55c   : > { %v3560_v18 = vmul.f32 -1.442695, %v3278_v56 }
 0x55e   : > { %4017 = vpow2.f32 %v3560_v18 }
 0x568   : > { %v4018_v8 = vpop.eup %4017 }
 0x569   : > { %v3282_v24 = vadd.f32 1.0, %v4018_v8 }
 0x56b   : > { %4019 = vrcp.f32 %v3282_v24 }
 0x575   : > { %v4020_v61 = vpop.eup %4019 }
 0x576   : > { %v5827_v18 = vmul.f32 %v4020_v61, %v5539_v0  ;;  %v5833_v8 = vmul.f32 %v4020_v61, %v5547_v39  ;;  %v5848_v24 = vmul.f32 %v4020_v61, %v5600_v19  ;;  %v5854_v39 = vmul.f32 %v4020_v61, %v5616_v44 }
 0x577   : > { %v5869_v19 = vmul.f32 %v4020_v61, %v5647_v45  ;;  %v5872_v44 = vmul.f32 %v4020_v61, %v5650_v17  ;;  %v5890_v45 = vmul.f32 %v4020_v61, %v5681_v6  ;;  %v5908_v6 = vmul.f32 %v4020_v61, %v5706_v55 }
 0x578   : > { %v5925_v55 = vmul.f32 %v4020_v61, %v5725_v13  ;;  %v4077_v13 = vld [vmem:[%s4279_s16 + $0x30] sm:$0xff] }
 0x579   : > { %6228 = vst [vmem:[#allocation10_spill] sm:$0xff] %v5908_v6  ;;  %v4092_v6 = vld [vmem:[%s4279_s16 + $0xa8] sm:$0xff] }
 0x57a   : > { %6233 = vst [vmem:[#allocation14_spill] sm:$0xff] %v5925_v55  ;;  %v4088_v55 = vld [vmem:[%s4279_s16 + $0x88] sm:$0xff] }
 0x595   : > { %v871_v34 = vpop.permute.xlu0 %870 }
 0x596   : > { %v888_v16 = vmul.f32 %v884_v36, %v871_v34  ;;  %v5830_v34 = vmul.f32 %v4020_v61, %v5530_v52  ;;  %v5842_v36 = vmul.f32 %v4020_v61, %v5574_v7  ;;  %v5851_v52 = vmul.f32 %v4020_v61, %v5603_v35 }
 0x597   : > { %v5863_v7 = vmul.f32 %v4020_v61, %v5638_v25  ;;  %v5884_v25 = vmul.f32 %v4020_v61, %v5670_v29  ;;  %v5902_v29 = vmul.f32 %v4020_v61, %v5697_v46  ;;  %v5919_v46 = vmul.f32 %v4020_v61, %v5718_v15 }
 0x599   : > { %v875_v9 = vpop.permute.xlu0 %874  ;;  %6226 = vst [vmem:[#allocation9_spill] sm:$0xff] %v5902_v29  ;;  %6231 = vst [vmem:[#allocation12_spill] sm:$0xff] %v5919_v46 }
 0x59a   : > { %v889_v22 = vmul.f32 %v885_v23, %v875_v9  ;;  %v5836_v23 = vmul.f32 %v4020_v61, %v5559_v53  ;;  %v5839_v9 = vmul.f32 %v4020_v61, %v5562_v20  ;;  %v5857_v53 = vmul.f32 %v4020_v61, %v5629_v54  ;;  %v365_v20 = vld [vmem:[%s6129_s1 + $0x1] sm:$0x1] }
 0x59b   : > { %v5875_v54 = vmul.f32 %v4020_v61, %v5654_v3  ;;  %v5893_v3 = vmul.f32 %v4020_v61, %v5686_v40  ;;  %v5911_v40 = vmul.f32 %v4020_v61, %v5710_v62  ;;  %v4071_v62 = vld [vmem:[%s4279_s16] sm:$0xff] }
 0x59c   : > { %v892_v28 = vadd.f32 %v889_v22, %v888_v16  ;;  %v5878_v22 = vmul.f32 %v4020_v61, %v5658_v38  ;;  %v5896_v38 = vmul.f32 %v4020_v61, %v5690_v43 }
 0x59d   : > { %v879_v2 = vpop.permute.xlu0 %878  ;;  %6223 = vst [vmem:[#allocation20_spill] sm:$0xff] %v5893_v3  ;;  %6229 = vst [vmem:[#allocation19_spill] sm:$0xff] %v5911_v40  ;;  %v4091_v40 = vld [vmem:[%s4279_s16 + $0xa0] sm:$0xff] }
 0x59e   : > { %v890_v58 = vmul.f32 %v886_v33, %v879_v2  ;;  %v5845_v33 = vmul.f32 %v4020_v61, %v5587_v37  ;;  %v5866_v37 = vmul.f32 %v4020_v61, %v5642_v60  ;;  %v5881_v2 = vmul.f32 %v4020_v61, %v5663_v63  ;;  %6224 = vst [vmem:[#allocation7_spill] sm:$0xff] %v5896_v38  ;;  %v4095_v38 = vld [vmem:[%s4279_s16 + $0xc0] sm:$0xff] }
 0x59f   : > { %v5887_v60 = vmul.f32 %v4020_v61, %v5678_v32  ;;  %v5899_v63 = vmul.f32 %v4020_v61, %v5694_v49  ;;  %v5905_v32 = vmul.f32 %v4020_v61, %v5702_v4  ;;  %v5916_v49 = vmul.f32 %v4020_v61, %v5713_v47 }
 0x5a0   : > { %v893_v30 = vadd.f32 %v892_v28, %v890_v58  ;;  %v5922_v4 = vmul.f32 %v4020_v61, %v5721_v59  ;;  %v4073_v58 = vld [vmem:[%s4279_s16 + $0x10] sm:$0xff]  ;;  %v4075_v28 = vld [vmem:[%s4279_s16 + $0x20] sm:$0xff] }
 0x5a1   : > { %v883_v5 = vpop.permute.xlu0 %882  ;;  %6225 = vst [vmem:[#allocation8_spill] sm:$0xff] %v5899_v63  ;;  %6227 = vst [vmem:[#allocation22_spill] sm:$0xff] %v5905_v32 }
 0x5a2   : > { %v891_v48 = vmul.f32 %v887_v51, %v883_v5  ;;  %6230 = vst [vmem:[#allocation11_spill] sm:$0xff] %v5916_v49  ;;  %6232 = vst [vmem:[#allocation13_spill] sm:$0xff] %v5922_v4  ;;  %v4074_v51 = vld [vmem:[%s4279_s16 + $0x18] sm:$0xff]  ;;  %v4076_v5 = vld [vmem:[%s4279_s16 + $0x28] sm:$0xff] }
 0x5a3   : > { %v4089_v4 = vld [vmem:[%s4279_s16 + $0x90] sm:$0xff] }
 0x5a4   : > { %v894_v42 = vadd.f32 %v893_v30, %v891_v48 }
 0x5a6   : > { %v895_v10 = vrot.slane %v894_v42, 4 }
 0x5a8   : > { %v896_v1 = vadd.f32 %v895_v10, %v894_v42  ;;  %v4078_v42 = vld [vmem:[%s4279_s16 + $0x38] sm:$0xff] }
 0x5aa   : > { %v897_v57 = vrot.slane %v896_v1, 2 }
 0x5ac   : > { %v898_v56 = vadd.f32 %v897_v57, %v896_v1  ;;  %v4079_v1 = vld [vmem:[%s4279_s16 + $0x40] sm:$0xff]  ;;  %v4080_v57 = vld [vmem:[%s4279_s16 + $0x48] sm:$0xff] }
 0x5ae   : > { %v899_v0 = vrot.slane %v898_v56, 1 }
 0x5b0   : > { %v900_v35 = vadd.f32 %v899_v0, %v898_v56  ;;  %v4081_v0 = vld [vmem:[%s4279_s16 + $0x50] sm:$0xff] }
 0x5b2   : > { %v901_v17 = vadd.f32 %v900_v35, %v365_v20  ;;  %v4082_v35 = vld [vmem:[%s4279_s16 + $0x58] sm:$0xff] }
 0x5b4   : > { %v905_v43 = vrot.slane %v901_v17, %v867_v31 }
 0x5b6   : > { %v906_v16 = vadd.f32 %v4071_v62, %v905_v43  ;;  %v907_v31 = vadd.f32 %v4072_v41, %v905_v43  ;;  %v908_v47 = vadd.f32 %v4073_v58, %v905_v43  ;;  %v909_v15 = vadd.f32 %v4074_v51, %v905_v43  ;;  %v4083_v62 = vld [vmem:[%s4279_s16 + $0x60] sm:$0xff]  ;;  %v4084_v58 = vld [vmem:[%s4279_s16 + $0x68] sm:$0xff] }
 0x5b7   : > { %v910_v59 = vadd.f32 %v4075_v28, %v905_v43  ;;  %v911_v30 = vadd.f32 %v4076_v5, %v905_v43  ;;  %v912_v48 = vadd.f32 %v4077_v13, %v905_v43  ;;  %v913_v10 = vadd.f32 %v4078_v42, %v905_v43  ;;  %v4085_v28 = vld [vmem:[%s4279_s16 + $0x70] sm:$0xff]  ;;  %v4086_v13 = vld [vmem:[%s4279_s16 + $0x78] sm:$0xff] }
 0x5b8   : > { %v914_v61 = vadd.f32 %v4079_v1, %v905_v43  ;;  %v915_v56 = vadd.f32 %v4080_v57, %v905_v43  ;;  %v916_v20 = vadd.f32 %v4081_v0, %v905_v43  ;;  %v917_v17 = vadd.f32 %v4082_v35, %v905_v43  ;;  %v4087_v1 = vld [vmem:[%s4279_s16 + $0x80] sm:$0xff]  ;;  %v4090_v35 = vld [vmem:[%s4279_s16 + $0x98] sm:$0xff] }
 0x5b9   : > { %v918_v41 = vadd.f32 %v4083_v62, %v905_v43  ;;  %v919_v51 = vadd.f32 %v4084_v58, %v905_v43  ;;  %v920_v5 = vadd.f32 %v4085_v28, %v905_v43  ;;  %v921_v42 = vadd.f32 %v4086_v13, %v905_v43  ;;  %v4093_v58 = vld [vmem:[%s4279_s16 + $0xb0] sm:$0xff]  ;;  %v4094_v28 = vld [vmem:[%s4279_s16 + $0xb8] sm:$0xff]  ;;  %s323_s16 = sand.u32 1, %s4150_s10  }
 0x5ba   : > { %v922_v57 = vadd.f32 %v4087_v1, %v905_v43  ;;  %v923_v0 = vadd.f32 %v4088_v55, %v905_v43  ;;  %v924_v46 = vadd.f32 %v4089_v4, %v905_v43  ;;  %v925_v49 = vadd.f32 %v4090_v35, %v905_v43  ;;  %s3493_s21 = sshll.u32 %s323_s16, 8  ;;  %s6087_s17 = scalar_lea.sflag [#allocation5], %s323_s16 }
 0x5bb   : > { %v926_v62 = vadd.f32 %v4091_v40, %v905_v43  ;;  %v927_v32 = vadd.f32 %v4092_v6, %v905_v43  ;;  %v928_v29 = vadd.f32 %v4093_v58, %v905_v43  ;;  %v929_v63 = vadd.f32 %v4094_v28, %v905_v43  ;;  %s6026_s22 = scalar_lea.vmem [#allocation4], %s3493_s21 }
 0x5bc   : > { %v930_v13 = vadd.f32 %v4095_v38, %v905_v43  ;;  %v931_v3 = vadd.f32 %v5478_v26, %v905_v43  ;;  %v932_v1 = vadd.f32 %v5485_v50, %v905_v43  ;;  %v933_v55 = vadd.f32 %v5490_v27, %v905_v43  ;;  %s3427_s24 = sshll.u32 %s6026_s22, 4  ;;  %s6067_s24 = int_to_ptr.vmem [resolvable:$true] %s3427_s24 }
 0x5bd   : > { %v934_v4 = vadd.f32 %v5494_v14, %v905_v43  ;;  %v935_v35 = vadd.f32 %v5499_v12, %v905_v43  ;;  %v936_v40 = vadd.f32 %v5506_v21, %v905_v43  ;;  %v937_v6 = vadd.f32 %v5511_v11, %v905_v43  ;;  %s4096_s28 = scalar_lea.vmem %s6067_s24, 4096  ;;  %p4103_p0 = scmp.lt.s32.totalorder %s6067_s24, %s4101_s27 }
 0x5be   : > { %v3317_v58 = vadd.f32 %v5827_v18, %v906_v16  ;;  %v3318_v28 = vadd.f32 %v5830_v34, %v907_v31  ;;  %v3319_v38 = vadd.f32 %v5833_v8, %v908_v47  ;;  %v3320_v26 = vadd.f32 %v5836_v23, %v909_v15  ;;  %p4097_p11 = scmp.ne.s32.totalorder %s6067_s24, %s4096_s28  ;;  %p4104_p1 = scmp.lt.s32.totalorder %s4102_s29, %s4096_s28 }
 0x5bf   : > { %v3321_v50 = vadd.f32 %v5839_v9, %v910_v59  ;;  %v3322_v27 = vadd.f32 %v5842_v36, %v911_v30  ;;  %v3323_v14 = vadd.f32 %v5845_v33, %v912_v48  ;;  %v3324_v12 = vadd.f32 %v5848_v24, %v913_v10  ;;  %v6244_v59 = vld [vmem:[#allocation14_spill] sm:$0xff] }
 0x5c0   : > { %v3325_v21 = vadd.f32 %v5851_v52, %v914_v61  ;;  %v3326_v11 = vadd.f32 %v5854_v39, %v915_v56  ;;  %v3327_v18 = vadd.f32 %v5857_v53, %v916_v20  ;;  %v3328_v34 = vadd.f32 %v5863_v7, %v917_v17  ;;  %v6234_v7 = vld [vmem:[#allocation20_spill] sm:$0xff]  ;;  %p4098_p12 = pnand %p4097_p11, %p4255_p5  ;;  %p4105_p2 = por %p4104_p1, %p4103_p0 }
 0x5c1   : > { %v3329_v8 = vadd.f32 %v5866_v37, %v918_v41  ;;  %v3330_v23 = vadd.f32 %v5869_v19, %v919_v51  ;;  %v3331_v9 = vadd.f32 %v5872_v44, %v920_v5  ;;  %v3332_v36 = vadd.f32 %v5875_v54, %v921_v42  ;;  %v6235_v19 = vld [vmem:[#allocation7_spill] sm:$0xff]  ;;  %v6236_v54 = vld [vmem:[#allocation8_spill] sm:$0xff] }
 0x5c2   : > { %v5979_v33 = vadd.f32 %v5878_v22, %v922_v57  ;;  %v5982_v24 = vadd.f32 %v5881_v2, %v923_v0  ;;  %v5985_v52 = vadd.f32 %v5884_v25, %v924_v46  ;;  %v5988_v39 = vadd.f32 %v5887_v60, %v925_v49  ;;  %v6237_v2 = vld [vmem:[#allocation9_spill] sm:$0xff]  ;;  %v6238_v25 = vld [vmem:[#allocation22_spill] sm:$0xff]  ;;  %p4099_p13 = pneg %p4098_p12 }
 0x5c3   : > { %v5991_v53 = vadd.f32 %v5890_v45, %v926_v62  ;;  %v5994_v37 = vadd.f32 %v6234_v7, %v927_v32  ;;  %v5997_v44 = vadd.f32 %v6235_v19, %v928_v29  ;;  %v6000_v22 = vadd.f32 %v6236_v54, %v929_v63  ;;  %v6239_v60 = vld [vmem:[#allocation10_spill] sm:$0xff]  ;;  %v6240_v45 = vld [vmem:[#allocation19_spill] sm:$0xff]  ;;  %v6242_v29 = vld [vmem:[#allocation12_spill] sm:$0xff] }
 0x5c4   : > { %v6003_v43 = vadd.f32 %v6237_v2, %v930_v13  ;;  %v6006_v46 = vadd.f32 %v6238_v25, %v931_v3  ;;  %v6009_v49 = vadd.f32 %v6239_v60, %v932_v1  ;;  %v6012_v16 = vadd.f32 %v6240_v45, %v933_v55  ;;  %v6241_v32 = vld [vmem:[#allocation11_spill] sm:$0xff]  ;;  %v6243_v63 = vld [vmem:[#allocation13_spill] sm:$0xff]  ;;  %p4106_p3 = pnand %p4105_p2, %p4099_p13 }
 0x5c5   : > { %v6015_v31 = vadd.f32 %v6241_v32, %v934_v4  ;;  %v6018_v47 = vadd.f32 %v6242_v29, %v935_v35  ;;  %v6021_v15 = vadd.f32 %v6243_v63, %v936_v40  ;;  %v6024_v30 = vadd.f32 %v6244_v59, %v937_v6 }
 0x5c6   : > { %v3349_v3 = vmax.f32 %v3317_v58, 0.0  ;;  %v3350_v48 = vmax.f32 %v3318_v28, 0.0  ;;  %v3351_v10 = vmax.f32 %v3319_v38, 0.0  ;;  %v3352_v61 = vmax.f32 %v3320_v26, 0.0 }
 0x5c7   : > { %v3353_v56 = vmax.f32 %v3321_v50, 0.0  ;;  %v3354_v20 = vmax.f32 %v3322_v27, 0.0  ;;  %v3355_v17 = vmax.f32 %v3323_v14, 0.0  ;;  %v3356_v41 = vmax.f32 %v3324_v12, 0.0 }
 0x5c8   : > { %v3357_v51 = vmax.f32 %v3325_v21, 0.0  ;;  %v3358_v5 = vmax.f32 %v3326_v11, 0.0  ;;  %v3359_v42 = vmax.f32 %v3327_v18, 0.0  ;;  %v3360_v57 = vmax.f32 %v3328_v34, 0.0  ;;  %3381 = vst [vmem:[%s6026_s22] sm:$0xff] %v3349_v3  ;;  %3382 = vst [vmem:[%s6026_s22 + $0x8] sm:$0xff] %v3350_v48 }
 0x5c9   : > { %3383 = vst [vmem:[%s6026_s22 + $0x10] sm:$0xff] %v3351_v10  ;;  %3384 = vst [vmem:[%s6026_s22 + $0x18] sm:$0xff] %v3352_v61  ;;  %v3361_v0 = vmax.f32 %v3329_v8, 0.0  ;;  %v3362_v62 = vmax.f32 %v3330_v23, 0.0  ;;  %v3363_v13 = vmax.f32 %v3331_v9, 0.0  ;;  %v3364_v1 = vmax.f32 %v3332_v36, 0.0 }
 0x5ca   : > { %3385 = vst [vmem:[%s6026_s22 + $0x20] sm:$0xff] %v3353_v56  ;;  %3386 = vst [vmem:[%s6026_s22 + $0x28] sm:$0xff] %v3354_v20  ;;  %v3365_v55 = vmax.f32 %v5979_v33, 0.0  ;;  %v3366_v4 = vmax.f32 %v5982_v24, 0.0  ;;  %v3367_v35 = vmax.f32 %v5985_v52, 0.0  ;;  %v3368_v40 = vmax.f32 %v5988_v39, 0.0 }
 0x5cb   : > { %3387 = vst [vmem:[%s6026_s22 + $0x30] sm:$0xff] %v3355_v17  ;;  %3388 = vst [vmem:[%s6026_s22 + $0x38] sm:$0xff] %v3356_v41  ;;  %v3369_v6 = vmax.f32 %v5991_v53, 0.0  ;;  %v3370_v58 = vmax.f32 %v5994_v37, 0.0  ;;  %v3371_v28 = vmax.f32 %v5997_v44, 0.0  ;;  %v3372_v38 = vmax.f32 %v6000_v22, 0.0 }
 0x5cc   : > { %3389 = vst [vmem:[%s6026_s22 + $0x40] sm:$0xff] %v3357_v51  ;;  %3390 = vst [vmem:[%s6026_s22 + $0x48] sm:$0xff] %v3358_v5  ;;  %v3373_v26 = vmax.f32 %v6003_v43, 0.0  ;;  %v3374_v50 = vmax.f32 %v6006_v46, 0.0  ;;  %v3375_v27 = vmax.f32 %v6009_v49, 0.0  ;;  %v3376_v14 = vmax.f32 %v6012_v16, 0.0 }
 0x5cd   : > { %3391 = vst [vmem:[%s6026_s22 + $0x50] sm:$0xff] %v3359_v42  ;;  %3392 = vst [vmem:[%s6026_s22 + $0x58] sm:$0xff] %v3360_v57  ;;  %v3377_v12 = vmax.f32 %v6015_v31, 0.0  ;;  %v3378_v21 = vmax.f32 %v6018_v47, 0.0  ;;  %v3379_v11 = vmax.f32 %v6021_v15, 0.0  ;;  %v3380_v18 = vmax.f32 %v6024_v30, 0.0 }
 0x5ce   : > { %3393 = vst [vmem:[%s6026_s22 + $0x60] sm:$0xff] %v3361_v0  ;;  %3394 = vst [vmem:[%s6026_s22 + $0x68] sm:$0xff] %v3362_v62 }
 0x5cf   : > { %3395 = vst [vmem:[%s6026_s22 + $0x70] sm:$0xff] %v3363_v13  ;;  %3396 = vst [vmem:[%s6026_s22 + $0x78] sm:$0xff] %v3364_v1 }
 0x5d0   : > { %3397 = vst [vmem:[%s6026_s22 + $0x80] sm:$0xff] %v3365_v55  ;;  %3398 = vst [vmem:[%s6026_s22 + $0x88] sm:$0xff] %v3366_v4 }
 0x5d1   : > { %3399 = vst [vmem:[%s6026_s22 + $0x90] sm:$0xff] %v3367_v35  ;;  %3400 = vst [vmem:[%s6026_s22 + $0x98] sm:$0xff] %v3368_v40 }
 0x5d2   : > { %3401 = vst [vmem:[%s6026_s22 + $0xa0] sm:$0xff] %v3369_v6  ;;  %3402 = vst [vmem:[%s6026_s22 + $0xa8] sm:$0xff] %v3370_v58 }
 0x5d3   : > { %3403 = vst [vmem:[%s6026_s22 + $0xb0] sm:$0xff] %v3371_v28  ;;  %3404 = vst [vmem:[%s6026_s22 + $0xb8] sm:$0xff] %v3372_v38 }
 0x5d4   : > { %3405 = vst [vmem:[%s6026_s22 + $0xc0] sm:$0xff] %v3373_v26  ;;  %3406 = vst [vmem:[%s6026_s22 + $0xc8] sm:$0xff] %v3374_v50 }
 0x5d5   : > { %3407 = vst [vmem:[%s6026_s22 + $0xd0] sm:$0xff] %v3375_v27  ;;  %3408 = vst [vmem:[%s6026_s22 + $0xd8] sm:$0xff] %v3376_v14 }
 0x5d6   : > { %3409 = vst [vmem:[%s6026_s22 + $0xe0] sm:$0xff] %v3377_v12  ;;  %3410 = vst [vmem:[%s6026_s22 + $0xe8] sm:$0xff] %v3378_v21 }
 0x5d7   : > { %3411 = vst [vmem:[%s6026_s22 + $0xf0] sm:$0xff] %v3379_v11  ;;  %3412 = vst [vmem:[%s6026_s22 + $0xf8] sm:$0xff] %v3380_v18 }
 0x5d8   : > { %4109 = shalt.err (!%p4106_p3)
}
 0x5d9   : > { %s4110_s16 = scalar_lea.hbm %s6065_s14, 4096  ;;  %s4114_s23 = scalar_lea.hbm %s6137_s9, 8192 }
 0x5da   : > { %p4111_p4 = scmp.ne.s32.totalorder %s6065_s14, %s4110_s16  ;;  %p4115_p9 = scmp.lt.u32.totalorder %s6065_s14, %s6137_s9 }
 0x5db   : > { %p4116_p10 = scmp.lt.u32.totalorder %s4114_s23, %s4110_s16  ;;  %p4118_p12 = scmp.lt.u32.totalorder %s4110_s16, %s6065_s14 }
 0x5dc   : > { %p4112_p7 = pnand %p4111_p4, %p4255_p5 }
 0x5dd   : > { %p4117_p11 = por %p4116_p10, %p4115_p9 }
 0x5de   : > { %p4113_p8 = pneg %p4112_p7 }
 0x5df   : > { %p4119_p13 = por %p4118_p12, %p4117_p11 }
 0x5e1   : > { %p4120_p0 = pnand %p4119_p13, %p4113_p8 }
 0x5e3   : > { %4123 = shalt.err (!%p4120_p0)
}
 0x5e4   : > { %s4165_s28 = smov 128   ;;  %s4166_s26 = smov 8  }
 0x5e5   : > { %3876 = dma.vmem_to_hbm [thread:$0]  (%p4255_p5), %s6067_s24, 4096, %s6065_s14, %s6087_s17, %s4165_s28, %s4165_s28, %s4166_s26  }
 0x5e6 PF: > { %p3882_p1 = scmp.ge.s32.totalorder %s4158_s12, 2  ;;  %s3442_s27 = sand.u32 1, %s4146_s30  }
 0x5e7   : > { %s3443_s29 = scalar_lea.sflag [#allocation5], %s3442_s27 }
 0x5e8   : > { %p3879_p2 = pnand %p3882_p1, %p4259_p6 }
 0x5ea   : > { %4141 = dma.done.wait (!%p3879_p2), %s3443_s29, 4096  }
 0x5eb   : > { %4143 = vsyncadd (!%p3879_p2), %s3443_s29, 4294963200  ;;  %p19_p3 = scmp.ge.s32.totalorder %s4242_s15, 4   ;;  %s6245_s30 = smov %s4150_s10 }
 0x5ec   : > { %s6246_s10 = smov %s4154_s11  ;;  %s6247_s11 = smov %s4253_s18 }
 0x5ed   : > { %s6248_s12 = smov %s4242_s15  ;;  %21 = sbr.rel (!%p19_p3) target bundleno = 3 (0x3), region = 94 }
 0x5f4   :  { %3448 = vsyncpa [#allocation5], 1 }
 0x5f5   :  { %3450 = vsyncpa [#allocation5 + $0x1], 1 }

</bundles_post_ra>
